<compile_context>
chip_gen: v7x
topology: tpu7x:2x2x1
jax: 0.10.0
libtpu: 0.0.40
codegen_flags: <defaults>
</compile_context>

<pallas_src>
import numpy as np
import jax
import jax.numpy as jnp
from jax.experimental import pallas as pl
from jax.experimental.pallas import tpu as pltpu

# ---- small, self-consistent hyper-params (scaled down from the original) ----
N_EMBD = 128                    # original: 1024
N_HEAD = 4                      # original: 32
HEAD_SIZE = N_EMBD // N_HEAD    # 32
BLOCK_SIZE = 16                 # original: 256  (sequence length T)
LN_EPS = 1e-5


def _layer_norm_onepass(v, gamma, beta):
    # One-pass moments: both cross-lane (XLU) reductions issue back-to-back,
    # var = E[x^2] - mu^2 (numerically fine for normalized activations).
    mu = jnp.mean(v, axis=-1, keepdims=True)
    ms = jnp.mean(v * v, axis=-1, keepdims=True)
    var = ms - mu * mu
    return (v - mu) * jax.lax.rsqrt(var + LN_EPS) * gamma + beta


def block_kernel(x_ref, g1_ref, b1_ref,
                 wqkv_ref, wp_ref, bp_ref,
                 g2_ref, b2_ref,
                 w1_ref, bb1_ref, w2_ref, bb2_ref,
                 o_ref):
    """One full transformer Block for Bb batch elements per grid step."""
    Bb, T, C = x_ref.shape
    H, hs = N_HEAD, HEAD_SIZE
    M = Bb * T                                       # flattened row count

    x = x_ref[...].reshape(M, C)                     # (M, C) f32

    # ---------------- LayerNorm 1 (f32 VPU math) ----------------
    h = _layer_norm_onepass(x, g1_ref[0], b1_ref[0])

    # ---------------- fused QKV projection (bf16 x bf16 -> f32) -------------
    # 1/sqrt(hs) is already folded into the q columns of wqkv (host side).
    qkv = jnp.dot(h.astype(jnp.bfloat16), wqkv_ref[...],
                  preferred_element_type=jnp.float32)        # (M, 3C) f32
    qkv3 = qkv.reshape(Bb, T, 3 * C)

    # causal additive bias (static for fixed T), built once per step
    row = jax.lax.broadcasted_iota(jnp.int32, (T, T), 0)
    col = jax.lax.broadcasted_iota(jnp.int32, (T, T), 1)
    bias = jnp.where(row >= col, 0.0, -1e30).astype(jnp.float32)   # (T, T)

    # ------------- attention: all Bb*H (batch, head) pairs in one pass ------
    def head_slices(base):
        return [qkv3[:, :, base + hd * hs: base + (hd + 1) * hs]
                for hd in range(H)]
    # head-major batch dim: index = hd * Bb + b
    q_all = jnp.concatenate(head_slices(0), axis=0).astype(jnp.bfloat16)     # (H*Bb,T,hs)
    k_all = jnp.concatenate(head_slices(C), axis=0).astype(jnp.bfloat16)
    v_all = jnp.concatenate(head_slices(2 * C), axis=0).astype(jnp.bfloat16)

    wei = jnp.einsum('btd,bsd->bts', q_all, k_all,
                     preferred_element_type=jnp.float32) + bias[None]
    wei = wei - jnp.max(wei, axis=-1, keepdims=True)     # keep max-sub before exp
    wei = jnp.exp(wei)
    wei = wei * pl.reciprocal(jnp.sum(wei, axis=-1, keepdims=True),
                              approx=True)               # EUP vrcp (free slot)
    oh = jnp.einsum('bts,bsd->btd', wei.astype(jnp.bfloat16), v_all,
                    preferred_element_type=jnp.float32)  # (H*Bb, T, hs) f32

    # heads back onto lanes -> one lane-dense (M,C) slab, single K=C proj dot
    oh_slab = jnp.concatenate(
        [oh[hd * Bb:(hd + 1) * Bb].reshape(M, hs) for hd in range(H)], axis=-1)
    sa = jnp.dot(oh_slab.astype(jnp.bfloat16), wp_ref[...],
                 preferred_element_type=jnp.float32) + bp_ref[0]

    x1 = x + sa                                          # first residual (f32)

    # ---------------- LayerNorm 2 + FeedForward ----------------
    h2 = _layer_norm_onepass(x1, g2_ref[0], b2_ref[0])
    ff = jnp.dot(h2.astype(jnp.bfloat16), w1_ref[...],
                 preferred_element_type=jnp.float32) + bb1_ref[0]
    ff = jnp.maximum(ff, 0.0)
    ff = jnp.dot(ff.astype(jnp.bfloat16), w2_ref[...],
                 preferred_element_type=jnp.float32) + bb2_ref[0]

    o_ref[...] = (x1 + ff).reshape(Bb, T, C)             # second residual


def _pick_batch_block(B, T):
    """Prefer M=Bb*T=256 (fills the 256-wide v6e/v7x MXU) but only when the
    grid keeps >= 2 steps (both v7x TensorCores busy + some pipelining);
    otherwise fall back to M=128 (full v5e 128x128 MXU).  Pass batch_block
    explicitly to override per generation."""
    for target_m in (256, 128):
        bb = max(1, target_m // T)
        if B % bb == 0 and (B // bb) >= 2:
            return bb
    return 1


def transformer_block(x, params, *, batch_block=None):
    """x: (B, T, C) float32.  params: logical (f32, unscaled) packed weights
    from init_params; the bf16 cast + q-scale folding happens here."""
    B, T, C = x.shape
    Bb = batch_block if batch_block is not None else _pick_batch_block(B, T)
    assert B % Bb == 0, "batch must be divisible by the batch block"

    # ---- host-side packing: fold 1/sqrt(hs) into q columns, cast to bf16 ----
    scale = HEAD_SIZE ** (-0.5)
    wqkv = params["wqkv"].at[:, :C].multiply(scale).astype(jnp.bfloat16)
    wp = params["wp"].astype(jnp.bfloat16)
    w1 = params["w1"].astype(jnp.bfloat16)
    w2 = params["w2"].astype(jnp.bfloat16)

    def const_spec(shape):
        # grid-invariant operand: single-buffer it (no pointless double-buffer)
        nd = len(shape)
        return pl.BlockSpec(shape, lambda g, _nd=nd: (0,) * _nd,
                            pipeline_mode=pl.Buffered(1))

    in_specs = [
        pl.BlockSpec((Bb, T, C), lambda g: (g, 0, 0)),    # x (Bb batches/step)
        const_spec((1, C)), const_spec((1, C)),           # ln1 gamma, beta
        const_spec((C, 3 * C)),                           # fused W_qkv (bf16)
        const_spec((C, C)), const_spec((1, C)),           # proj W (bf16), b
        const_spec((1, C)), const_spec((1, C)),           # ln2 gamma, beta
        const_spec((C, 4 * C)), const_spec((1, 4 * C)),   # ffn W1 (bf16), b1
        const_spec((4 * C, C)), const_spec((1, C)),       # ffn W2 (bf16), b2
    ]
    out_spec = pl.BlockSpec((Bb, T, C), lambda g: (g, 0, 0))

    # advisory cost hint for XLA's scheduler around the custom call
    flops = 2 * B * T * C * (12 * C) + 4 * B * T * T * C
    transcendentals = B * N_HEAD * T * T
    bytes_accessed = 4 * (2 * B * T * C) + 2 * (12 * C * C) + 4 * (10 * C)
    cost = pl.CostEstimate(flops=flops,
                           transcendentals=transcendentals,
                           bytes_accessed=bytes_accessed)

    fn = pl.pallas_call(
        block_kernel,
        out_shape=jax.ShapeDtypeStruct((B, T, C), jnp.float32),
        grid_spec=pltpu.PrefetchScalarGridSpec(
            num_scalar_prefetch=0,
            grid=(B // Bb,),
            in_specs=in_specs,
            out_specs=out_spec,
        ),
        compiler_params=pltpu.CompilerParams(
            dimension_semantics=("parallel",),
            vmem_limit_bytes=32 * 1024 * 1024),
        cost_estimate=cost,
    )
    return fn(x,
              params["g1"], params["b1"],
              wqkv,
              wp, params["bp"],
              params["g2"], params["b2"],
              w1, params["bb1"],
              w2, params["bb2"])


def init_params(key):
    """Logical packed weights (f32, unscaled).

    wqkv columns: [ q_head0 | q_head1 | ... | k_head0 | ... | v_head0 | ... ]
    wp rows:      [ head0 (hs rows) | head1 | ... ]  (i.e. (H*hs, C) = (C, C))
    """
    C = N_EMBD
    ks = jax.random.split(key, 5)
    s = 0.02
    return {
        "g1": jnp.ones((1, C), jnp.float32),
        "b1": jnp.zeros((1, C), jnp.float32),
        "wqkv": s * jax.random.normal(ks[0], (C, 3 * C), jnp.float32),
        "wp": s * jax.random.normal(ks[1], (C, C), jnp.float32),
        "bp": s * jax.random.normal(ks[2], (1, C), jnp.float32),
        "g2": jnp.ones((1, C), jnp.float32),
        "b2": jnp.zeros((1, C), jnp.float32),
        "w1": s * jax.random.normal(ks[3], (C, 4 * C), jnp.float32),
        "bb1": jnp.zeros((1, 4 * C), jnp.float32),
        "w2": s * jax.random.normal(ks[4], (4 * C, C), jnp.float32),
        "bb2": jnp.zeros((1, C), jnp.float32),
    }


def reference_block(x, p):
    """Pure-JAX f32 reference (eval-mode dropout = identity), same logical
    packed weights, two-pass LayerNorm -- mirrors the PyTorch module."""
    B, T, C = x.shape
    H, hs = N_HEAD, HEAD_SIZE

    def ln(v, g, b):
        mu = jnp.mean(v, axis=-1, keepdims=True)
        var = jnp.mean((v - mu) ** 2, axis=-1, keepdims=True)
        return (v - mu) * jax.lax.rsqrt(var + LN_EPS) * g + b

    h = ln(x, p["g1"][0], p["b1"][0])
    qkv = h @ p["wqkv"]                                     # (B, T, 3C)
    q, k, v = qkv[..., :C], qkv[..., C:2 * C], qkv[..., 2 * C:]

    causal = jnp.tril(jnp.ones((T, T), bool))
    outs = []
    for hd in range(H):
        qh = q[..., hd * hs:(hd + 1) * hs]
        kh = k[..., hd * hs:(hd + 1) * hs]
        vh = v[..., hd * hs:(hd + 1) * hs]
        wei = jnp.einsum('btd,bsd->bts', qh, kh) * hs ** (-0.5)
        wei = jnp.where(causal, wei, -jnp.inf)
        wei = jax.nn.softmax(wei, axis=-1)
        outs.append(jnp.einsum('bts,bsd->btd', wei, vh))
    sa = jnp.concatenate(outs, axis=-1) @ p["wp"] + p["bp"][0]
    x1 = x + sa
    h2 = ln(x1, p["g2"][0], p["b2"][0])
    ff = jnp.maximum(h2 @ p["w1"] + p["bb1"][0], 0.0) @ p["w2"] + p["bb2"][0]
    return x1 + ff


if __name__ == "__main__":
    key = jax.random.PRNGKey(0)
    kx, kp = jax.random.split(key)
    B, T, C = 16, BLOCK_SIZE, N_EMBD            # Bb auto -> 8, grid=(2,)
    x = jax.random.normal(kx, (B, T, C), jnp.float32)
    params = init_params(kp)

    out = transformer_block(x, params)
    out = jax.block_until_ready(out)

    ref = reference_block(x, params)
    # 2e-3 tolerance: kernel uses bf16 matmul operands (f32 accumulate) +
    # approx EUP reciprocal in the softmax, vs. the pure-f32 reference.
    np.testing.assert_allclose(np.asarray(out), np.asarray(ref),
                               rtol=2e-3, atol=2e-3)
    print("KERNEL_OK")
</pallas_src>

<mosaic_0001>
module attributes {stable_mosaic.version = 11 : i64} {
  func.func @block_kernel(%arg0: i32, %arg1: memref<8x16x128xf32, #tpu.memory_space<vmem>>, %arg2: memref<1x128xf32, #tpu.memory_space<vmem>>, %arg3: memref<1x128xf32, #tpu.memory_space<vmem>>, %arg4: memref<128x384xbf16, #tpu.memory_space<vmem>>, %arg5: memref<128x128xbf16, #tpu.memory_space<vmem>>, %arg6: memref<1x128xf32, #tpu.memory_space<vmem>>, %arg7: memref<1x128xf32, #tpu.memory_space<vmem>>, %arg8: memref<1x128xf32, #tpu.memory_space<vmem>>, %arg9: memref<128x512xbf16, #tpu.memory_space<vmem>>, %arg10: memref<1x512xf32, #tpu.memory_space<vmem>>, %arg11: memref<512x128xbf16, #tpu.memory_space<vmem>>, %arg12: memref<1x128xf32, #tpu.memory_space<vmem>>, %arg13: memref<8x16x128xf32, #tpu.memory_space<vmem>>) attributes {dimension_semantics = [#tpu.dimension_semantics<parallel>], iteration_bounds = array<i64: 2>, scalar_prefetch = 0 : i64, scratch_operands = 0 : i64, tpu.core_type = #tpu.core_type<tc>, window_params = [{transform_indices = @transform_0, window_bounds = array<i64: 8, 16, 128>}, {pipeline_mode = #tpu.pipeline_mode<synchronous>, transform_indices = @transform_1, window_bounds = array<i64: 1, 128>}, {pipeline_mode = #tpu.pipeline_mode<synchronous>, transform_indices = @transform_2, window_bounds = array<i64: 1, 128>}, {pipeline_mode = #tpu.pipeline_mode<synchronous>, transform_indices = @transform_3, window_bounds = array<i64: 128, 384>}, {pipeline_mode = #tpu.pipeline_mode<synchronous>, transform_indices = @transform_4, window_bounds = array<i64: 128, 128>}, {pipeline_mode = #tpu.pipeline_mode<synchronous>, transform_indices = @transform_5, window_bounds = array<i64: 1, 128>}, {pipeline_mode = #tpu.pipeline_mode<synchronous>, transform_indices = @transform_6, window_bounds = array<i64: 1, 128>}, {pipeline_mode = #tpu.pipeline_mode<synchronous>, transform_indices = @transform_7, window_bounds = array<i64: 1, 128>}, {pipeline_mode = #tpu.pipeline_mode<synchronous>, transform_indices = @transform_8, window_bounds = array<i64: 128, 512>}, {pipeline_mode = #tpu.pipeline_mode<synchronous>, transform_indices = @transform_9, window_bounds = array<i64: 1, 512>}, {pipeline_mode = #tpu.pipeline_mode<synchronous>, transform_indices = @transform_10, window_bounds = array<i64: 512, 128>}, {pipeline_mode = #tpu.pipeline_mode<synchronous>, transform_indices = @transform_11, window_bounds = array<i64: 1, 128>}, {transform_indices = @transform_12, window_bounds = array<i64: 8, 16, 128>}]} {
    %c0 = arith.constant 0 : index
    %c0_0 = arith.constant 0 : index
    %c0_1 = arith.constant 0 : index
    %0 = vector.load %arg1[%c0, %c0_0, %c0_1] : memref<8x16x128xf32, #tpu.memory_space<vmem>>, vector<8x16x128xf32>
    %1 = vector.shape_cast %0 : vector<8x16x128xf32> to vector<128x128xf32>
    %c0_2 = arith.constant 0 : index
    %c0_3 = arith.constant 0 : index
    %2 = vector.load %arg2[%c0_2, %c0_3] : memref<1x128xf32, #tpu.memory_space<vmem>>, vector<1x128xf32>
    %3 = vector.shape_cast %2 : vector<1x128xf32> to vector<128xf32>
    %c0_4 = arith.constant 0 : index
    %c0_5 = arith.constant 0 : index
    %4 = vector.load %arg3[%c0_4, %c0_5] : memref<1x128xf32, #tpu.memory_space<vmem>>, vector<1x128xf32>
    %5 = vector.shape_cast %4 : vector<1x128xf32> to vector<128xf32>
    %cst = arith.constant dense<0.000000e+00> : vector<128xf32>
    %6 = vector.multi_reduction <add>, %1, %cst [1] : vector<128x128xf32> to vector<128xf32>
    %7 = vector.shape_cast %6 : vector<128xf32> to vector<128x1xf32>
    %cst_6 = arith.constant 1.280000e+02 : f32
    %8 = vector.broadcast %cst_6 : f32 to vector<128x1xf32>
    %9 = arith.divf %7, %8 : vector<128x1xf32>
    %10 = arith.mulf %1, %1 : vector<128x128xf32>
    %cst_7 = arith.constant dense<0.000000e+00> : vector<128xf32>
    %11 = vector.multi_reduction <add>, %10, %cst_7 [1] : vector<128x128xf32> to vector<128xf32>
    %12 = vector.shape_cast %11 : vector<128xf32> to vector<128x1xf32>
    %cst_8 = arith.constant 1.280000e+02 : f32
    %13 = vector.broadcast %cst_8 : f32 to vector<128x1xf32>
    %14 = arith.divf %12, %13 : vector<128x1xf32>
    %15 = arith.mulf %9, %9 : vector<128x1xf32>
    %16 = arith.subf %14, %15 : vector<128x1xf32>
    %17 = vector.broadcast %9 : vector<128x1xf32> to vector<128x128xf32>
    %18 = arith.subf %1, %17 : vector<128x128xf32>
    %cst_9 = arith.constant 9.99999974E-6 : f32
    %19 = vector.broadcast %cst_9 : f32 to vector<128x1xf32>
    %20 = arith.addf %16, %19 : vector<128x1xf32>
    %21 = math.rsqrt %20 : vector<128x1xf32>
    %22 = vector.broadcast %21 : vector<128x1xf32> to vector<128x128xf32>
    %23 = arith.mulf %18, %22 : vector<128x128xf32>
    %24 = vector.shape_cast %3 : vector<128xf32> to vector<1x128xf32>
    %25 = vector.broadcast %24 : vector<1x128xf32> to vector<128x128xf32>
    %26 = arith.mulf %23, %25 : vector<128x128xf32>
    %27 = vector.shape_cast %5 : vector<128xf32> to vector<1x128xf32>
    %28 = vector.broadcast %27 : vector<1x128xf32> to vector<128x128xf32>
    %29 = arith.addf %26, %28 : vector<128x128xf32>
    %30 = arith.truncf %29 : vector<128x128xf32> to vector<128x128xbf16>
    %c0_10 = arith.constant 0 : index
    %c0_11 = arith.constant 0 : index
    %31 = vector.load %arg4[%c0_10, %c0_11] : memref<128x384xbf16, #tpu.memory_space<vmem>>, vector<128x384xbf16>
    %cst_12 = arith.constant dense<0.000000e+00> : vector<128x384xf32>
    %32 = tpu.matmul %30, %31, %cst_12 {dimension_numbers = #tpu.dot_dimension_numbers<[1], [0], [0], [1], [0, 0, 1, 1], [], []>} : vector<128x128xbf16>, vector<128x384xbf16>, vector<128x384xf32> -> vector<128x384xf32>
    %33 = vector.shape_cast %32 : vector<128x384xf32> to vector<8x16x384xf32>
    %34 = tpu.iota {dimensions = array<i32: 0>} : vector<16x16xi32>
    %35 = tpu.iota {dimensions = array<i32: 1>} : vector<16x16xi32>
    %36 = arith.cmpi sge, %34, %35 : vector<16x16xi32>
    %cst_13 = arith.constant 0.000000e+00 : f32
    %cst_14 = arith.constant -1.000000e+30 : f32
    %37 = vector.broadcast %cst_13 : f32 to vector<16x16xf32>
    %38 = vector.broadcast %cst_14 : f32 to vector<16x16xf32>
    %39 = arith.select %36, %37, %38 : vector<16x16xi1>, vector<16x16xf32>
    %40 = vector.extract_strided_slice %33 {offsets = [0, 0, 0], sizes = [8, 16, 32], strides = [1, 1, 1]} : vector<8x16x384xf32> to vector<8x16x32xf32>
    %41 = vector.extract_strided_slice %33 {offsets = [0, 0, 32], sizes = [8, 16, 32], strides = [1, 1, 1]} : vector<8x16x384xf32> to vector<8x16x32xf32>
    %42 = vector.extract_strided_slice %33 {offsets = [0, 0, 64], sizes = [8, 16, 32], strides = [1, 1, 1]} : vector<8x16x384xf32> to vector<8x16x32xf32>
    %43 = vector.extract_strided_slice %33 {offsets = [0, 0, 96], sizes = [8, 16, 32], strides = [1, 1, 1]} : vector<8x16x384xf32> to vector<8x16x32xf32>
    %44 = tpu.concatenate %40, %41, %42, %43 in 0 : vector<8x16x32xf32>, vector<8x16x32xf32>, vector<8x16x32xf32>, vector<8x16x32xf32> -> vector<32x16x32xf32>
    %45 = arith.truncf %44 : vector<32x16x32xf32> to vector<32x16x32xbf16>
    %46 = vector.extract_strided_slice %33 {offsets = [0, 0, 128], sizes = [8, 16, 32], strides = [1, 1, 1]} : vector<8x16x384xf32> to vector<8x16x32xf32>
    %47 = vector.extract_strided_slice %33 {offsets = [0, 0, 160], sizes = [8, 16, 32], strides = [1, 1, 1]} : vector<8x16x384xf32> to vector<8x16x32xf32>
    %48 = vector.extract_strided_slice %33 {offsets = [0, 0, 192], sizes = [8, 16, 32], strides = [1, 1, 1]} : vector<8x16x384xf32> to vector<8x16x32xf32>
    %49 = vector.extract_strided_slice %33 {offsets = [0, 0, 224], sizes = [8, 16, 32], strides = [1, 1, 1]} : vector<8x16x384xf32> to vector<8x16x32xf32>
    %50 = tpu.concatenate %46, %47, %48, %49 in 0 : vector<8x16x32xf32>, vector<8x16x32xf32>, vector<8x16x32xf32>, vector<8x16x32xf32> -> vector<32x16x32xf32>
    %51 = arith.truncf %50 : vector<32x16x32xf32> to vector<32x16x32xbf16>
    %52 = vector.extract_strided_slice %33 {offsets = [0, 0, 256], sizes = [8, 16, 32], strides = [1, 1, 1]} : vector<8x16x384xf32> to vector<8x16x32xf32>
    %53 = vector.extract_strided_slice %33 {offsets = [0, 0, 288], sizes = [8, 16, 32], strides = [1, 1, 1]} : vector<8x16x384xf32> to vector<8x16x32xf32>
    %54 = vector.extract_strided_slice %33 {offsets = [0, 0, 320], sizes = [8, 16, 32], strides = [1, 1, 1]} : vector<8x16x384xf32> to vector<8x16x32xf32>
    %55 = vector.extract_strided_slice %33 {offsets = [0, 0, 352], sizes = [8, 16, 32], strides = [1, 1, 1]} : vector<8x16x384xf32> to vector<8x16x32xf32>
    %56 = tpu.concatenate %52, %53, %54, %55 in 0 : vector<8x16x32xf32>, vector<8x16x32xf32>, vector<8x16x32xf32>, vector<8x16x32xf32> -> vector<32x16x32xf32>
    %57 = arith.truncf %56 : vector<32x16x32xf32> to vector<32x16x32xbf16>
    "tpu.trace_start"() <{level = 10 : i32, message = "btd,bsd->bts"}> : () -> ()
    %cst_15 = arith.constant dense<0.000000e+00> : vector<32x16x16xf32>
    %58 = tpu.matmul %45, %51, %cst_15 {dimension_numbers = #tpu.dot_dimension_numbers<[2], [2], [1], [1], [0, 0, 0, 1, 1, 1], [0], [0]>} : vector<32x16x32xbf16>, vector<32x16x32xbf16>, vector<32x16x16xf32> -> vector<32x16x16xf32>
    "tpu.trace_stop"() : () -> ()
    %59 = vector.shape_cast %39 : vector<16x16xf32> to vector<1x16x16xf32>
    %60 = vector.broadcast %59 : vector<1x16x16xf32> to vector<32x16x16xf32>
    %61 = arith.addf %58, %60 : vector<32x16x16xf32>
    %cst_16 = arith.constant dense<0xFF800000> : vector<32x16xf32>
    %62 = vector.multi_reduction <maximumf>, %61, %cst_16 [2] : vector<32x16x16xf32> to vector<32x16xf32>
    %63 = vector.shape_cast %62 : vector<32x16xf32> to vector<32x16x1xf32>
    %64 = vector.broadcast %63 : vector<32x16x1xf32> to vector<32x16x16xf32>
    %65 = arith.subf %61, %64 : vector<32x16x16xf32>
    %66 = math.exp %65 : vector<32x16x16xf32>
    %cst_17 = arith.constant dense<0.000000e+00> : vector<32x16xf32>
    %67 = vector.multi_reduction <add>, %66, %cst_17 [2] : vector<32x16x16xf32> to vector<32x16xf32>
    %68 = vector.shape_cast %67 : vector<32x16xf32> to vector<32x16x1xf32>
    %69 = tpu.reciprocal %68 {approx = true} : vector<32x16x1xf32> -> vector<32x16x1xf32>
    %70 = vector.broadcast %69 : vector<32x16x1xf32> to vector<32x16x16xf32>
    %71 = arith.mulf %66, %70 : vector<32x16x16xf32>
    %72 = arith.truncf %71 : vector<32x16x16xf32> to vector<32x16x16xbf16>
    "tpu.trace_start"() <{level = 10 : i32, message = "bts,bsd->btd"}> : () -> ()
    %cst_18 = arith.constant dense<0.000000e+00> : vector<32x16x32xf32>
    %73 = tpu.matmul %72, %57, %cst_18 {dimension_numbers = #tpu.dot_dimension_numbers<[2], [1], [1], [2], [0, 0, 0, 1, 1, 2], [0], [0]>} : vector<32x16x16xbf16>, vector<32x16x32xbf16>, vector<32x16x32xf32> -> vector<32x16x32xf32>
    "tpu.trace_stop"() : () -> ()
    %74 = vector.extract_strided_slice %73 {offsets = [0, 0, 0], sizes = [8, 16, 32], strides = [1, 1, 1]} : vector<32x16x32xf32> to vector<8x16x32xf32>
    %75 = vector.shape_cast %74 : vector<8x16x32xf32> to vector<128x32xf32>
    %76 = vector.extract_strided_slice %73 {offsets = [8, 0, 0], sizes = [8, 16, 32], strides = [1, 1, 1]} : vector<32x16x32xf32> to vector<8x16x32xf32>
    %77 = vector.shape_cast %76 : vector<8x16x32xf32> to vector<128x32xf32>
    %78 = vector.extract_strided_slice %73 {offsets = [16, 0, 0], sizes = [8, 16, 32], strides = [1, 1, 1]} : vector<32x16x32xf32> to vector<8x16x32xf32>
    %79 = vector.shape_cast %78 : vector<8x16x32xf32> to vector<128x32xf32>
    %80 = vector.extract_strided_slice %73 {offsets = [24, 0, 0], sizes = [8, 16, 32], strides = [1, 1, 1]} : vector<32x16x32xf32> to vector<8x16x32xf32>
    %81 = vector.shape_cast %80 : vector<8x16x32xf32> to vector<128x32xf32>
    %82 = tpu.concatenate %75, %77, %79, %81 in 1 : vector<128x32xf32>, vector<128x32xf32>, vector<128x32xf32>, vector<128x32xf32> -> vector<128x128xf32>
    %83 = arith.truncf %82 : vector<128x128xf32> to vector<128x128xbf16>
    %c0_19 = arith.constant 0 : index
    %c0_20 = arith.constant 0 : index
    %84 = vector.load %arg5[%c0_19, %c0_20] : memref<128x128xbf16, #tpu.memory_space<vmem>>, vector<128x128xbf16>
    %cst_21 = arith.constant dense<0.000000e+00> : vector<128x128xf32>
    %85 = tpu.matmul %83, %84, %cst_21 {dimension_numbers = #tpu.dot_dimension_numbers<[1], [0], [0], [1], [0, 0, 1, 1], [], []>} : vector<128x128xbf16>, vector<128x128xbf16>, vector<128x128xf32> -> vector<128x128xf32>
    %c0_22 = arith.constant 0 : index
    %c0_23 = arith.constant 0 : index
    %86 = vector.load %arg6[%c0_22, %c0_23] : memref<1x128xf32, #tpu.memory_space<vmem>>, vector<1x128xf32>
    %87 = vector.shape_cast %86 : vector<1x128xf32> to vector<128xf32>
    %88 = vector.shape_cast %87 : vector<128xf32> to vector<1x128xf32>
    %89 = vector.broadcast %88 : vector<1x128xf32> to vector<128x128xf32>
    %90 = arith.addf %85, %89 : vector<128x128xf32>
    %91 = arith.addf %1, %90 : vector<128x128xf32>
    %c0_24 = arith.constant 0 : index
    %c0_25 = arith.constant 0 : index
    %92 = vector.load %arg7[%c0_24, %c0_25] : memref<1x128xf32, #tpu.memory_space<vmem>>, vector<1x128xf32>
    %93 = vector.shape_cast %92 : vector<1x128xf32> to vector<128xf32>
    %c0_26 = arith.constant 0 : index
    %c0_27 = arith.constant 0 : index
    %94 = vector.load %arg8[%c0_26, %c0_27] : memref<1x128xf32, #tpu.memory_space<vmem>>, vector<1x128xf32>
    %95 = vector.shape_cast %94 : vector<1x128xf32> to vector<128xf32>
    %cst_28 = arith.constant dense<0.000000e+00> : vector<128xf32>
    %96 = vector.multi_reduction <add>, %91, %cst_28 [1] : vector<128x128xf32> to vector<128xf32>
    %97 = vector.shape_cast %96 : vector<128xf32> to vector<128x1xf32>
    %cst_29 = arith.constant 1.280000e+02 : f32
    %98 = vector.broadcast %cst_29 : f32 to vector<128x1xf32>
    %99 = arith.divf %97, %98 : vector<128x1xf32>
    %100 = arith.mulf %91, %91 : vector<128x128xf32>
    %cst_30 = arith.constant dense<0.000000e+00> : vector<128xf32>
    %101 = vector.multi_reduction <add>, %100, %cst_30 [1] : vector<128x128xf32> to vector<128xf32>
    %102 = vector.shape_cast %101 : vector<128xf32> to vector<128x1xf32>
    %cst_31 = arith.constant 1.280000e+02 : f32
    %103 = vector.broadcast %cst_31 : f32 to vector<128x1xf32>
    %104 = arith.divf %102, %103 : vector<128x1xf32>
    %105 = arith.mulf %99, %99 : vector<128x1xf32>
    %106 = arith.subf %104, %105 : vector<128x1xf32>
    %107 = vector.broadcast %99 : vector<128x1xf32> to vector<128x128xf32>
    %108 = arith.subf %91, %107 : vector<128x128xf32>
    %cst_32 = arith.constant 9.99999974E-6 : f32
    %109 = vector.broadcast %cst_32 : f32 to vector<128x1xf32>
    %110 = arith.addf %106, %109 : vector<128x1xf32>
    %111 = math.rsqrt %110 : vector<128x1xf32>
    %112 = vector.broadcast %111 : vector<128x1xf32> to vector<128x128xf32>
    %113 = arith.mulf %108, %112 : vector<128x128xf32>
    %114 = vector.shape_cast %93 : vector<128xf32> to vector<1x128xf32>
    %115 = vector.broadcast %114 : vector<1x128xf32> to vector<128x128xf32>
    %116 = arith.mulf %113, %115 : vector<128x128xf32>
    %117 = vector.shape_cast %95 : vector<128xf32> to vector<1x128xf32>
    %118 = vector.broadcast %117 : vector<1x128xf32> to vector<128x128xf32>
    %119 = arith.addf %116, %118 : vector<128x128xf32>
    %120 = arith.truncf %119 : vector<128x128xf32> to vector<128x128xbf16>
    %c0_33 = arith.constant 0 : index
    %c0_34 = arith.constant 0 : index
    %121 = vector.load %arg9[%c0_33, %c0_34] : memref<128x512xbf16, #tpu.memory_space<vmem>>, vector<128x512xbf16>
    %cst_35 = arith.constant dense<0.000000e+00> : vector<128x512xf32>
    %122 = tpu.matmul %120, %121, %cst_35 {dimension_numbers = #tpu.dot_dimension_numbers<[1], [0], [0], [1], [0, 0, 1, 1], [], []>} : vector<128x128xbf16>, vector<128x512xbf16>, vector<128x512xf32> -> vector<128x512xf32>
    %c0_36 = arith.constant 0 : index
    %c0_37 = arith.constant 0 : index
    %123 = vector.load %arg10[%c0_36, %c0_37] : memref<1x512xf32, #tpu.memory_space<vmem>>, vector<1x512xf32>
    %124 = vector.shape_cast %123 : vector<1x512xf32> to vector<512xf32>
    %125 = vector.shape_cast %124 : vector<512xf32> to vector<1x512xf32>
    %126 = vector.broadcast %125 : vector<1x512xf32> to vector<128x512xf32>
    %127 = arith.addf %122, %126 : vector<128x512xf32>
    %cst_38 = arith.constant 0.000000e+00 : f32
    %128 = vector.broadcast %cst_38 : f32 to vector<128x512xf32>
    %129 = arith.maximumf %127, %128 : vector<128x512xf32>
    %130 = arith.truncf %129 : vector<128x512xf32> to vector<128x512xbf16>
    %c0_39 = arith.constant 0 : index
    %c0_40 = arith.constant 0 : index
    %131 = vector.load %arg11[%c0_39, %c0_40] : memref<512x128xbf16, #tpu.memory_space<vmem>>, vector<512x128xbf16>
    %cst_41 = arith.constant dense<0.000000e+00> : vector<128x128xf32>
    %132 = tpu.matmul %130, %131, %cst_41 {dimension_numbers = #tpu.dot_dimension_numbers<[1], [0], [0], [1], [0, 0, 1, 1], [], []>} : vector<128x512xbf16>, vector<512x128xbf16>, vector<128x128xf32> -> vector<128x128xf32>
    %c0_42 = arith.constant 0 : index
    %c0_43 = arith.constant 0 : index
    %133 = vector.load %arg12[%c0_42, %c0_43] : memref<1x128xf32, #tpu.memory_space<vmem>>, vector<1x128xf32>
    %134 = vector.shape_cast %133 : vector<1x128xf32> to vector<128xf32>
    %135 = vector.shape_cast %134 : vector<128xf32> to vector<1x128xf32>
    %136 = vector.broadcast %135 : vector<1x128xf32> to vector<128x128xf32>
    %137 = arith.addf %132, %136 : vector<128x128xf32>
    %138 = arith.addf %91, %137 : vector<128x128xf32>
    %139 = vector.shape_cast %138 : vector<128x128xf32> to vector<8x16x128xf32>
    %c0_44 = arith.constant 0 : index
    %c0_45 = arith.constant 0 : index
    %c0_46 = arith.constant 0 : index
    %140 = vector.load %arg13[%c0_44, %c0_45, %c0_46] : memref<8x16x128xf32, #tpu.memory_space<vmem>>, vector<8x16x128xf32>
    tpu.vector_store %arg13[%c0_44, %c0_45, %c0_46], %139 {strides = array<i32>} : memref<8x16x128xf32, #tpu.memory_space<vmem>>, vector<8x16x128xf32>,
    return
  }
  func.func @transform_0(%arg0: i32) -> (i32, i32, i32) {
    %c0_i32 = arith.constant 0 : i32
    %c0_i32_0 = arith.constant 0 : i32
    %c0_i32_1 = arith.constant 0 : i32
    return %arg0, %c0_i32, %c0_i32_0 : i32, i32, i32
  }
  func.func @transform_1(%arg0: i32) -> (i32, i32) {
    %c0_i32 = arith.constant 0 : i32
    %c0_i32_0 = arith.constant 0 : i32
    %c0_i32_1 = arith.constant 0 : i32
    return %c0_i32, %c0_i32_0 : i32, i32
  }
  func.func @transform_2(%arg0: i32) -> (i32, i32) {
    %c0_i32 = arith.constant 0 : i32
    %c0_i32_0 = arith.constant 0 : i32
    %c0_i32_1 = arith.constant 0 : i32
    return %c0_i32, %c0_i32_0 : i32, i32
  }
  func.func @transform_3(%arg0: i32) -> (i32, i32) {
    %c0_i32 = arith.constant 0 : i32
    %c0_i32_0 = arith.constant 0 : i32
    %c0_i32_1 = arith.constant 0 : i32
    return %c0_i32, %c0_i32_0 : i32, i32
  }
  func.func @transform_4(%arg0: i32) -> (i32, i32) {
    %c0_i32 = arith.constant 0 : i32
    %c0_i32_0 = arith.constant 0 : i32
    %c0_i32_1 = arith.constant 0 : i32
    return %c0_i32, %c0_i32_0 : i32, i32
  }
  func.func @transform_5(%arg0: i32) -> (i32, i32) {
    %c0_i32 = arith.constant 0 : i32
    %c0_i32_0 = arith.constant 0 : i32
    %c0_i32_1 = arith.constant 0 : i32
    return %c0_i32, %c0_i32_0 : i32, i32
  }
  func.func @transform_6(%arg0: i32) -> (i32, i32) {
    %c0_i32 = arith.constant 0 : i32
    %c0_i32_0 = arith.constant 0 : i32
    %c0_i32_1 = arith.constant 0 : i32
    return %c0_i32, %c0_i32_0 : i32, i32
  }
  func.func @transform_7(%arg0: i32) -> (i32, i32) {
    %c0_i32 = arith.constant 0 : i32
    %c0_i32_0 = arith.constant 0 : i32
    %c0_i32_1 = arith.constant 0 : i32
    return %c0_i32, %c0_i32_0 : i32, i32
  }
  func.func @transform_8(%arg0: i32) -> (i32, i32) {
    %c0_i32 = arith.constant 0 : i32
    %c0_i32_0 = arith.constant 0 : i32
    %c0_i32_1 = arith.constant 0 : i32
    return %c0_i32, %c0_i32_0 : i32, i32
  }
  func.func @transform_9(%arg0: i32) -> (i32, i32) {
    %c0_i32 = arith.constant 0 : i32
    %c0_i32_0 = arith.constant 0 : i32
    %c0_i32_1 = arith.constant 0 : i32
    return %c0_i32, %c0_i32_0 : i32, i32
  }
  func.func @transform_10(%arg0: i32) -> (i32, i32) {
    %c0_i32 = arith.constant 0 : i32
    %c0_i32_0 = arith.constant 0 : i32
    %c0_i32_1 = arith.constant 0 : i32
    return %c0_i32, %c0_i32_0 : i32, i32
  }
  func.func @transform_11(%arg0: i32) -> (i32, i32) {
    %c0_i32 = arith.constant 0 : i32
    %c0_i32_0 = arith.constant 0 : i32
    %c0_i32_1 = arith.constant 0 : i32
    return %c0_i32, %c0_i32_0 : i32, i32
  }
  func.func @transform_12(%arg0: i32) -> (i32, i32, i32) {
    %c0_i32 = arith.constant 0 : i32
    %c0_i32_0 = arith.constant 0 : i32
    %c0_i32_1 = arith.constant 0 : i32
    return %arg0, %c0_i32, %c0_i32_0 : i32, i32, i32
  }
}

</mosaic_0001>

<bundles_post_ra>
// kernel: tpu_custom_call.1
= control target key start
LH: loop header
LB: loop body
LE: loop exit
PB: predicated region body
PF: predicated region fallthrough
CT: control target
= control target key end

     0   :  { %s11978_s0 = inlined_call_operand.hbm [shape: f32[16,16,128], index: 0, kind: input, shape index: {}]   ;;  %s11979_s1 = inlined_call_operand.vmem [shape: f32[1,128], index: 1, kind: input, shape index: {}]   ;;  %s11980_s2 = inlined_call_operand.vmem [shape: f32[1,128], index: 2, kind: input, shape index: {}]   ;;  %s11981_s3 = inlined_call_operand.hbm [shape: bf16[128,384], index: 3, kind: input, shape index: {}]   ;;  %s11982_s4 = inlined_call_operand.hbm [shape: bf16[128,128], index: 4, kind: input, shape index: {}]   ;;  %s11983_s5 = inlined_call_operand.vmem [shape: f32[1,128], index: 5, kind: input, shape index: {}]   ;;  %s11984_s6 = inlined_call_operand.vmem [shape: f32[1,128], index: 6, kind: input, shape index: {}]   ;;  %s11985_s7 = inlined_call_operand.vmem [shape: f32[1,128], index: 7, kind: input, shape index: {}]   ;;  %s11986_s8 = inlined_call_operand.hbm [shape: bf16[128,512], index: 8, kind: input, shape index: {}]   ;;  %s11987_s9 = inlined_call_operand.vmem [shape: f32[1,512], index: 9, kind: input, shape index: {}]   ;;  %s11988_s10 = inlined_call_operand.hbm [shape: bf16[512,128], index: 10, kind: input, shape index: {}]   ;;  %s11989_s11 = inlined_call_operand.vmem [shape: f32[1,128], index: 11, kind: input, shape index: {}]   ;;  %s11990_s12 = inlined_call_operand.hbm [shape: f32[16,16,128], index: 12, kind: output, shape index: {}]  }
   0x1   :  { %12052 = sst [smem:[#allocation68_spill]] %s11981_s3 }
   0x2   :  { %12053 = sst [smem:[#allocation69_spill]] %s11987_s9 }
   0x3   :  { %12054 = sst [smem:[#allocation70_spill]] %s11989_s11 }
   0x4   :  { %12055 = sst [smem:[#allocation71_spill]] %s11990_s12 }
   0x5   :  { %17 = vsyncpa [#allocation3], 0 }
   0x6   :  { %19 = vsyncpa [#allocation3 + $0x1], 0 }
   0x7   :  { %20 = vsyncpa [#allocation6], 0 }
   0x8   :  { %21 = vsyncpa [#allocation9], 0 }
   0x9   :  { %22 = vsyncpa [#allocation4], 0 }
   0xa   :  { %24 = vsyncpa [#allocation4 + $0x1], 0  ;;  %s9517_s21 = smov 0   ;;  %s9519_s22 = smov 0  }
   0xb   :  { %s9521_s23 = smov 0   ;;  %s9523_s24 = smov 0  }
   0xc LB: > { %12056 = sst [smem:[#allocation16_spill]] %s9415_s21  ;;  %s9538_s25 = sadd.s32 4294967295, %s9427_s24   ;;  %s9427_s24 = sphi %s9523_s24, %s12191_s24   ;;  %s9423_s23 = sphi %s9521_s23, %s12190_s23   ;;  %s9419_s22 = sphi %s9519_s22, %s12189_s22   ;;  %s9415_s21 = sphi %s9517_s21, %s12188_s21  }
   0xd   : > { %s7225_s26 = sadd.s32 4294967294, %s9427_s24   ;;  %p50_p0 = scmp.ne.s32.totalorder %s9419_s22, %s9415_s21 }
   0xe   : > { %p11992_p1 = scmp.eq.s32.totalorder %s9538_s25, 0  ;;  %p311_p3 = scmp.eq.s32.totalorder %s7225_s26, 1 }
   0xf   : > { %p7226_p5 = scmp.ge.s32.totalorder %s9427_s24, 1  ;;  %p318_p7 = scmp.lt.s32.totalorder %s9427_s24, 3 }
  0x10   : > { %p9547_p4 = por %p11992_p1, %p50_p0  ;;  %p9552_p6 = por %p311_p3, %p50_p0 }
  0x11   : > { %p9557_p8 = pnand %p7226_p5, %p318_p7  ;;  %s9429_s30 = smov [#allocation5]  }
  0x12   : > { %s12057_s27 = scalar_select %p9547_p4, 1, 0 }
  0x13   : > { %s12058_s28 = scalar_select %p9552_p6, 1, 0 }
  0x14   : > { %s12060_s29 = scalar_select %p9557_p8, 1, 0 }
  0x15   : > { %12059 = sst [smem:[#allocation17_spill]] %s12058_s28  ;;  %s336_s13 = sshll.u32 %s9429_s30, 4  ;;  %s9561_s13 = int_to_ptr.vmem [resolvable:$true] %s336_s13 }
  0x16   : > { %p8191_p9 = pneg %p9557_p8  ;;  %s9430_s15 = smov [#allocation8]  }
  0x17   : > { %s371_s16 = sshll.u32 %s9430_s15, 4  ;;  %s12062_s3 = sld [smem:[#allocation68_spill]]  ;;  %s9572_s16 = int_to_ptr.vmem [resolvable:$true] %s371_s16 }
  0x18   : > { %p9568_p11 = pnand %p8191_p9, %p11992_p1 }
  0x1a   : > { %p9582_p13 = pneg %p9568_p11 }
  0x1d   : > { %s9211_s19 = scalar_lea.hbm %s12062_s3, 3072 }
  0x1e   : > { %p9212_p12 = scmp.ne.s32.totalorder %s12062_s3, %s9211_s19  ;;  %p9218_p5 = scmp.lt.u32.totalorder %s9211_s19, %s12062_s3 }
  0x20   : > { %p9214_p0 = pnand %p9582_p13, %p9212_p12 }
  0x22   : > { %p9215_p3 = pneg %p9214_p0 }
  0x24   : > { %p9220_p7 = pnand %p9218_p5, %p9215_p3 }
  0x26   : > { %9223 = shalt.err (!%p9220_p7)
}
  0x27   : > { %s9224_s17 = scalar_lea.vmem %s9561_s13, 3072  ;;  %p9232_p2 = scmp.lt.s32.totalorder %s9561_s13, %s9561_s13 }
  0x28   : > { %p9225_p9 = scmp.ne.s32.totalorder %s9561_s13, %s9224_s17  ;;  %p9233_p6 = scmp.lt.s32.totalorder %s9224_s17, %s9224_s17 }
  0x2a   : > { %p9227_p10 = pnand %p9225_p9, %p9582_p13  ;;  %p9234_p12 = por %p9233_p6, %p9232_p2 }
  0x2c   : > { %p9228_p1 = pneg %p9227_p10 }
  0x2e   : > { %p9235_p0 = pnand %p9234_p12, %p9228_p1 }
  0x30   : > { %9238 = shalt.err (!%p9235_p0)
}
  0x31   : > { %s9431_s18 = smov 192   ;;  %s9432_s28 = smov 12  }
  0x32   : > { %8194 = dma.hbm_to_vmem [thread:$0]  (!%p9568_p11), %s12062_s3, 3072, %s9561_s13, [#allocation6], %s9431_s18, %s9431_s18, %s9432_s28  }
  0x33   : > { %s9239_s21 = scalar_lea.hbm %s11986_s8, 4096 }
  0x34   : > { %p9240_p2 = scmp.ne.s32.totalorder %s11986_s8, %s9239_s21  ;;  %p9246_p10 = scmp.lt.u32.totalorder %s9239_s21, %s11986_s8 }
  0x36   : > { %p9242_p1 = pnand %p9240_p2, %p9582_p13 }
  0x38   : > { %p9243_p6 = pneg %p9242_p1 }
  0x3a   : > { %p9248_p3 = pnand %p9246_p10, %p9243_p6 }
  0x3c   : > { %9251 = shalt.err (!%p9248_p3)
}
  0x3d   : > { %s9252_s13 = scalar_lea.vmem %s9572_s16, 4096  ;;  %p9260_p12 = scmp.lt.s32.totalorder %s9572_s16, %s9572_s16 }
  0x3e   : > { %p9253_p5 = scmp.ne.s32.totalorder %s9572_s16, %s9252_s13  ;;  %p9261_p0 = scmp.lt.s32.totalorder %s9252_s13, %s9252_s13 }
  0x40   : > { %p9255_p7 = pnand %p9253_p5, %p9582_p13  ;;  %p9262_p2 = por %p9261_p0, %p9260_p12 }
  0x42   : > { %p9256_p9 = pneg %p9255_p7 }
  0x44   : > { %p9263_p1 = pnand %p9262_p2, %p9256_p9 }
  0x46   : > { %9266 = shalt.err (!%p9263_p1)
}
  0x47   : > { %s9433_s11 = smov 256   ;;  %s9434_s9 = smov 16  }
  0x48   : > { %8200 = dma.hbm_to_vmem [thread:$0]  (!%p9568_p11), %s11986_s8, 4096, %s9572_s16, [#allocation9], %s9433_s11, %s9433_s11, %s9434_s9  }
  0x49   : > { %s9435_s18 = smov [#allocation7]   ;;  %s9267_s26 = scalar_lea.hbm %s11982_s4, 1024 }
  0x4a   : > { %s349_s28 = sshll.u32 %s9435_s18, 4  ;;  %p9268_p6 = scmp.ne.s32.totalorder %s11982_s4, %s9267_s26  ;;  %s350_s28 = int_to_ptr.vmem [resolvable:$true] %s349_s28 }
  0x4b   : > { %p9274_p5 = scmp.lt.u32.totalorder %s9267_s26, %s11982_s4 }
  0x4c   : > { %p9270_p10 = pnand %p9268_p6, %p9582_p13 }
  0x4e   : > { %p9271_p3 = pneg %p9270_p10 }
  0x50   : > { %p9276_p7 = pnand %p9274_p5, %p9271_p3 }
  0x52   : > { %9279 = shalt.err (!%p9276_p7)
}
  0x53   : > { %s9280_s16 = scalar_lea.vmem %s350_s28, 1024  ;;  %p9288_p2 = scmp.lt.s32.totalorder %s350_s28, %s350_s28 }
  0x54   : > { %p9281_p9 = scmp.ne.s32.totalorder %s350_s28, %s9280_s16  ;;  %p9289_p1 = scmp.lt.s32.totalorder %s9280_s16, %s9280_s16 }
  0x56   : > { %p9283_p12 = pnand %p9281_p9, %p9582_p13  ;;  %p9290_p4 = por %p9289_p1, %p9288_p2 }
  0x58   : > { %p9284_p0 = pneg %p9283_p12 }
  0x5a   : > { %p9291_p8 = pnand %p9290_p4, %p9284_p0 }
  0x5c   : > { %9294 = shalt.err (!%p9291_p8)
}
  0x5d   : > { %s9436_s11 = smov 64   ;;  %s9437_s9 = smov 4  }
  0x5e   : > { %8197 = dma.hbm_to_vmem [thread:$0]  (!%p9568_p11), %s11982_s4, 1024, %s350_s28, [#allocation6], %s9436_s11, %s9436_s11, %s9437_s9  }
  0x5f   : > { %s9438_s21 = smov [#allocation10]   ;;  %s9295_s26 = scalar_lea.hbm %s11988_s10, 4096 }
  0x60   : > { %s387_s18 = sshll.u32 %s9438_s21, 4  ;;  %p9296_p4 = scmp.ne.s32.totalorder %s11988_s10, %s9295_s26  ;;  %s388_s18 = int_to_ptr.vmem [resolvable:$true] %s387_s18 }
  0x61   : > { %p9302_p10 = scmp.lt.u32.totalorder %s9295_s26, %s11988_s10 }
  0x62   : > { %p9298_p8 = pnand %p9296_p4, %p9582_p13 }
  0x64   : > { %p9299_p6 = pneg %p9298_p8 }
  0x66   : > { %p9304_p3 = pnand %p9302_p10, %p9299_p6 }
  0x68   : > { %9307 = shalt.err (!%p9304_p3)
}
  0x69   : > { %s9308_s28 = scalar_lea.vmem %s388_s18, 4096  ;;  %p9316_p12 = scmp.lt.s32.totalorder %s388_s18, %s388_s18 }
  0x6a   : > { %p9309_p5 = scmp.ne.s32.totalorder %s388_s18, %s9308_s28  ;;  %p9317_p0 = scmp.lt.s32.totalorder %s9308_s28, %s9308_s28 }
  0x6c   : > { %p9311_p7 = pnand %p9309_p5, %p9582_p13  ;;  %p9318_p2 = por %p9317_p0, %p9316_p12 }
  0x6e   : > { %p9312_p9 = pneg %p9311_p7 }
  0x70   : > { %p9319_p1 = pnand %p9318_p2, %p9312_p9 }
  0x72   : > { %9322 = shalt.err (!%p9319_p1)
}
  0x73   : > { %8203 = dma.hbm_to_vmem [thread:$0]  (!%p9568_p11), %s11988_s10, 4096, %s388_s18, [#allocation9], %s9436_s11, %s9436_s11, %s9437_s9  }
  0x74   : > { %s9663_s30 = sadd.s32 1, %s9427_s24   ;;  %s37_s21 = sadd.s32 1, %s9423_s23 }
  0x75   : > { %s34_s14 = ssub.s32 %s9427_s24, %s9663_s30  ;;  %p44_p13 = scmp.ne.s32.totalorder %s9423_s23, %s9419_s22 }
  0x76   : > { %p35_p4 = scmp.eq.s32.totalorder %s34_s14, 0  ;;  %p45_p8 = scmp.eq.s32.totalorder %s9427_s24, 0 }
  0x77   : > { %p12064_p6 = scmp.eq.s32.totalorder %s9538_s25, 1  ;;  %p8216_p3 = scmp.lt.s32.totalorder %s9427_s24, 2 }
  0x78   : > { %s9679_s20 = scalar_select %p35_p4, %s9423_s23, %s37_s21  }
  0x79   : > { %p9673_p10 = por %p12064_p6, %p44_p13  ;;  %p46_p5 = por %p45_p8, %p44_p13 }
  0x7a   : > { %s404_s26 = sand.u32 1, %s9423_s23   ;;  %s7416_s11 = sshll.u32 %s9427_s24, 11 }
  0x7b   : > { %s7232_s15 = sshll.u32 %s404_s26, 7  ;;  %s9686_s17 = scalar_lea.hbm %s11978_s0, %s7416_s11 }
  0x7c   : > { %s408_s13 = scalar_lea.vmem [#allocation2], %s7232_s15  ;;  %p9690_p11 = pnand %p8216_p3, %p46_p5 }
  0x7d   : > { %s416_s16 = sshll.u32 %s408_s13, 4  ;;  %s9694_s3 = scalar_lea.sflag [#allocation3], %s404_s26  ;;  %s9688_s16 = int_to_ptr.vmem [resolvable:$true] %s416_s16 }
  0x7e   : > { %s9323_s12 = scalar_lea.hbm %s9686_s17, 2048  ;;  %p9325_p9 = pneg %p9690_p11 }
  0x7f   : > { %p9324_p7 = scmp.ne.s32.totalorder %s9686_s17, %s9323_s12  ;;  %s9328_s15 = scalar_lea.hbm %s11978_s0, 4096 }
  0x80   : > { %p9329_p2 = scmp.lt.u32.totalorder %s9686_s17, %s11978_s0  ;;  %p9330_p1 = scmp.lt.u32.totalorder %s9328_s15, %s9323_s12 }
  0x81   : > { %p9326_p12 = pnand %p9325_p9, %p9324_p7  ;;  %p9332_p4 = scmp.lt.u32.totalorder %s9323_s12, %s9686_s17 }
  0x82   : > { %p9331_p13 = por %p9330_p1, %p9329_p2 }
  0x83   : > { %p9327_p0 = pneg %p9326_p12 }
  0x84   : > { %p9333_p8 = por %p9332_p4, %p9331_p13 }
  0x86   : > { %p9334_p6 = pnand %p9333_p8, %p9327_p0 }
  0x88   : > { %9337 = shalt.err (!%p9334_p6)
}
  0x89   : > { %s9338_s26 = scalar_lea.vmem %s9688_s16, 2048  ;;  %s9439_s18 = smov [#allocation2]  }
  0x8a   : > { %p9339_p3 = scmp.ne.s32.totalorder %s9688_s16, %s9338_s26  ;;  %s9343_s13 = sshll.u32 %s9439_s18, 4  ;;  %s9344_s13 = int_to_ptr.vmem [resolvable:$false] %s9343_s13 }
  0x8b   : > { %s9345_s21 = scalar_lea.vmem %s9344_s13, 4096  ;;  %p9346_p12 = scmp.lt.s32.totalorder %s9688_s16, %s9344_s13 }
  0x8c   : > { %p9341_p5 = pnand %p9339_p3, %p9325_p9  ;;  %p9347_p2 = scmp.lt.s32.totalorder %s9345_s21, %s9338_s26 }
  0x8e   : > { %p9342_p7 = pneg %p9341_p5  ;;  %p9348_p1 = por %p9347_p2, %p9346_p12 }
  0x90   : > { %p9349_p13 = pnand %p9348_p1, %p9342_p7 }
  0x92   : > { %9352 = shalt.err (!%p9349_p13)
}
  0x93   : > { %s9440_s12 = smov 128   ;;  %s9441_s14 = smov 8  }
  0x94   : > { %8207 = dma.hbm_to_vmem [thread:$0]  (!%p9690_p11), %s9686_s17, 2048, %s9688_s16, %s9694_s3, %s9440_s12, %s9440_s12, %s9441_s14  }
  0x95   : > { %p12067_p9 = scmp.ne.s32.totalorder %s12060_s29, 0 }
  0x97   : > { %428 = sbr.rel (%p12067_p9) target bundleno = 2625 (0xa41), region = 68 }
  0x9e   : > { %s9725_s15 = sand.u32 1, %s9419_s22   ;;  %p12068_p0 = scmp.ne.s32.totalorder %s12057_s27, 0 }
  0x9f   : > { %s7237_s11 = sshll.u32 %s9725_s15, 7  ;;  %s431_s9 = scalar_lea.sflag [#allocation3], %s9725_s15 }
  0xa0   : > { %s9731_s26 = scalar_lea.vmem [#allocation2], %s7237_s11 }
  0xa1   : > { %9398 = dma.done.wait (%p12068_p0), %s431_s9, 2048  }
  0xa2   : > { %9400 = vsyncadd (%p12068_p0), %s431_s9, 4294965248  ;;  %p12069_p11 = scmp.eq.s32.totalorder %s9538_s25, 0 }
  0xa4   : > { %9402 = dma.done.wait (%p12069_p11), [#allocation6], 4096   ;;  %p12070_p4 = pmov %p12069_p11 }
  0xa6   : > { %9404 = vsyncadd (%p12070_p4), [#allocation6], 4294963200  ;;  %p12071_p8 = pmov %p12070_p4 }
  0xa7   : > { %p12072_p6 = pmov %p12070_p4 }
  0xa8   : > { %9406 = dma.done.wait (%p12071_p8), [#allocation9], 8192  }
  0xa9   : > { %9408 = vsyncadd (%p12072_p6), [#allocation9], 4294959104  ;;  %v9746_v0 = vld [vmem:[%s9731_s26] sm:$0xff]  ;;  %v9749_v1 = vld [vmem:[%s9731_s26 + $0x8] sm:$0xff]  ;;  %v11997_v49 = vmov 0   ;;  %vm9444_vm0 = vmmov 0  }
  0xaa   : > { %512 = vadd.xlane.f32.xlu0 %v9746_v0  ;;  %v561_v2 = vmul.f32 %v9746_v0, %v9746_v0  ;;  %v562_v3 = vmul.f32 %v9749_v1, %v9749_v1  ;;  %v9758_v4 = vld [vmem:[%s9731_s26 + $0x10] sm:$0xff]  ;;  %v9761_v5 = vld [vmem:[%s9731_s26 + $0x18] sm:$0xff]  ;;  %v9770_v9 = vld [vmem:[%s9731_s26 + $0x20] sm:$0xff]  ;;  %965 = vmatprep.mubr.bf16.mxu0 %v11997_v49  ;;  %vm1728_vm1 = vcmask 261120   ;;  %s9445_s28 = smov 96   ;;  %s9446_s3 = smov 64  }
  0xab   : > { %v8755_v6 = vld [vmem:[#allocation5 + $0x4] ss:$12 sps:$4 sm:$0xff]   ;;  %v563_v7 = vmul.f32 %v9758_v4, %v9758_v4  ;;  %v564_v8 = vmul.f32 %v9761_v5, %v9761_v5  ;;  %v8757_v10 = vld [vmem:[#allocation5] ss:$12 sps:$4 sm:$0xff]   ;;  %v8758_v12 = vld [vmem:[#allocation5 + $0x1c] ss:$12 sps:$4 sm:$0xff]   ;;  %v565_v13 = vmul.f32 %v9770_v9, %v9770_v9 }
  0xac   : > { %577 = vadd.xlane.f32.xlu1 %v561_v2  ;;  %933 = vmatprep.subr.bf16.mxu0 %v8755_v6  ;;  %v9773_v11 = vld [vmem:[%s9731_s26 + $0x28] sm:$0xff]  ;;  %v8760_v14 = vld [vmem:[#allocation5 + $0x18] ss:$12 sps:$4 sm:$0xff]   ;;  %v9782_v16 = vld [vmem:[%s9731_s26 + $0x30] sm:$0xff]  ;;  %s9447_s18 = smov 32   ;;  %vm3233_vm4 = vcmask 130048  }
  0xad   : > { %934 = vmatpush1.bf16.msra.mxu0 %v8757_v10  ;;  %v566_v15 = vmul.f32 %v9773_v11, %v9773_v11  ;;  %v8761_v17 = vld [vmem:[#allocation5 + $0x34] ss:$12 sps:$4 sm:$0xff]   ;;  %v8764_v19 = vld [vmem:[#allocation5 + $0x30] ss:$12 sps:$4 sm:$0xff]   ;;  %v8765_v21 = vld [vmem:[#allocation5 + $0x4c] ss:$12 sps:$4 sm:$0xff]   ;;  %v567_v23 = vmul.f32 %v9782_v16, %v9782_v16 }
  0xae   : > { %514 = vadd.xlane.f32.xlu0 %v9749_v1  ;;  %935 = vmatprep.subr.bf16.mxu0 %v8758_v12  ;;  %v8763_v18 = vld [vmem:[#allocation5 + $0x8] ss:$12 sps:$4 sm:$0xff]   ;;  %v9785_v20 = vld [vmem:[%s9731_s26 + $0x38] sm:$0xff]  ;;  %v8767_v22 = vld [vmem:[#allocation5 + $0x20] ss:$12 sps:$4 sm:$0xff]   ;;  %vm5586_vm5 = vcmask 523264  }
  0xaf   : > { %7707 = vmatprep.subr.bf16.mxu1 %v8763_v18  ;;  %v8768_v24 = vld [vmem:[#allocation5 + $0x48] ss:$12 sps:$4 sm:$0xff]   ;;  %v568_v25 = vmul.f32 %v9785_v20, %v9785_v20  ;;  %v9794_v26 = vld [vmem:[%s9731_s26 + $0x40] sm:$0xff]  ;;  %v8775_v33 = vld [vmem:[#allocation5 + $0x50] ss:$12 sps:$4 sm:$0xff]   ;;  %vm5603_vm6 = vcmask 785408  }
  0xb0   : > { %579 = vadd.xlane.f32.xlu1 %v562_v3  ;;  %7708 = vmatpush3.bf16.msra.mxu1 %v8763_v18  ;;  %v8769_v27 = vld [vmem:[#allocation5 + $0x64] ss:$12 sps:$4 sm:$0xff]   ;;  %v8772_v29 = vld [vmem:[#allocation5 + $0x60] ss:$12 sps:$4 sm:$0xff]   ;;  %v569_v31 = vmul.f32 %v9794_v26, %v9794_v26  ;;  %v8773_v32 = vld [vmem:[#allocation5 + $0x7c] ss:$12 sps:$4 sm:$0xff]  }
  0xb1   : > { %936 = vmatpush1.bf16.msra.mxu0 %v8760_v14  ;;  %7709 = vmatprep.subr.bf16.mxu1 %v8767_v22  ;;  %v8771_v28 = vld [vmem:[#allocation5 + $0x38] ss:$12 sps:$4 sm:$0xff]   ;;  %v9797_v30 = vld [vmem:[%s9731_s26 + $0x48] sm:$0xff]  ;;  %v9806_v36 = vld [vmem:[%s9731_s26 + $0x50] sm:$0xff]  ;;  %s12181_s17 = sld [smem:[#allocation69_spill]]  ;;  %s12183_s14 = sld [smem:[#allocation71_spill]] }
  0xb2   : > { %516 = vadd.xlane.f32.xlu0 %v9758_v4  ;;  %937 = vmatprep.subr.bf16.mxu0 %v8761_v17  ;;  %v8776_v34 = vld [vmem:[#allocation5 + $0x78] ss:$12 sps:$4 sm:$0xff]   ;;  %v570_v35 = vmul.f32 %v9797_v30, %v9797_v30  ;;  %v8777_v37 = vld [vmem:[#allocation5 + $0x94] ss:$12 sps:$4 sm:$0xff]   ;;  %v8780_v40 = vld [vmem:[#allocation5 + $0x90] ss:$12 sps:$4 sm:$0xff]   ;;  %v571_v41 = vmul.f32 %v9806_v36, %v9806_v36 }
  0xb3   : > { %v8779_v38 = vld [vmem:[#allocation5 + $0x68] ss:$12 sps:$4 sm:$0xff]   ;;  %v9809_v39 = vld [vmem:[%s9731_s26 + $0x58] sm:$0xff]  ;;  %v8783_v43 = vld [vmem:[#allocation5 + $0x80] ss:$12 sps:$4 sm:$0xff]   ;;  %s9449_s27 = smov [#allocation11]  }
  0xb4   : > { %518 = vadd.xlane.f32.xlu1 %v9761_v5  ;;  %7710 = vmatpush3.bf16.msra.mxu1 %v8767_v22  ;;  %v8781_v42 = vld [vmem:[#allocation5 + $0xac] ss:$12 sps:$4 sm:$0xff]   ;;  %v8784_v44 = vld [vmem:[#allocation5 + $0xa8] ss:$12 sps:$4 sm:$0xff]   ;;  %v572_v45 = vmul.f32 %v9809_v39, %v9809_v39  ;;  %v9818_v46 = vld [vmem:[%s9731_s26 + $0x60] sm:$0xff]  ;;  %s9357_s29 = sshll.u32 %s9449_s27, 4  ;;  %s9358_s29 = int_to_ptr.vmem [resolvable:$false] %s9357_s29 }
  0xb5   : > { %938 = vmatpush1.bf16.msra.mxu0 %v8764_v19  ;;  %7711 = vmatprep.subr.bf16.mxu1 %v8771_v28  ;;  %v8785_v47 = vld [vmem:[#allocation5 + $0x98] ss:$12 sps:$4 sm:$0xff]   ;;  %v9821_v48 = vld [vmem:[%s9731_s26 + $0x68] sm:$0xff]  ;;  %v573_v50 = vmul.f32 %v9818_v46, %v9818_v46  ;;  %v8786_v51 = vld [vmem:[#allocation5 + $0xb0] ss:$12 sps:$4 sm:$0xff]  }
  0xb6   : > { %581 = vadd.xlane.f32.xlu0 %v563_v7  ;;  %939 = vmatprep.subr.bf16.mxu0 %v8765_v21  ;;  %v574_v52 = vmul.f32 %v9821_v48, %v9821_v48  ;;  %v9831_v53 = vld [vmem:[%s9731_s26 + $0x70] sm:$0xff]  ;;  %v9834_v54 = vld [vmem:[%s9731_s26 + $0x78] sm:$0xff] }
  0xb7   : > { %v575_v55 = vmul.f32 %v9831_v53, %v9831_v53  ;;  %v576_v56 = vmul.f32 %v9834_v54, %v9834_v54 }
  0xb8   : > { %583 = vadd.xlane.f32.xlu1 %v564_v8  ;;  %7712 = vmatpush3.bf16.msra.mxu1 %v8771_v28 }
  0xb9   : > { %940 = vmatpush1.bf16.msra.mxu0 %v8768_v24  ;;  %7713 = vmatprep.subr.bf16.mxu1 %v8775_v33 }
  0xba   : > { %520 = vadd.xlane.f32.xlu0 %v9770_v9  ;;  %941 = vmatprep.subr.bf16.mxu0 %v8769_v27 }
  0xbc   : > { %522 = vadd.xlane.f32.xlu1 %v9773_v11  ;;  %7714 = vmatpush3.bf16.msra.mxu1 %v8775_v33 }
  0xbd   : > { %942 = vmatpush1.bf16.msra.mxu0 %v8772_v29  ;;  %7715 = vmatprep.subr.bf16.mxu1 %v8779_v38 }
  0xbe   : > { %585 = vadd.xlane.f32.xlu0 %v565_v13  ;;  %943 = vmatprep.subr.bf16.mxu0 %v8773_v32 }
  0xc0   : > { %587 = vadd.xlane.f32.xlu1 %v566_v15  ;;  %7716 = vmatpush3.bf16.msra.mxu1 %v8779_v38 }
  0xc1   : > { %944 = vmatpush1.bf16.msra.mxu0 %v8776_v34  ;;  %7717 = vmatprep.subr.bf16.mxu1 %v8783_v43 }
  0xc2   : > { %524 = vadd.xlane.f32.xlu0 %v9782_v16  ;;  %945 = vmatprep.subr.bf16.mxu0 %v8777_v37 }
  0xc4   : > { %526 = vadd.xlane.f32.xlu1 %v9785_v20  ;;  %7718 = vmatpush3.bf16.msra.mxu1 %v8783_v43  ;;  %v9852_v43 = vld [vmem:[%s11979_s1] ss:$0 sm:$0xff] }
  0xc5   : > { %946 = vmatpush1.bf16.msra.mxu0 %v8780_v40  ;;  %7719 = vmatprep.subr.bf16.mxu1 %v8785_v47 }
  0xc6   : > { %589 = vadd.xlane.f32.xlu0 %v567_v23  ;;  %947 = vmatprep.subr.bf16.mxu0 %v8781_v42 }
  0xc8   : > { %591 = vadd.xlane.f32.xlu1 %v568_v25  ;;  %7720 = vmatpush3.bf16.msra.mxu1 %v8785_v47 }
  0xc9   : > { %948 = vmatpush1.bf16.msra.mxu0 %v8784_v44  ;;  %7721 = vmatprep.subr.bf16.mxu1 %v8786_v51 }
  0xca   : > { %528 = vadd.xlane.f32.xlu0 %v9794_v26 }
  0xcc   : > { %530 = vadd.xlane.f32.xlu1 %v9797_v30  ;;  %7722 = vmatpush3.bf16.msra.mxu1 %v8786_v51 }
  0xce   : > { %593 = vadd.xlane.f32.xlu0 %v569_v31 }
  0xd0   : > { %595 = vadd.xlane.f32.xlu1 %v570_v35 }
  0xd2   : > { %532 = vadd.xlane.f32.xlu0 %v9806_v36 }
  0xd4   : > { %534 = vadd.xlane.f32.xlu1 %v9809_v39 }
  0xd6   : > { %597 = vadd.xlane.f32.xlu0 %v571_v41 }
  0xd8   : > { %599 = vadd.xlane.f32.xlu1 %v572_v45 }
  0xda   : > { %536 = vadd.xlane.f32.xlu0 %v9818_v46 }
  0xdc   : > { %538 = vadd.xlane.f32.xlu1 %v9821_v48 }
  0xde   : > { %601 = vadd.xlane.f32.xlu0 %v573_v50 }
  0xe0   : > { %603 = vadd.xlane.f32.xlu1 %v574_v52 }
  0xe2   : > { %540 = vadd.xlane.f32.xlu0 %v9831_v53 }
  0xe4   : > { %542 = vadd.xlane.f32.xlu1 %v9834_v54 }
  0xe6   : > { %605 = vadd.xlane.f32.xlu0 %v575_v55 }
  0xe8   : > { %607 = vadd.xlane.f32.xlu1 %v576_v56 }
 0x137   : > { %v513_v57 = vpop.xlane.xlu0 %512 }
 0x138   : > { %v545_v58 = vmul.f32 0.0078125, %v513_v57 }
 0x139   : > { %v578_v59 = vpop.xlane.xlu1 %577 }
 0x13a   : > { %v625_v60 = vmul.f32 %v545_v58, %v545_v58  ;;  %v609_v61 = vmul.f32 0.0078125, %v578_v59  ;;  %v657_v32 = vsub.f32 %v9746_v0, %v545_v58 }
 0x13b   : > { %v515_v62 = vpop.xlane.xlu0 %514 }
 0x13c   : > { %v641_v63 = vsub.f32 %v609_v61, %v625_v60  ;;  %v546_v2 = vmul.f32 0.0078125, %v515_v62  ;;  %v9863_v60 = vld [vmem:[%s11980_s2] ss:$0 sm:$0xff] }
 0x13d   : > { %v580_v3 = vpop.xlane.xlu1 %579 }
 0x13e   : > { %v673_v6 = vadd.f32 1e-05, %v641_v63  ;;  %v626_v7 = vmul.f32 %v546_v2, %v546_v2  ;;  %v610_v8 = vmul.f32 0.0078125, %v580_v3  ;;  %v658_v0 = vsub.f32 %v9749_v1, %v546_v2 }
 0x13f   : > { %v517_v10 = vpop.xlane.xlu0 %516 }
 0x140   : > { %8875 = vrsqrt.f32 %v673_v6  ;;  %v642_v12 = vsub.f32 %v610_v8, %v626_v7  ;;  %v547_v13 = vmul.f32 0.0078125, %v517_v10 }
 0x141   : > { %v519_v14 = vpop.xlane.xlu1 %518 }
 0x142   : > { %v674_v15 = vadd.f32 1e-05, %v642_v12  ;;  %v627_v17 = vmul.f32 %v547_v13, %v547_v13  ;;  %v548_v18 = vmul.f32 0.0078125, %v519_v14  ;;  %v659_v2 = vsub.f32 %v9758_v4, %v547_v13 }
 0x143   : > { %v582_v19 = vpop.xlane.xlu0 %581 }
 0x144   : > { %8877 = vrsqrt.f32 %v674_v15  ;;  %v611_v21 = vmul.f32 0.0078125, %v582_v19  ;;  %v628_v23 = vmul.f32 %v548_v18, %v548_v18  ;;  %v660_v14 = vsub.f32 %v9761_v5, %v548_v18 }
 0x145   : > { %v584_v22 = vpop.xlane.xlu1 %583 }
 0x146   : > { %v643_v24 = vsub.f32 %v611_v21, %v627_v17  ;;  %v612_v25 = vmul.f32 0.0078125, %v584_v22 }
 0x147   : > { %v521_v27 = vpop.xlane.xlu0 %520 }
 0x148   : > { %v675_v28 = vadd.f32 1e-05, %v643_v24  ;;  %v644_v29 = vsub.f32 %v612_v25, %v628_v23  ;;  %v9842_v31 = vmul.f32 0.0078125, %v521_v27 }
 0x149   : > { %v523_v33 = vpop.xlane.xlu1 %522 }
 0x14a   : > { %v8876_v34 = vpop.eup %8875  ;;  %8879 = vrsqrt.f32 %v675_v28  ;;  %v676_v35 = vadd.f32 1e-05, %v644_v29  ;;  %v629_v37 = vmul.f32 %v9842_v31, %v9842_v31  ;;  %v9847_v38 = vmul.f32 0.0078125, %v523_v33 }
 0x14b   : > { %v586_v40 = vpop.xlane.xlu0 %585  ;;  %v705_v41 = vmul.f32 %v8876_v34, %v657_v32  ;;  %v661_v34 = vsub.f32 %v9770_v9, %v9842_v31 }
 0x14c   : > { %8881 = vrsqrt.f32 %v676_v35  ;;  %v613_v42 = vmul.f32 0.0078125, %v586_v40  ;;  %v630_v47 = vmul.f32 %v9847_v38, %v9847_v38 }
 0x14d   : > { %v588_v44 = vpop.xlane.xlu1 %587  ;;  %v727_v56 = vmul.f32 %v9852_v43, %v705_v41 }
 0x14e   : > { %v8878_v45 = vpop.eup %8877  ;;  %v645_v50 = vsub.f32 %v613_v42, %v629_v37  ;;  %v614_v51 = vmul.f32 0.0078125, %v588_v44  ;;  %v662_v44 = vsub.f32 %v9773_v11, %v9847_v38 }
 0x14f   : > { %v525_v52 = vpop.xlane.xlu0 %524  ;;  %v706_v55 = vmul.f32 %v8878_v45, %v658_v0  ;;  %v749_v7 = vadd.f32 %v9863_v60, %v727_v56 }
 0x150   : > { %v677_v57 = vadd.f32 1e-05, %v645_v50  ;;  %v646_v58 = vsub.f32 %v614_v51, %v630_v47  ;;  %v9858_v59 = vmul.f32 0.0078125, %v525_v52 }
 0x151   : > { %v527_v1 = vpop.xlane.xlu1 %526  ;;  %v728_v61 = vmul.f32 %v9852_v43, %v706_v55 }
 0x152   : > { %8883 = vrsqrt.f32 %v677_v57  ;;  %v678_v62 = vadd.f32 1e-05, %v646_v58  ;;  %v631_v63 = vmul.f32 %v9858_v59, %v9858_v59  ;;  %v9869_v3 = vmul.f32 0.0078125, %v527_v1 }
 0x153   : > { %v590_v6 = vpop.xlane.xlu0 %589  ;;  %v750_v8 = vadd.f32 %v9863_v60, %v728_v61 }
 0x154   : > { %v8880_v10 = vpop.eup %8879  ;;  %8885 = vrsqrt.f32 %v678_v62  ;;  %v615_v12 = vmul.f32 0.0078125, %v590_v6  ;;  %v632_v22 = vmul.f32 %v9869_v3, %v9869_v3 }
 0x155   : > { %v592_v15 = vpop.xlane.xlu1 %591  ;;  %v765_v17 = vpack.c.bf16 %v750_v8, %v749_v7  ;;  %v707_v19 = vmul.f32 %v8880_v10, %v659_v2  ;;  %v663_v2 = vsub.f32 %v9782_v16, %v9858_v59 }
 0x156   : > { %v8882_v21 = vpop.eup %8881  ;;  %v647_v4 = vsub.f32 %v615_v12, %v631_v63  ;;  %v616_v13 = vmul.f32 0.0078125, %v592_v15  ;;  %v664_v15 = vsub.f32 %v9785_v20, %v9869_v3 }
 0x157   : > { %v529_v23 = vpop.xlane.xlu0 %528  ;;  %966 = vmatmul.mubr.bf16.vlgmr.msra.gmra.mrb[0].mxu0 %v765_v17  ;;  %7723 = vmatprep.mubr.bf16.mxu1 %v765_v17  ;;  %v708_v24 = vmul.f32 %v8882_v21, %v660_v14  ;;  %v729_v25 = vmul.f32 %v9852_v43, %v707_v19 }
 0x158   : > { %v679_v27 = vadd.f32 1e-05, %v647_v4  ;;  %v648_v28 = vsub.f32 %v616_v13, %v632_v22  ;;  %v9877_v29 = vmul.f32 0.0078125, %v529_v23  ;;  %975 = vmatprep.mubr.bf16.mxu0 %v11997_v49 }
 0x159   : > { %v531_v5 = vpop.xlane.xlu1 %530  ;;  %v730_v18 = vmul.f32 %v9852_v43, %v708_v24  ;;  %v751_v40 = vadd.f32 %v9863_v60, %v729_v25 }
 0x15a   : > { %8887 = vrsqrt.f32 %v679_v27  ;;  %v680_v32 = vadd.f32 1e-05, %v648_v28  ;;  %v633_v33 = vmul.f32 %v9877_v29, %v9877_v29  ;;  %v9885_v35 = vmul.f32 0.0078125, %v531_v5 }
 0x15b   : > { %v594_v37 = vpop.xlane.xlu0 %593  ;;  %v752_v41 = vadd.f32 %v9863_v60, %v730_v18 }
 0x15c   : > { %v8884_v42 = vpop.eup %8883  ;;  %8889 = vrsqrt.f32 %v680_v32  ;;  %v617_v0 = vmul.f32 0.0078125, %v594_v37  ;;  %v634_v9 = vmul.f32 %v9885_v35, %v9885_v35  ;;  %v665_v32 = vsub.f32 %v9794_v26, %v9877_v29 }
 0x15d   : > { %v596_v45 = vpop.xlane.xlu1 %595  ;;  %v766_v47 = vpack.c.bf16 %v752_v41, %v751_v40  ;;  %v709_v50 = vmul.f32 %v8884_v42, %v661_v34 }
 0x15e   : > { %v8886_v51 = vpop.eup %8885  ;;  %v649_v31 = vsub.f32 %v617_v0, %v633_v33  ;;  %v618_v52 = vmul.f32 0.0078125, %v596_v45  ;;  %v666_v0 = vsub.f32 %v9797_v30, %v9885_v35 }
 0x15f   : > { %976 = vmatmul.mubr.bf16.gmra.mrb[4].mxu0 %v766_v47  ;;  %7724 = vmatmul.mubr.bf16.vlgmr.msra.gmra.mrb[0].mxu1 %v766_v47  ;;  %v533_v55 = vpop.xlane.xlu0 %532  ;;  %v710_v56 = vmul.f32 %v8886_v51, %v662_v44  ;;  %v731_v57 = vmul.f32 %v9852_v43, %v709_v50 }
 0x160   : > { %v681_v58 = vadd.f32 1e-05, %v649_v31  ;;  %v650_v1 = vsub.f32 %v618_v52, %v634_v9  ;;  %v9894_v61 = vmul.f32 0.0078125, %v533_v55  ;;  %985 = vmatprep.mubr.bf16.mxu0 %v11997_v49 }
 0x161   : > { %v535_v11 = vpop.xlane.xlu1 %534  ;;  %v732_v38 = vmul.f32 %v9852_v43, %v710_v56  ;;  %v753_v8 = vadd.f32 %v9863_v60, %v731_v57 }
 0x162   : > { %8891 = vrsqrt.f32 %v681_v58  ;;  %v682_v62 = vadd.f32 1e-05, %v650_v1  ;;  %v635_v63 = vmul.f32 %v9894_v61, %v9894_v61  ;;  %v9902_v6 = vmul.f32 0.0078125, %v535_v11 }
 0x163   : > { %v598_v7 = vpop.xlane.xlu0 %597  ;;  %v754_v10 = vadd.f32 %v9863_v60, %v732_v38  ;;  %v667_v11 = vsub.f32 %v9806_v36, %v9894_v61 }
 0x164   : > { %v8888_v12 = vpop.eup %8887  ;;  %8893 = vrsqrt.f32 %v682_v62  ;;  %v619_v14 = vmul.f32 0.0078125, %v598_v7  ;;  %v636_v16 = vmul.f32 %v9902_v6, %v9902_v6 }
 0x165   : > { %v600_v17 = vpop.xlane.xlu1 %599  ;;  %v767_v19 = vpack.c.bf16 %v754_v10, %v753_v8  ;;  %v711_v21 = vmul.f32 %v8888_v12, %v663_v2  ;;  %v668_v10 = vsub.f32 %v9809_v39, %v9902_v6 }
 0x166   : > { %v8890_v22 = vpop.eup %8889  ;;  %v651_v59 = vsub.f32 %v619_v14, %v635_v63  ;;  %v620_v4 = vmul.f32 0.0078125, %v600_v17 }
 0x167   : > { %986 = vmatmul.mubr.bf16.gmra.mrb[8].mxu0 %v767_v19  ;;  %7727 = vmatprep.mubr.bf16.mxu1 %v767_v19  ;;  %v537_v13 = vpop.xlane.xlu0 %536  ;;  %v712_v23 = vmul.f32 %v8890_v22, %v664_v15  ;;  %v733_v24 = vmul.f32 %v9852_v43, %v711_v21 }
 0x168   : > { %v683_v25 = vadd.f32 1e-05, %v651_v59  ;;  %v652_v27 = vsub.f32 %v620_v4, %v636_v16  ;;  %v9911_v28 = vmul.f32 0.0078125, %v537_v13  ;;  %995 = vmatprep.mubr.bf16.mxu0 %v11997_v49 }
 0x169   : > { %v539_v20 = vpop.xlane.xlu1 %538  ;;  %v734_v3 = vmul.f32 %v9852_v43, %v712_v23  ;;  %v755_v37 = vadd.f32 %v9863_v60, %v733_v24 }
 0x16a   : > { %8895 = vrsqrt.f32 %v683_v25  ;;  %v684_v5 = vadd.f32 1e-05, %v652_v27  ;;  %v637_v18 = vmul.f32 %v9911_v28, %v9911_v28  ;;  %v9919_v33 = vmul.f32 0.0078125, %v539_v20 }
 0x16b   : > { %v602_v34 = vpop.xlane.xlu0 %601  ;;  %v756_v40 = vadd.f32 %v9863_v60, %v734_v3  ;;  %v669_v6 = vsub.f32 %v9818_v46, %v9911_v28 }
 0x16c   : > { %v8892_v41 = vpop.eup %8891  ;;  %8897 = vrsqrt.f32 %v684_v5  ;;  %v621_v42 = vmul.f32 0.0078125, %v602_v34  ;;  %v638_v26 = vmul.f32 %v9919_v33, %v9919_v33  ;;  %v670_v25 = vsub.f32 %v9821_v48, %v9919_v33 }
 0x16d   : > { %v604_v44 = vpop.xlane.xlu1 %603  ;;  %v768_v45 = vpack.c.bf16 %v756_v40, %v755_v37  ;;  %v713_v47 = vmul.f32 %v8892_v41, %v665_v32 }
 0x16e   : > { %v8894_v50 = vpop.eup %8893  ;;  %v653_v29 = vsub.f32 %v621_v42, %v637_v18  ;;  %v622_v51 = vmul.f32 0.0078125, %v604_v44 }
 0x16f   : > { %996 = vmatmul.mubr.bf16.gmra.mrb[12].mxu0 %v768_v45  ;;  %7728 = vmatmul.mubr.bf16.gmra.mrb[4].mxu1 %v768_v45  ;;  %v541_v9 = vpop.xlane.xlu0 %540  ;;  %v714_v31 = vmul.f32 %v8894_v50, %v666_v0  ;;  %v735_v52 = vmul.f32 %v9852_v43, %v713_v47 }
 0x170   : > { %v685_v55 = vadd.f32 1e-05, %v653_v29  ;;  %v654_v56 = vsub.f32 %v622_v51, %v638_v26  ;;  %v559_v57 = vmul.f32 0.0078125, %v541_v9  ;;  %1005 = vmatprep.mubr.bf16.mxu0 %v11997_v49 }
 0x171   : > { %v543_v30 = vpop.xlane.xlu1 %542  ;;  %v736_v35 = vmul.f32 %v9852_v43, %v714_v31  ;;  %v757_v63 = vadd.f32 %v9863_v60, %v735_v52 }
 0x172   : > { %8899 = vrsqrt.f32 %v685_v55  ;;  %v686_v58 = vadd.f32 1e-05, %v654_v56  ;;  %v639_v1 = vmul.f32 %v559_v57, %v559_v57  ;;  %v560_v38 = vmul.f32 0.0078125, %v543_v30 }
 0x173   : > { %v606_v62 = vpop.xlane.xlu0 %605  ;;  %v758_v2 = vadd.f32 %v9863_v60, %v736_v35  ;;  %v671_v28 = vsub.f32 %v9831_v53, %v559_v57 }
 0x174   : > { %v8896_v7 = vpop.eup %8895  ;;  %8901 = vrsqrt.f32 %v686_v58  ;;  %v623_v8 = vmul.f32 0.0078125, %v606_v62  ;;  %v640_v19 = vmul.f32 %v560_v38, %v560_v38  ;;  %v672_v48 = vsub.f32 %v9834_v54, %v560_v38 }
 0x175   : > { %v608_v12 = vpop.xlane.xlu1 %607  ;;  %v769_v14 = vpack.c.bf16 %v758_v2, %v757_v63  ;;  %v715_v15 = vmul.f32 %v8896_v7, %v667_v11  ;;  %v11999_v54 = vmov 0.0  }
 0x176   : > { %v8898_v17 = vpop.eup %8897  ;;  %v655_v21 = vsub.f32 %v623_v8, %v639_v1  ;;  %v624_v22 = vmul.f32 0.0078125, %v608_v12  ;;  %7739 = vmatprep.subr.bf16.mxu1 %v11999_v54  ;;  %7763 = vmatprep.subr.bf16.mxu0 %v11999_v54 }
 0x177   : > { %1006 = vmatmul.mubr.bf16.gmra.mrb[16].mxu0 %v769_v14  ;;  %7731 = vmatprep.mubr.bf16.mxu1 %v769_v14  ;;  %v716_v36 = vmul.f32 %v8898_v17, %v668_v10  ;;  %v737_v61 = vmul.f32 %v9852_v43, %v715_v15 }
 0x178   : > { %v687_v16 = vadd.f32 1e-05, %v655_v21  ;;  %v656_v59 = vsub.f32 %v624_v22, %v640_v19  ;;  %1015 = vmatprep.mubr.bf16.mxu0 %v11997_v49 }
 0x179   : > { %v738_v4 = vmul.f32 %v9852_v43, %v716_v36  ;;  %v759_v13 = vadd.f32 %v9863_v60, %v737_v61 }
 0x17a   : > { %8903 = vrsqrt.f32 %v687_v16  ;;  %v688_v39 = vadd.f32 1e-05, %v656_v59 }
 0x17b   : > { %v760_v23 = vadd.f32 %v9863_v60, %v738_v4 }
 0x17c   : > { %v8900_v24 = vpop.eup %8899  ;;  %8905 = vrsqrt.f32 %v688_v39 }
 0x17d   : > { %v770_v27 = vpack.c.bf16 %v760_v23, %v759_v13  ;;  %v717_v20 = vmul.f32 %v8900_v24, %v669_v6 }
 0x17e   : > { %v8902_v3 = vpop.eup %8901 }
 0x17f   : > { %1016 = vmatmul.mubr.bf16.gmra.mrb[20].mxu0 %v770_v27  ;;  %v718_v5 = vmul.f32 %v8902_v3, %v670_v25  ;;  %v739_v18 = vmul.f32 %v9852_v43, %v717_v20  ;;  %7732 = vmatmul.mubr.bf16.gmra.mrb[8].mxu1 %v770_v27 }
 0x180   : > { %1025 = vmatprep.mubr.bf16.mxu0 %v11997_v49 }
 0x181   : > { %v740_v46 = vmul.f32 %v9852_v43, %v718_v5  ;;  %v761_v32 = vadd.f32 %v9863_v60, %v739_v18 }
 0x183   : > { %v762_v34 = vadd.f32 %v9863_v60, %v740_v46 }
 0x184   : > { %v8904_v37 = vpop.eup %8903 }
 0x185   : > { %v771_v33 = vpack.c.bf16 %v762_v34, %v761_v32  ;;  %v719_v40 = vmul.f32 %v8904_v37, %v671_v28 }
 0x186   : > { %v8906_v41 = vpop.eup %8905 }
 0x187   : > { %1026 = vmatmul.mubr.bf16.gmra.mrb[24].mxu0 %v771_v33  ;;  %v720_v42 = vmul.f32 %v8906_v41, %v672_v48  ;;  %v741_v0 = vmul.f32 %v9852_v43, %v719_v40  ;;  %7735 = vmatprep.mubr.bf16.mxu1 %v771_v33 }
 0x188   : > { %1035 = vmatprep.mubr.bf16.mxu0 %v11997_v49 }
 0x189   : > { %v742_v44 = vmul.f32 %v9852_v43, %v720_v42  ;;  %v763_v53 = vadd.f32 %v9863_v60, %v741_v0 }
 0x18b   : > { %v764_v45 = vadd.f32 %v9863_v60, %v742_v44 }
 0x18d   : > { %v772_v47 = vpack.c.bf16 %v764_v45, %v763_v53 }
 0x18f   : > { %1036 = vmatmul.mubr.bf16.gmra.mrb[28].mxu0 %v772_v47  ;;  %7736 = vmatmul.mubr.bf16.gmra.mrb[12].mxu1 %v772_v47 }
 0x190   : > { %7741 = vmatprep.mubr.msk.bf16.mxu1 %vm9444_vm0, %v11999_v54  ;;  %7765 = vmatprep.mubr.msk.bf16.mxu0 %vm9444_vm0, %v11999_v54 }
 0x22a   : > { %v967_v43 = vpop.f32.mrb[0].mxu0 }
 0x22b   : > { %v969_v50 = vpop.f32.mrb[1].mxu0 }
 0x22c   : > { %v971_v26 = vpop.f32.mrb[2].mxu0 }
 0x22d   : > { %v1312_v60 = vpack.c.bf16 %v971_v26, %v967_v43  ;;  %v973_v29 = vpop.f32.mrb[3].mxu0  ;;  %v9963_v51 = vpack.i.bf16 %v971_v26, %v967_v43 }
 0x22e   : > { %v9965_v9 = vpack.i.bf16 %v973_v29, %v969_v50  ;;  %v1504_v31 = vpack.c.bf16 %v973_v29, %v969_v50 }
 0x22f   : > { %8281 = vrot.lane.b32.xlu1 %v9963_v51, %s9445_s28 }
 0x230   : > { %8276 = vrot.lane.b32.xlu0 %v9965_v9, %s9445_s28  ;;  %v1733_v52 = vsel %vm1728_vm1, %v1504_v31, 0 }
 0x231   : > { %7740 = vmatpush3.bf16.xpose.msra.mxu1 %v1733_v52 }
 0x232   : > { %v977_v55 = vpop.f32.mrb[4].mxu0  ;;  %v9972_v56 = vpop.f32.mrb[0].mxu1  ;;  %7745 = vmatprep.subr.bf16.mxu1 %v11999_v54 }
 0x233   : > { %v979_v57 = vpop.f32.mrb[5].mxu0  ;;  %v9975_v30 = vpop.f32.mrb[1].mxu1 }
 0x234   : > { %v981_v35 = vpop.f32.mrb[6].mxu0  ;;  %v9977_v58 = vpop.f32.mrb[2].mxu1 }
 0x235   : > { %v1313_v1 = vpack.c.bf16 %v981_v35, %v977_v55  ;;  %v9981_v11 = vpack.i.bf16 %v9977_v58, %v9972_v56  ;;  %v1697_v38 = vpack.c.bf16 %v9977_v58, %v9972_v56  ;;  %v983_v62 = vpop.f32.mrb[7].mxu0  ;;  %v9985_v63 = vpop.f32.mrb[3].mxu1  ;;  %v9987_v2 = vpack.i.bf16 %v981_v35, %v977_v55 }
 0x236   : > { %v9991_v7 = vpack.i.bf16 %v9985_v63, %v9975_v30  ;;  %v1696_v8 = vpack.c.bf16 %v9985_v63, %v9975_v30  ;;  %v9995_v10 = vpack.i.bf16 %v983_v62, %v979_v57  ;;  %v1505_v12 = vpack.c.bf16 %v983_v62, %v979_v57 }
 0x237   : > { %8286 = vrot.lane.b32.xlu0 %v9987_v2, %s9445_s28 }
 0x238   : > { %8291 = vrot.lane.b32.xlu1 %v9995_v10, %s9445_s28  ;;  %7742 = vmatmul.mubr.msk.bf16.vlgmr.msra.gmra.mrb[16].mxu1 %vm1728_vm1, %v1312_v60  ;;  %v1780_v14 = vsel %vm1728_vm1, %v1505_v12, 0 }
 0x239   : > { %7746 = vmatpush3.bf16.xpose.msra.mxu1 %v1780_v14  ;;  %7747 = vmatprep.mubr.msk.bf16.mxu1 %vm9444_vm0, %v11999_v54 }
 0x23a   : > { %v987_v15 = vpop.f32.mrb[8].mxu0  ;;  %7751 = vmatprep.subr.bf16.mxu1 %v11999_v54 }
 0x23b   : > { %v989_v17 = vpop.f32.mrb[9].mxu0 }
 0x23c   : > { %v991_v19 = vpop.f32.mrb[10].mxu0 }
 0x23d   : > { %v1314_v21 = vpack.c.bf16 %v991_v19, %v987_v15  ;;  %v993_v22 = vpop.f32.mrb[11].mxu0  ;;  %v10006_v36 = vpack.i.bf16 %v991_v19, %v987_v15 }
 0x23e   : > { %v10008_v61 = vpack.i.bf16 %v993_v22, %v989_v17  ;;  %v1506_v16 = vpack.c.bf16 %v993_v22, %v989_v17 }
 0x23f   : > { %8296 = vrot.lane.b32.xlu0 %v10006_v36, %s9445_s28 }
 0x240   : > { %8301 = vrot.lane.b32.xlu1 %v10008_v61, %s9445_s28  ;;  %7748 = vmatmul.mubr.msk.bf16.vlgmr.msra.gmra.mrb[20].mxu1 %vm1728_vm1, %v1313_v1  ;;  %v1827_v59 = vsel %vm1728_vm1, %v1506_v16, 0 }
 0x241   : > { %7752 = vmatpush3.bf16.xpose.msra.mxu1 %v1827_v59  ;;  %7753 = vmatprep.mubr.msk.bf16.mxu1 %vm9444_vm0, %v11999_v54 }
 0x242   : > { %v997_v4 = vpop.f32.mrb[12].mxu0  ;;  %v10018_v39 = vpop.f32.mrb[4].mxu1  ;;  %7757 = vmatprep.subr.bf16.mxu1 %v11999_v54 }
 0x243   : > { %v999_v6 = vpop.f32.mrb[13].mxu0  ;;  %v10021_v13 = vpop.f32.mrb[5].mxu1 }
 0x244   : > { %v1001_v23 = vpop.f32.mrb[14].mxu0  ;;  %v10023_v24 = vpop.f32.mrb[6].mxu1 }
 0x245   : > { %v1315_v25 = vpack.c.bf16 %v1001_v23, %v997_v4  ;;  %v10027_v27 = vpack.i.bf16 %v10023_v24, %v10018_v39  ;;  %v1003_v3 = vpop.f32.mrb[15].mxu0  ;;  %v10031_v5 = vpop.f32.mrb[7].mxu1  ;;  %v10033_v18 = vpack.i.bf16 %v1001_v23, %v997_v4 }
 0x246   : > { %v10037_v28 = vpack.i.bf16 %v1003_v3, %v999_v6  ;;  %v1507_v32 = vpack.c.bf16 %v1003_v3, %v999_v6  ;;  %v10043_v34 = vpack.i.bf16 %v10031_v5, %v10021_v13 }
 0x247   : > { %12073 = vst [vmem:[#allocation18_spill] sm:$0xff] %v10027_v27  ;;  %8306 = vrot.lane.b32.xlu0 %v10033_v18, %s9445_s28 }
 0x248   : > { %8311 = vrot.lane.b32.xlu1 %v10037_v28, %s9445_s28  ;;  %7754 = vmatmul.mubr.msk.bf16.vlgmr.msra.gmra.mrb[24].mxu1 %vm1728_vm1, %v1314_v21  ;;  %v1874_v37 = vsel %vm1728_vm1, %v1507_v32, 0 }
 0x249   : > { %7758 = vmatpush3.bf16.xpose.msra.mxu1 %v1874_v37  ;;  %7759 = vmatprep.mubr.msk.bf16.mxu1 %vm9444_vm0, %v11999_v54 }
 0x24a   : > { %v1007_v48 = vpop.f32.mrb[16].mxu0  ;;  %7769 = vmatprep.subr.bf16.mxu1 %v11999_v54 }
 0x24b   : > { %v1009_v33 = vpop.f32.mrb[17].mxu0 }
 0x24c   : > { %v1011_v40 = vpop.f32.mrb[18].mxu0 }
 0x24d   : > { %v1316_v41 = vpack.c.bf16 %v1011_v40, %v1007_v48  ;;  %v1013_v42 = vpop.f32.mrb[19].mxu0  ;;  %v10052_v0 = vpack.i.bf16 %v1011_v40, %v1007_v48 }
 0x24e   : > { %v10054_v44 = vpack.i.bf16 %v1013_v42, %v1009_v33  ;;  %v1508_v53 = vpack.c.bf16 %v1013_v42, %v1009_v33 }
 0x24f   : > { %8316 = vrot.lane.b32.xlu0 %v10052_v0, %s9445_s28 }
 0x250   : > { %8321 = vrot.lane.b32.xlu1 %v10054_v44, %s9445_s28  ;;  %7760 = vmatmul.mubr.msk.bf16.vlgmr.msra.gmra.mrb[28].mxu1 %vm1728_vm1, %v1315_v25  ;;  %v1921_v45 = vsel %vm1728_vm1, %v1508_v53, 0 }
 0x251   : > { %7764 = vmatpush3.bf16.xpose.msra.mxu0 %v1921_v45  ;;  %7771 = vmatprep.mubr.msk.bf16.mxu1 %vm9444_vm0, %v11999_v54 }
 0x252   : > { %v1017_v47 = vpop.f32.mrb[20].mxu0  ;;  %7775 = vmatprep.subr.bf16.mxu0 %v11999_v54  ;;  %v10065_v43 = vpop.f32.mrb[8].mxu1 }
 0x253   : > { %12074 = vst [vmem:[#allocation19_spill] sm:$0xff] %v10065_v43  ;;  %v1019_v50 = vpop.f32.mrb[21].mxu0  ;;  %v10067_v26 = vpop.f32.mrb[9].mxu1 }
 0x254   : > { %v1021_v60 = vpop.f32.mrb[22].mxu0  ;;  %v10069_v29 = vpop.f32.mrb[10].mxu1 }
 0x255   : > { %12075 = vst [vmem:[#allocation20_spill] sm:$0xff] %v10069_v29  ;;  %v1317_v31 = vpack.c.bf16 %v1021_v60, %v1017_v47  ;;  %v1023_v52 = vpop.f32.mrb[23].mxu0  ;;  %v10071_v55 = vpack.i.bf16 %v1021_v60, %v1017_v47  ;;  %v10075_v57 = vpack.i.bf16 %v10069_v29, %v10065_v43  ;;  %v10079_v1 = vpop.f32.mrb[11].mxu1 }
 0x256   : > { %v10081_v62 = vpack.i.bf16 %v1023_v52, %v1019_v50  ;;  %v1509_v12 = vpack.c.bf16 %v1023_v52, %v1019_v50  ;;  %v10085_v14 = vpack.i.bf16 %v10079_v1, %v10067_v26 }
 0x257   : > { %12076 = vst [vmem:[#allocation21_spill] sm:$0xff] %v10075_v57  ;;  %8326 = vrot.lane.b32.xlu0 %v10071_v55, %s9445_s28 }
 0x258   : > { %12077 = vst [vmem:[#allocation22_spill] sm:$0xff] %v10085_v14  ;;  %8331 = vrot.lane.b32.xlu1 %v10081_v62, %s9445_s28  ;;  %7766 = vmatmul.mubr.msk.bf16.vlgmr.msra.gmra.mrb[32].mxu0 %vm1728_vm1, %v1316_v41  ;;  %v1968_v17 = vsel %vm1728_vm1, %v1509_v12, 0 }
 0x259   : > { %7770 = vmatpush3.bf16.xpose.msra.mxu1 %v1968_v17  ;;  %7777 = vmatprep.mubr.msk.bf16.mxu0 %vm9444_vm0, %v11999_v54 }
 0x25a   : > { %v1027_v19 = vpop.f32.mrb[24].mxu0  ;;  %7781 = vmatprep.subr.bf16.mxu1 %v11999_v54 }
 0x25b   : > { %v1029_v21 = vpop.f32.mrb[25].mxu0 }
 0x25c   : > { %v1031_v22 = vpop.f32.mrb[26].mxu0 }
 0x25d   : > { %v1318_v16 = vpack.c.bf16 %v1031_v22, %v1027_v19  ;;  %v1033_v59 = vpop.f32.mrb[27].mxu0  ;;  %v10098_v4 = vpack.i.bf16 %v1031_v22, %v1027_v19 }
 0x25e   : > { %v8340_v6 = vpack.i.bf16 %v1033_v59, %v1029_v21  ;;  %v1510_v23 = vpack.c.bf16 %v1033_v59, %v1029_v21 }
 0x25f   : > { %8336 = vrot.lane.b32.xlu0 %v10098_v4, %s9445_s28 }
 0x260   : > { %8341 = vrot.lane.b32.xlu1 %v8340_v6, %s9445_s28  ;;  %7772 = vmatmul.mubr.msk.bf16.vlgmr.msra.gmra.mrb[32].mxu1 %vm1728_vm1, %v1317_v31  ;;  %v2015_v25 = vsel %vm1728_vm1, %v1510_v23, 0 }
 0x261   : > { %7776 = vmatpush3.bf16.xpose.msra.mxu0 %v2015_v25  ;;  %7783 = vmatprep.mubr.msk.bf16.mxu1 %vm9444_vm0, %v11999_v54 }
 0x262   : > { %v1037_v3 = vpop.f32.mrb[28].mxu0  ;;  %v10107_v32 = vpop.f32.mrb[12].mxu1  ;;  %7787 = vmatprep.subr.bf16.mxu0 %v11999_v54 }
 0x263   : > { %12078 = vst [vmem:[#allocation23_spill] sm:$0xff] %v10107_v32  ;;  %v1039_v37 = vpop.f32.mrb[29].mxu0  ;;  %v10110_v48 = vpop.f32.mrb[13].mxu1 }
 0x264   : > { %12079 = vst [vmem:[#allocation24_spill] sm:$0xff] %v10110_v48  ;;  %v1041_v33 = vpop.f32.mrb[30].mxu0  ;;  %v10112_v40 = vpop.f32.mrb[14].mxu1 }
 0x265   : > { %12080 = vst [vmem:[#allocation25_spill] sm:$0xff] %v10112_v40  ;;  %v1319_v41 = vpack.c.bf16 %v1041_v33, %v1037_v3  ;;  %v1043_v42 = vpop.f32.mrb[31].mxu0  ;;  %v8355_v53 = vpack.i.bf16 %v1041_v33, %v1037_v3  ;;  %v10116_v45 = vpack.i.bf16 %v10112_v40, %v10107_v32  ;;  %v10120_v50 = vpop.f32.mrb[15].mxu1 }
 0x266   : > { %12082 = vst [vmem:[#allocation27_spill] sm:$0xff] %v10120_v50  ;;  %v10122_v60 = vpack.i.bf16 %v1043_v42, %v1039_v37  ;;  %v1511_v31 = vpack.c.bf16 %v1043_v42, %v1039_v37  ;;  %v10126_v52 = vpack.i.bf16 %v10120_v50, %v10110_v48 }
 0x267   : > { %12081 = vst [vmem:[#allocation26_spill] sm:$0xff] %v10116_v45  ;;  %8356 = vrot.lane.b32.xlu0 %v8355_v53, %s9445_s28 }
 0x268   : > { %12083 = vst [vmem:[#allocation28_spill] sm:$0xff] %v10126_v52  ;;  %7778 = vmatmul.mubr.msk.bf16.vlgmr.msra.gmra.mrb[36].mxu0 %vm1728_vm1, %v1318_v16  ;;  %8346 = vrot.lane.b32.xlu1 %v10122_v60, %s9445_s28  ;;  %v2062_v17 = vsel %vm1728_vm1, %v1511_v31, 0 }
 0x269   : > { %7782 = vmatpush3.bf16.xpose.msra.mxu1 %v2062_v17  ;;  %7789 = vmatprep.mubr.msk.bf16.mxu0 %vm9444_vm0, %v11999_v54 }
 0x26a   : > { %7793 = vmatprep.subr.bf16.mxu1 %v11999_v54 }
 0x26b   : > { %8366 = vrot.lane.b32.xlu0 %v9963_v51, %s9446_s3 }
 0x26c   : > { %8351 = vrot.lane.b32.xlu1 %v9965_v9, %s9446_s3 }
 0x26f   : > { %8376 = vrot.lane.b32.xlu0 %v9987_v2, %s9446_s3 }
 0x270   : > { %8361 = vrot.lane.b32.xlu1 %v9995_v10, %s9446_s3  ;;  %7784 = vmatmul.mubr.msk.bf16.vlgmr.msra.gmra.mrb[36].mxu1 %vm1728_vm1, %v1319_v41 }
 0x271   : > { %7795 = vmatprep.mubr.msk.bf16.mxu1 %vm9444_vm0, %v11999_v54 }
 0x273   : > { %8386 = vrot.lane.b32.xlu0 %v10006_v36, %s9446_s3 }
 0x274   : > { %8371 = vrot.lane.b32.xlu1 %v10008_v61, %s9446_s3 }
 0x277   : > { %8396 = vrot.lane.b32.xlu0 %v10033_v18, %s9446_s3 }
 0x278   : > { %8381 = vrot.lane.b32.xlu1 %v10037_v28, %s9446_s3 }
 0x27b   : > { %8406 = vrot.lane.b32.xlu0 %v10052_v0, %s9446_s3 }
 0x27c   : > { %8391 = vrot.lane.b32.xlu1 %v10054_v44, %s9446_s3 }
 0x27f   : > { %8416 = vrot.lane.b32.xlu0 %v10071_v55, %s9446_s3 }
 0x280   : > { %8401 = vrot.lane.b32.xlu1 %v10081_v62, %s9446_s3 }
 0x283   : > { %8421 = vrot.lane.b32.xlu0 %v10098_v4, %s9446_s3 }
 0x284   : > { %8411 = vrot.lane.b32.xlu1 %v8340_v6, %s9446_s3 }
 0x287   : > { %8436 = vrot.lane.b32.xlu0 %v8355_v53, %s9446_s3 }
 0x288   : > { %8426 = vrot.lane.b32.xlu1 %v10122_v60, %s9446_s3 }
 0x28b   : > { %8446 = vrot.lane.b32.xlu0 %v9963_v51, %s9447_s18 }
 0x28c   : > { %8431 = vrot.lane.b32.xlu1 %v9965_v9, %s9447_s18 }
 0x28f   : > { %8456 = vrot.lane.b32.xlu0 %v10008_v61, %s9447_s18 }
 0x290   : > { %8441 = vrot.lane.b32.xlu1 %v9995_v10, %s9447_s18 }
 0x293   : > { %8466 = vrot.lane.b32.xlu0 %v10006_v36, %s9447_s18 }
 0x294   : > { %8451 = vrot.lane.b32.xlu1 %v9987_v2, %s9447_s18 }
 0x297   : > { %8476 = vrot.lane.b32.xlu0 %v10054_v44, %s9447_s18 }
 0x298   : > { %8461 = vrot.lane.b32.xlu1 %v10037_v28, %s9447_s18 }
 0x29b   : > { %8486 = vrot.lane.b32.xlu0 %v10052_v0, %s9447_s18 }
 0x29c   : > { %8471 = vrot.lane.b32.xlu1 %v10033_v18, %s9447_s18 }
 0x29f   : > { %8496 = vrot.lane.b32.xlu0 %v8340_v6, %s9447_s18 }
 0x2a0   : > { %8481 = vrot.lane.b32.xlu1 %v10081_v62, %s9447_s18 }
 0x2a1   : > { %v8282_v36 = vpop.permute.xlu1 %8281 }
 0x2a2   : > { %v8277_v51 = vpop.permute.xlu0 %8276  ;;  %v8284_v18 = vunpack.i.h.bf16 %v8282_v36  ;;  %v8283_v28 = vunpack.i.l.bf16 %v8282_v36 }
 0x2a3   : > { %v8279_v9 = vunpack.i.h.bf16 %v8277_v51  ;;  %v8278_v2 = vunpack.i.l.bf16 %v8277_v51  ;;  %8501 = vrot.lane.b32.xlu0 %v10098_v4, %s9447_s18 }
 0x2a4   : > { %8491 = vrot.lane.b32.xlu1 %v10071_v55, %s9447_s18  ;;  %v1320_v55 = vpack.c.bf16 %v8284_v18, %v8283_v28 }
 0x2a5   : > { %v1512_v10 = vpack.c.bf16 %v8279_v9, %v8278_v2 }
 0x2a7   : > { %8511 = vrot.lane.b32.xlu0 %v9991_v7, %s9445_s28  ;;  %v2109_v61 = vsel %vm1728_vm1, %v1512_v10, 0 }
 0x2a8   : > { %7788 = vmatpush3.bf16.xpose.msra.mxu0 %v2109_v61  ;;  %8506 = vrot.lane.b32.xlu1 %v8355_v53, %s9447_s18 }
 0x2a9   : > { %7799 = vmatprep.subr.bf16.mxu0 %v11999_v54  ;;  %v8287_v21 = vpop.permute.xlu0 %8286 }
 0x2aa   : > { %v8292_v0 = vpop.permute.xlu1 %8291  ;;  %v8289_v16 = vunpack.i.h.bf16 %v8287_v21  ;;  %v8288_v59 = vunpack.i.l.bf16 %v8287_v21 }
 0x2ab   : > { %v8294_v44 = vunpack.i.h.bf16 %v8292_v0  ;;  %v8293_v62 = vunpack.i.l.bf16 %v8292_v0  ;;  %8521 = vrot.lane.b32.xlu0 %v10043_v34, %s9445_s28 }
 0x2ac   : > { %8516 = vrot.lane.b32.xlu1 %v9981_v11, %s9445_s28  ;;  %v1321_v25 = vpack.c.bf16 %v8289_v16, %v8288_v59 }
 0x2ad   : > { %v1513_v19 = vpack.c.bf16 %v8294_v44, %v8293_v62 }
 0x2af   : > { %8531 = vrot.lane.b32.xlu0 %v10085_v14, %s9445_s28  ;;  %7790 = vmatmul.mubr.msk.bf16.vlgmr.msra.gmra.mrb[40].mxu0 %vm1728_vm1, %v1320_v55  ;;  %v2156_v22 = vsel %vm1728_vm1, %v1513_v19, 0 }
 0x2b0   : > { %8526 = vrot.lane.b32.xlu1 %v10027_v27, %s9445_s28  ;;  %7794 = vmatpush3.bf16.xpose.msra.mxu1 %v2156_v22 }
 0x2b1   : > { %7801 = vmatprep.mubr.msk.bf16.mxu0 %vm9444_vm0, %v11999_v54  ;;  %7805 = vmatprep.subr.bf16.mxu1 %v11999_v54  ;;  %v8297_v37 = vpop.permute.xlu0 %8296 }
 0x2b2   : > { %v8302_v4 = vpop.permute.xlu1 %8301  ;;  %v8299_v41 = vunpack.i.h.bf16 %v8297_v37  ;;  %v8298_v42 = vunpack.i.l.bf16 %v8297_v37 }
 0x2b3   : > { %v8304_v6 = vunpack.i.h.bf16 %v8302_v4  ;;  %v8303_v23 = vunpack.i.l.bf16 %v8302_v4  ;;  %8536 = vrot.lane.b32.xlu0 %v10075_v57, %s9445_s28 }
 0x2b4   : > { %8541 = vrot.lane.b32.xlu1 %v10122_v60, %s9447_s18  ;;  %v1322_v17 = vpack.c.bf16 %v8299_v41, %v8298_v42 }
 0x2b5   : > { %v1514_v3 = vpack.c.bf16 %v8304_v6, %v8303_v23 }
 0x2b7   : > { %8551 = vrot.lane.b32.xlu0 %v10116_v45, %s9445_s28  ;;  %7796 = vmatmul.mubr.msk.bf16.vlgmr.msra.gmra.mrb[40].mxu1 %vm1728_vm1, %v1321_v25  ;;  %v2203_v33 = vsel %vm1728_vm1, %v1514_v3, 0 }
 0x2b8   : > { %8546 = vrot.lane.b32.xlu1 %v10126_v52, %s9445_s28  ;;  %7800 = vmatpush3.bf16.xpose.msra.mxu0 %v2203_v33 }
 0x2b9   : > { %7807 = vmatprep.mubr.msk.bf16.mxu1 %vm9444_vm0, %v11999_v54  ;;  %7811 = vmatprep.subr.bf16.mxu0 %v11999_v54  ;;  %v8307_v9 = vpop.permute.xlu0 %8306 }
 0x2ba   : > { %v8312_v53 = vpop.permute.xlu1 %8311  ;;  %v8309_v10 = vunpack.i.h.bf16 %v8307_v9  ;;  %v8308_v36 = vunpack.i.l.bf16 %v8307_v9 }
 0x2bb   : > { %v8314_v60 = vunpack.i.h.bf16 %v8312_v53  ;;  %v8313_v31 = vunpack.i.l.bf16 %v8312_v53  ;;  %8561 = vrot.lane.b32.xlu0 %v9981_v11, %s9446_s3 }
 0x2bc   : > { %8556 = vrot.lane.b32.xlu1 %v9991_v7, %s9446_s3  ;;  %v1323_v0 = vpack.c.bf16 %v8309_v10, %v8308_v36 }
 0x2bd   : > { %v1515_v51 = vpack.c.bf16 %v8314_v60, %v8313_v31 }
 0x2bf   : > { %8571 = vrot.lane.b32.xlu0 %v10027_v27, %s9446_s3  ;;  %7802 = vmatmul.mubr.msk.bf16.vlgmr.msra.gmra.mrb[44].mxu0 %vm1728_vm1, %v1322_v17  ;;  %v2250_v2 = vsel %vm1728_vm1, %v1515_v51, 0 }
 0x2c0   : > { %8566 = vrot.lane.b32.xlu1 %v10043_v34, %s9446_s3  ;;  %7806 = vmatpush3.bf16.xpose.msra.mxu1 %v2250_v2 }
 0x2c1   : > { %7813 = vmatprep.mubr.msk.bf16.mxu0 %vm9444_vm0, %v11999_v54  ;;  %7817 = vmatprep.subr.bf16.mxu1 %v11999_v54  ;;  %v8317_v62 = vpop.permute.xlu0 %8316 }
 0x2c2   : > { %v8322_v61 = vpop.permute.xlu1 %8321  ;;  %v8319_v19 = vunpack.i.h.bf16 %v8317_v62  ;;  %v8318_v21 = vunpack.i.l.bf16 %v8317_v62 }
 0x2c3   : > { %v8324_v18 = vunpack.i.h.bf16 %v8322_v61  ;;  %v8323_v28 = vunpack.i.l.bf16 %v8322_v61  ;;  %8591 = vrot.lane.b32.xlu0 %v10116_v45, %s9446_s3 }
 0x2c4   : > { %8576 = vrot.lane.b32.xlu1 %v10085_v14, %s9446_s3 }
 0x2c5   : > { %v1516_v44 = vpack.c.bf16 %v8324_v18, %v8323_v28 }
 0x2c7   : > { %8606 = vrot.lane.b32.xlu0 %v10043_v34, %s9447_s18  ;;  %7808 = vmatmul.mubr.msk.bf16.vlgmr.msra.gmra.mrb[44].mxu1 %vm1728_vm1, %v1323_v0  ;;  %v2297_v55 = vsel %vm1728_vm1, %v1516_v44, 0  ;;  %v1324_v34 = vpack.c.bf16 %v8319_v19, %v8318_v21 }
 0x2c8   : > { %8581 = vrot.lane.b32.xlu1 %v10075_v57, %s9446_s3  ;;  %7812 = vmatpush3.bf16.xpose.msra.mxu0 %v2297_v55 }
 0x2c9   : > { %7819 = vmatprep.mubr.msk.bf16.mxu1 %vm9444_vm0, %v11999_v54  ;;  %7823 = vmatprep.subr.bf16.mxu0 %v11999_v54  ;;  %v8327_v6 = vpop.permute.xlu0 %8326 }
 0x2ca   : > { %v8332_v22 = vpop.permute.xlu1 %8331  ;;  %v8329_v25 = vunpack.i.h.bf16 %v8327_v6  ;;  %v8328_v3 = vunpack.i.l.bf16 %v8327_v6 }
 0x2cb   : > { %v8334_v16 = vunpack.i.h.bf16 %v8332_v22  ;;  %v8333_v59 = vunpack.i.l.bf16 %v8332_v22 }
 0x2cc   : > { %8586 = vrot.lane.b32.xlu1 %v10126_v52, %s9446_s3  ;;  %v1325_v42 = vpack.c.bf16 %v8329_v25, %v8328_v3 }
 0x2cd   : > { %v1517_v4 = vpack.c.bf16 %v8334_v16, %v8333_v59 }
 0x2cf   : > { %7814 = vmatmul.mubr.msk.bf16.vlgmr.msra.gmra.mrb[48].mxu0 %vm1728_vm1, %v1324_v34  ;;  %v2344_v23 = vsel %vm1728_vm1, %v1517_v4, 0 }
 0x2d0   : > { %8596 = vrot.lane.b32.xlu1 %v9991_v7, %s9447_s18  ;;  %7818 = vmatpush3.bf16.xpose.msra.mxu1 %v2344_v23 }
 0x2d1   : > { %7825 = vmatprep.mubr.msk.bf16.mxu0 %vm9444_vm0, %v11999_v54  ;;  %7829 = vmatprep.subr.bf16.mxu1 %v11999_v54  ;;  %v8337_v53 = vpop.permute.xlu0 %8336 }
 0x2d2   : > { %v8342_v37 = vpop.permute.xlu1 %8341  ;;  %v8339_v31 = vunpack.i.h.bf16 %v8337_v53  ;;  %v8338_v17 = vunpack.i.l.bf16 %v8337_v53 }
 0x2d3   : > { %v8344_v33 = vunpack.i.h.bf16 %v8342_v37  ;;  %v8343_v41 = vunpack.i.l.bf16 %v8342_v37 }
 0x2d4   : > { %8601 = vrot.lane.b32.xlu1 %v9981_v11, %s9447_s18  ;;  %v1326_v11 = vpack.c.bf16 %v8339_v31, %v8338_v17 }
 0x2d5   : > { %v1518_v60 = vpack.c.bf16 %v8344_v33, %v8343_v41 }
 0x2d7   : > { %7820 = vmatmul.mubr.msk.bf16.vlgmr.msra.gmra.mrb[48].mxu1 %vm1728_vm1, %v1325_v42  ;;  %v2391_v7 = vsel %vm1728_vm1, %v1518_v60, 0 }
 0x2d8   : > { %7824 = vmatpush3.bf16.xpose.msra.mxu0 %v2391_v7  ;;  %7831 = vmatprep.mubr.msk.bf16.mxu1 %vm9444_vm0, %v11999_v54 }
 0x2d9   : > { %v8357_v51 = vpop.permute.xlu0 %8356  ;;  %7835 = vmatprep.subr.bf16.mxu0 %v11999_v54 }
 0x2da   : > { %v8347_v9 = vpop.permute.xlu1 %8346  ;;  %v8359_v62 = vunpack.i.h.bf16 %v8357_v51  ;;  %v8358_v55 = vunpack.i.l.bf16 %v8357_v51 }
 0x2db   : > { %v8349_v2 = vunpack.i.h.bf16 %v8347_v9  ;;  %v8348_v10 = vunpack.i.l.bf16 %v8347_v9 }
 0x2dc   : > { %v1327_v4 = vpack.c.bf16 %v8359_v62, %v8358_v55 }
 0x2dd   : > { %v8367_v36 = vpop.permute.xlu0 %8366  ;;  %v1519_v61 = vpack.c.bf16 %v8349_v2, %v8348_v10 }
 0x2de   : > { %v8352_v18 = vpop.permute.xlu1 %8351  ;;  %v8369_v6 = vunpack.i.h.bf16 %v8367_v36  ;;  %v8368_v23 = vunpack.i.l.bf16 %v8367_v36 }
 0x2df   : > { %v8354_v28 = vunpack.i.h.bf16 %v8352_v18  ;;  %v8353_v0 = vunpack.i.l.bf16 %v8352_v18  ;;  %7826 = vmatmul.mubr.msk.bf16.vlgmr.msra.gmra.mrb[52].mxu0 %vm1728_vm1, %v1326_v11  ;;  %v2438_v44 = vsel %vm1728_vm1, %v1519_v61, 0 }
 0x2e0   : > { %7830 = vmatpush3.bf16.xpose.msra.mxu1 %v2438_v44  ;;  %7837 = vmatprep.mubr.msk.bf16.mxu0 %vm9444_vm0, %v11999_v54  ;;  %v1328_v53 = vpack.c.bf16 %v8369_v6, %v8368_v23 }
 0x2e1   : > { %v8377_v19 = vpop.permute.xlu0 %8376  ;;  %v1520_v21 = vpack.c.bf16 %v8354_v28, %v8353_v0  ;;  %7841 = vmatprep.subr.bf16.mxu1 %v11999_v54 }
 0x2e2   : > { %v8362_v22 = vpop.permute.xlu1 %8361  ;;  %v8379_v60 = vunpack.i.h.bf16 %v8377_v19  ;;  %v8378_v7 = vunpack.i.l.bf16 %v8377_v19 }
 0x2e3   : > { %v8364_v16 = vunpack.i.h.bf16 %v8362_v22  ;;  %v8363_v59 = vunpack.i.l.bf16 %v8362_v22  ;;  %v2485_v34 = vsel %vm1728_vm1, %v1520_v21, 0 }
 0x2e4   : > { %7836 = vmatpush3.bf16.xpose.msra.mxu0 %v2485_v34  ;;  %v1329_v11 = vpack.c.bf16 %v8379_v60, %v8378_v7 }
 0x2e5   : > { %v8387_v25 = vpop.permute.xlu0 %8386  ;;  %v1521_v3 = vpack.c.bf16 %v8364_v16, %v8363_v59  ;;  %7847 = vmatprep.subr.bf16.mxu0 %v11999_v54 }
 0x2e6   : > { %v8372_v37 = vpop.permute.xlu1 %8371  ;;  %v8389_v36 = vunpack.i.h.bf16 %v8387_v25  ;;  %v8388_v61 = vunpack.i.l.bf16 %v8387_v25 }
 0x2e7   : > { %v8374_v33 = vunpack.i.h.bf16 %v8372_v37  ;;  %v8373_v41 = vunpack.i.l.bf16 %v8372_v37  ;;  %7832 = vmatmul.mubr.msk.bf16.vlgmr.msra.gmra.mrb[52].mxu1 %vm1728_vm1, %v1327_v4  ;;  %v2532_v42 = vsel %vm1728_vm1, %v1521_v3, 0 }
 0x2e8   : > { %7842 = vmatpush3.bf16.xpose.msra.mxu1 %v2532_v42  ;;  %7843 = vmatprep.mubr.msk.bf16.mxu1 %vm9444_vm0, %v11999_v54  ;;  %v1330_v19 = vpack.c.bf16 %v8389_v36, %v8388_v61 }
 0x2e9   : > { %v8397_v31 = vpop.permute.xlu0 %8396  ;;  %v1522_v17 = vpack.c.bf16 %v8374_v33, %v8373_v41  ;;  %7853 = vmatprep.subr.bf16.mxu1 %v11999_v54 }
 0x2ea   : > { %v8382_v51 = vpop.permute.xlu1 %8381  ;;  %v8399_v21 = vunpack.i.h.bf16 %v8397_v31  ;;  %v8398_v22 = vunpack.i.l.bf16 %v8397_v31 }
 0x2eb   : > { %v8384_v9 = vunpack.i.h.bf16 %v8382_v51  ;;  %v8383_v2 = vunpack.i.l.bf16 %v8382_v51  ;;  %7838 = vmatmul.mubr.msk.bf16.vlgmr.msra.gmra.mrb[56].mxu0 %vm1728_vm1, %v1328_v53  ;;  %v2579_v10 = vsel %vm1728_vm1, %v1522_v17, 0 }
 0x2ec   : > { %7848 = vmatpush3.bf16.xpose.msra.mxu0 %v2579_v10  ;;  %7849 = vmatprep.mubr.msk.bf16.mxu0 %vm9444_vm0, %v11999_v54  ;;  %v1331_v25 = vpack.c.bf16 %v8399_v21, %v8398_v22 }
 0x2ed   : > { %v8407_v18 = vpop.permute.xlu0 %8406  ;;  %v1523_v28 = vpack.c.bf16 %v8384_v9, %v8383_v2  ;;  %7859 = vmatprep.subr.bf16.mxu0 %v11999_v54 }
 0x2ee   : > { %v8392_v0 = vpop.permute.xlu1 %8391  ;;  %v8409_v3 = vunpack.i.h.bf16 %v8407_v18  ;;  %v8408_v37 = vunpack.i.l.bf16 %v8407_v18 }
 0x2ef   : > { %v8394_v44 = vunpack.i.h.bf16 %v8392_v0  ;;  %v8393_v62 = vunpack.i.l.bf16 %v8392_v0  ;;  %7844 = vmatmul.mubr.msk.bf16.vlgmr.msra.gmra.mrb[56].mxu1 %vm1728_vm1, %v1329_v11  ;;  %v2626_v55 = vsel %vm1728_vm1, %v1523_v28, 0  ;;  %v1143_v11 = vlaneseq }
 0x2f0   : > { %7854 = vmatpush3.bf16.xpose.msra.mxu1 %v2626_v55  ;;  %7855 = vmatprep.mubr.msk.bf16.mxu1 %vm9444_vm0, %v11999_v54  ;;  %v1332_v31 = vpack.c.bf16 %v8409_v3, %v8408_v37 }
 0x2f1   : > { %v8417_v16 = vpop.permute.xlu0 %8416  ;;  %v1524_v59 = vpack.c.bf16 %v8394_v44, %v8393_v62  ;;  %7865 = vmatprep.subr.bf16.mxu1 %v11999_v54  ;;  %v10308_v21 = vshrl.u32 %v1143_v11, 7 }
 0x2f2   : > { %v8402_v34 = vpop.permute.xlu1 %8401  ;;  %v8419_v17 = vunpack.i.h.bf16 %v8417_v16  ;;  %v8418_v51 = vunpack.i.l.bf16 %v8417_v16 }
 0x2f3   : > { %v8404_v4 = vunpack.i.h.bf16 %v8402_v34  ;;  %v8403_v6 = vunpack.i.l.bf16 %v8402_v34  ;;  %7850 = vmatmul.mubr.msk.bf16.vlgmr.msra.gmra.mrb[60].mxu0 %vm1728_vm1, %v1330_v19  ;;  %v2673_v23 = vsel %vm1728_vm1, %v1524_v59, 0  ;;  %12084 = vst [vmem:[#allocation29_spill] sm:$0xff] %v10308_v21 }
 0x2f4   : > { %7860 = vmatpush3.bf16.xpose.msra.mxu0 %v2673_v23  ;;  %7861 = vmatprep.mubr.msk.bf16.mxu0 %vm9444_vm0, %v11999_v54  ;;  %v1333_v28 = vpack.c.bf16 %v8419_v17, %v8418_v51 }
 0x2f5   : > { %v8422_v33 = vpop.permute.xlu0 %8421  ;;  %v1525_v41 = vpack.c.bf16 %v8404_v4, %v8403_v6  ;;  %7871 = vmatprep.subr.bf16.mxu0 %v11999_v54 }
 0x2f6   : > { %v8412_v42 = vpop.permute.xlu1 %8411  ;;  %v8424_v0 = vunpack.i.h.bf16 %v8422_v33  ;;  %v8423_v44 = vunpack.i.l.bf16 %v8422_v33  ;;  %v1147_v33 = vand.u32 127, %v1143_v11 }
 0x2f7   : > { %v8414_v53 = vunpack.i.h.bf16 %v8412_v42  ;;  %v8413_v60 = vunpack.i.l.bf16 %v8412_v42  ;;  %7856 = vmatmul.mubr.msk.bf16.vlgmr.msra.gmra.mrb[60].mxu1 %vm1728_vm1, %v1331_v25  ;;  %v2720_v7 = vsel %vm1728_vm1, %v1525_v41, 0  ;;  %v1145_v41 = vadd.s32 8, %v10308_v21 }
 0x2f8   : > { %7866 = vmatpush3.bf16.xpose.msra.mxu1 %v2720_v7  ;;  %7867 = vmatprep.mubr.msk.bf16.mxu1 %vm9444_vm0, %v11999_v54  ;;  %v1334_v34 = vpack.c.bf16 %v8424_v0, %v8423_v44  ;;  %vm1148_vm2 = vcmp.ge.s32.totalorder %v10308_v21, %v1147_v33  ;;  %v9448_v44 = vmov -1e+30  }
 0x2f9   : > { %v8437_v9 = vpop.permute.xlu0 %8436  ;;  %v1526_v2 = vpack.c.bf16 %v8414_v53, %v8413_v60  ;;  %7877 = vmatprep.subr.bf16.mxu1 %v11999_v54  ;;  %vm1149_vm3 = vcmp.ge.s32.totalorder %v1145_v41, %v1147_v33 }
 0x2fa   : > { %v8427_v10 = vpop.permute.xlu1 %8426  ;;  %v8439_v4 = vunpack.i.h.bf16 %v8437_v9  ;;  %v8438_v6 = vunpack.i.l.bf16 %v8437_v9 }
 0x2fb   : > { %v8429_v36 = vunpack.i.h.bf16 %v8427_v10  ;;  %v8428_v61 = vunpack.i.l.bf16 %v8427_v10  ;;  %7862 = vmatmul.mubr.msk.bf16.vlgmr.msra.gmra.mrb[64].mxu0 %vm1728_vm1, %v1332_v31  ;;  %v2767_v18 = vsel %vm1728_vm1, %v1526_v2, 0 }
 0x2fc   : > { %7872 = vmatpush3.bf16.xpose.msra.mxu0 %v2767_v18  ;;  %7873 = vmatprep.mubr.msk.bf16.mxu0 %vm9444_vm0, %v11999_v54  ;;  %v1335_v31 = vpack.c.bf16 %v8439_v4, %v8438_v6 }
 0x2fd   : > { %v8447_v62 = vpop.permute.xlu0 %8446  ;;  %v1527_v55 = vpack.c.bf16 %v8429_v36, %v8428_v61  ;;  %7883 = vmatprep.subr.bf16.mxu0 %v11999_v54 }
 0x2fe   : > { %v8432_v19 = vpop.permute.xlu1 %8431  ;;  %v8449_v17 = vunpack.i.h.bf16 %v8447_v62  ;;  %v8448_v51 = vunpack.i.l.bf16 %v8447_v62  ;;  %v10326_v62 = vsel %vm1148_vm2, 0.0, %v9448_v44 }
 0x2ff   : > { %v8434_v22 = vunpack.i.h.bf16 %v8432_v19  ;;  %v8433_v16 = vunpack.i.l.bf16 %v8432_v19  ;;  %7868 = vmatmul.mubr.msk.bf16.vlgmr.msra.gmra.mrb[64].mxu1 %vm1728_vm1, %v1333_v28  ;;  %v2814_v59 = vsel %vm1728_vm1, %v1527_v55, 0 }
 0x300   : > { %7878 = vmatpush3.bf16.xpose.msra.mxu1 %v2814_v59  ;;  %7879 = vmatprep.mubr.msk.bf16.mxu1 %vm9444_vm0, %v11999_v54  ;;  %v1336_v61 = vpack.c.bf16 %v8449_v17, %v8448_v51 }
 0x301   : > { %v8457_v23 = vpop.permute.xlu0 %8456  ;;  %v1528_v25 = vpack.c.bf16 %v8434_v22, %v8433_v16  ;;  %7889 = vmatprep.subr.bf16.mxu1 %v11999_v54  ;;  %v10329_v16 = vsel %vm1149_vm3, 0.0, %v9448_v44 }
 0x302   : > { %v8459_v3 = vunpack.i.h.bf16 %v8457_v23  ;;  %v8442_v37 = vpop.permute.xlu1 %8441  ;;  %v8458_v42 = vunpack.i.l.bf16 %v8457_v23 }
 0x303   : > { %v8444_v53 = vunpack.i.h.bf16 %v8442_v37  ;;  %v8443_v60 = vunpack.i.l.bf16 %v8442_v37  ;;  %7874 = vmatmul.mubr.msk.bf16.vlgmr.msra.gmra.mrb[68].mxu0 %vm1728_vm1, %v1334_v34  ;;  %v2861_v7 = vsel %vm1728_vm1, %v1528_v25, 0 }
 0x304   : > { %7884 = vmatpush3.bf16.xpose.msra.mxu0 %v2861_v7  ;;  %7885 = vmatprep.mubr.msk.bf16.mxu0 %vm9444_vm0, %v11999_v54  ;;  %v1530_v36 = vpack.c.bf16 %v8459_v3, %v8458_v42 }
 0x305   : > { %v8467_v9 = vpop.permute.xlu0 %8466  ;;  %v1529_v2 = vpack.c.bf16 %v8444_v53, %v8443_v60  ;;  %7895 = vmatprep.subr.bf16.mxu0 %v11999_v54 }
 0x306   : > { %v8452_v10 = vpop.permute.xlu1 %8451  ;;  %v2955_v6 = vsel %vm1728_vm1, %v1530_v36, 0  ;;  %v8469_v3 = vunpack.i.h.bf16 %v8467_v9  ;;  %v8468_v37 = vunpack.i.l.bf16 %v8467_v9 }
 0x307   : > { %7880 = vmatmul.mubr.msk.bf16.vlgmr.msra.gmra.mrb[68].mxu1 %vm1728_vm1, %v1335_v31  ;;  %v2908_v11 = vsel %vm1728_vm1, %v1529_v2, 0  ;;  %v8454_v18 = vunpack.i.h.bf16 %v8452_v10  ;;  %v8453_v28 = vunpack.i.l.bf16 %v8452_v10 }
 0x308   : > { %7890 = vmatpush3.bf16.xpose.msra.mxu1 %v2908_v11  ;;  %7891 = vmatprep.mubr.msk.bf16.mxu1 %vm9444_vm0, %v11999_v54  ;;  %v1338_v10 = vpack.c.bf16 %v8469_v3, %v8468_v37 }
 0x309   : > { %v8477_v0 = vpop.permute.xlu0 %8476  ;;  %7901 = vmatprep.subr.bf16.mxu1 %v11999_v54  ;;  %v1337_v33 = vpack.c.bf16 %v8454_v18, %v8453_v28 }
 0x30a   : > { %v8479_v55 = vunpack.i.h.bf16 %v8477_v0  ;;  %v8478_v19 = vunpack.i.l.bf16 %v8477_v0  ;;  %v8462_v22 = vpop.permute.xlu1 %8461 }
 0x30b   : > { %v8464_v59 = vunpack.i.h.bf16 %v8462_v22  ;;  %v8463_v34 = vunpack.i.l.bf16 %v8462_v22  ;;  %v1769_v4 = vpop.f32.mrb[16].mxu1  ;;  %7886 = vmatmul.mubr.msk.bf16.vlgmr.msra.gmra.mrb[72].mxu0 %vm1728_vm1, %v1336_v61 }
 0x30c   : > { %v10334_v23 = vadd.f32 %v1769_v4, %v10326_v62  ;;  %v7743_v25 = vpop.f32.mrb[17].mxu1  ;;  %7896 = vmatpush3.bf16.xpose.msra.mxu0 %v2955_v6  ;;  %7897 = vmatprep.mubr.msk.bf16.mxu0 %vm9444_vm0, %v11999_v54  ;;  %v1532_v51 = vpack.c.bf16 %v8479_v55, %v8478_v19 }
 0x30d   : > { %v1772_v41 = vpop.f32.mrb[18].mxu1  ;;  %v8487_v42 = vpop.permute.xlu0 %8486  ;;  %v1531_v53 = vpack.c.bf16 %v8464_v59, %v8463_v34  ;;  %7907 = vmatprep.subr.bf16.mxu0 %v11999_v54 }
 0x30e   : > { %v10340_v60 = vadd.f32 %v1772_v41, %v10329_v16  ;;  %v7744_v7 = vpop.f32.mrb[19].mxu1  ;;  %v8472_v31 = vpop.permute.xlu1 %8471  ;;  %v3234_v17 = vsel %vm3233_vm4, %v10334_v23, -inf  ;;  %v3049_v28 = vsel %vm1728_vm1, %v1532_v51, 0  ;;  %v8489_v4 = vunpack.i.h.bf16 %v8487_v42 }
 0x30f   : > { %3235 = vmax.xlane.f32.xlu0 %v3234_v17  ;;  %7892 = vmatmul.mubr.msk.bf16.vlgmr.msra.gmra.mrb[72].mxu1 %vm1728_vm1, %v1337_v33  ;;  %v3002_v9 = vsel %vm1728_vm1, %v1531_v53, 0  ;;  %v8474_v11 = vunpack.i.h.bf16 %v8472_v31  ;;  %v8473_v36 = vunpack.i.l.bf16 %v8472_v31  ;;  %v8488_v6 = vunpack.i.l.bf16 %v8487_v42 }
 0x310   : > { %7902 = vmatpush3.bf16.xpose.msra.mxu1 %v3002_v9  ;;  %v3237_v2 = vsel %vm3233_vm4, %v10340_v60, -inf  ;;  %7903 = vmatprep.mubr.msk.bf16.mxu1 %vm9444_vm0, %v11999_v54 }
 0x311   : > { %v8497_v61 = vpop.permute.xlu0 %8496  ;;  %3238 = vmax.xlane.f32.xlu1 %v3237_v2  ;;  %7913 = vmatprep.subr.bf16.mxu1 %v11999_v54  ;;  %v1339_v25 = vpack.c.bf16 %v8474_v11, %v8473_v36  ;;  %v1340_v42 = vpack.c.bf16 %v8489_v4, %v8488_v6 }
 0x312   : > { %v8482_v18 = vpop.permute.xlu1 %8481  ;;  %v8499_v0 = vunpack.i.h.bf16 %v8497_v61  ;;  %v8498_v44 = vunpack.i.l.bf16 %v8497_v61 }
 0x313   : > { %v8484_v55 = vunpack.i.h.bf16 %v8482_v18  ;;  %v8483_v19 = vunpack.i.l.bf16 %v8482_v18  ;;  %v1816_v22 = vpop.f32.mrb[20].mxu1  ;;  %7898 = vmatmul.mubr.msk.bf16.vlgmr.msra.gmra.mrb[76].mxu0 %vm1728_vm1, %v1338_v10 }
 0x314   : > { %v10354_v59 = vadd.f32 %v1816_v22, %v10326_v62  ;;  %v7749_v34 = vpop.f32.mrb[21].mxu1  ;;  %7908 = vmatpush3.bf16.xpose.msra.mxu0 %v3049_v28  ;;  %7909 = vmatprep.mubr.msk.bf16.mxu0 %vm9444_vm0, %v11999_v54  ;;  %v1534_v17 = vpack.c.bf16 %v8499_v0, %v8498_v44 }
 0x315   : > { %v1819_v3 = vpop.f32.mrb[22].mxu1  ;;  %v1533_v37 = vpack.c.bf16 %v8484_v55, %v8483_v19  ;;  %7919 = vmatprep.subr.bf16.mxu0 %v11999_v54  ;;  %v8502_v2 = vpop.permute.xlu0 %8501 }
 0x316   : > { %v10360_v33 = vadd.f32 %v1819_v3, %v10329_v16  ;;  %v7750_v41 = vpop.f32.mrb[23].mxu1  ;;  %v8492_v53 = vpop.permute.xlu1 %8491  ;;  %v3240_v7 = vsel %vm3233_vm4, %v10354_v59, -inf  ;;  %v3143_v61 = vsel %vm1728_vm1, %v1534_v17, 0  ;;  %v8504_v0 = vunpack.i.h.bf16 %v8502_v2 }
 0x317   : > { %3241 = vmax.xlane.f32.xlu0 %v3240_v7  ;;  %7904 = vmatmul.mubr.msk.bf16.vlgmr.msra.gmra.mrb[76].mxu1 %vm1728_vm1, %v1339_v25  ;;  %v3096_v31 = vsel %vm1728_vm1, %v1533_v37, 0  ;;  %v8494_v51 = vunpack.i.h.bf16 %v8492_v53  ;;  %v8493_v9 = vunpack.i.l.bf16 %v8492_v53  ;;  %v8503_v44 = vunpack.i.l.bf16 %v8502_v2 }
 0x318   : > { %7914 = vmatpush3.bf16.xpose.msra.mxu1 %v3096_v31  ;;  %7915 = vmatprep.mubr.msk.bf16.mxu1 %vm9444_vm0, %v11999_v54  ;;  %v3243_v11 = vsel %vm3233_vm4, %v10360_v33, -inf }
 0x319   : > { %7925 = vmatprep.subr.bf16.mxu1 %v11999_v54  ;;  %v1341_v55 = vpack.c.bf16 %v8494_v51, %v8493_v9  ;;  %v1342_v3 = vpack.c.bf16 %v8504_v0, %v8503_v44 }
 0x31a   : > { %v8507_v10 = vpop.permute.xlu1 %8506 }
 0x31b   : > { %v1863_v36 = vpop.f32.mrb[24].mxu1  ;;  %3244 = vmax.xlane.f32.xlu0 %v3243_v11  ;;  %7910 = vmatmul.mubr.msk.bf16.vlgmr.msra.gmra.mrb[80].mxu0 %vm1728_vm1, %v1340_v42  ;;  %v8509_v0 = vunpack.i.h.bf16 %v8507_v10  ;;  %v8508_v44 = vunpack.i.l.bf16 %v8507_v10 }
 0x31c   : > { %v10374_v18 = vadd.f32 %v1863_v36, %v10326_v62  ;;  %v7755_v28 = vpop.f32.mrb[25].mxu1  ;;  %7920 = vmatpush3.bf16.xpose.msra.mxu0 %v3143_v61  ;;  %7921 = vmatprep.mubr.msk.bf16.mxu0 %vm9444_vm0, %v11999_v54 }
 0x31d   : > { %v1866_v19 = vpop.f32.mrb[26].mxu1  ;;  %7931 = vmatprep.subr.bf16.mxu0 %v11999_v54 }
 0x31e   : > { %v10380_v22 = vadd.f32 %v1866_v19, %v10329_v16  ;;  %v7756_v34 = vpop.f32.mrb[27].mxu1  ;;  %v10382_v4 = vpop.permute.xlu1 %8516  ;;  %v3246_v6 = vsel %vm3233_vm4, %v10374_v18, -inf }
 0x31f   : > { %12085 = vst [vmem:[#allocation30_spill] sm:$0xff] %v10382_v4  ;;  %3247 = vmax.xlane.f32.xlu0 %v3246_v6  ;;  %7916 = vmatmul.mubr.msk.bf16.vlgmr.msra.gmra.mrb[80].mxu1 %vm1728_vm1, %v1341_v55 }
 0x320   : > { %v3249_v25 = vsel %vm3233_vm4, %v10380_v22, -inf  ;;  %7927 = vmatprep.mubr.msk.bf16.mxu1 %vm9444_vm0, %v11999_v54 }
 0x321   : > { %3250 = vmax.xlane.f32.xlu1 %v3249_v25 }
 0x322   : > { %v10391_v37 = vpop.permute.xlu1 %8526 }
 0x323   : > { %12086 = vst [vmem:[#allocation31_spill] sm:$0xff] %v10391_v37  ;;  %v1910_v41 = vpop.f32.mrb[28].mxu1  ;;  %7922 = vmatmul.mubr.msk.bf16.vlgmr.msra.gmra.mrb[84].mxu0 %vm1728_vm1, %v1342_v3  ;;  %v1343_v3 = vpack.c.bf16 %v8509_v0, %v8508_v44 }
 0x324   : > { %v10395_v53 = vadd.f32 %v1910_v41, %v10326_v62  ;;  %v7761_v7 = vpop.f32.mrb[29].mxu1  ;;  %7932 = vmatpush3.bf16.msra.mxu0 %v1696_v8  ;;  %7933 = vmatprep.mubr.msk.bf16.mxu0 %vm9444_vm0, %v11999_v54 }
 0x325   : > { %v1913_v31 = vpop.f32.mrb[30].mxu1  ;;  %7943 = vmatprep.subr.bf16.mxu0 %v11999_v54 }
 0x326   : > { %v10404_v17 = vadd.f32 %v1913_v31, %v10329_v16  ;;  %v7762_v42 = vpop.f32.mrb[31].mxu1  ;;  %v8542_v51 = vpop.permute.xlu1 %8541  ;;  %v3252_v9 = vsel %vm3233_vm4, %v10395_v53, -inf }
 0x327   : > { %v8544_v2 = vunpack.i.h.bf16 %v8542_v51  ;;  %v8543_v11 = vunpack.i.l.bf16 %v8542_v51  ;;  %3253 = vmax.xlane.f32.xlu0 %v3252_v9 }
 0x328   : > { %v3255_v30 = vsel %vm3233_vm4, %v10404_v17, -inf }
 0x329   : > { %3256 = vmax.xlane.f32.xlu1 %v3255_v30  ;;  %v1535_v63 = vpack.c.bf16 %v8544_v2, %v8543_v11 }
 0x32b   : > { %v1957_v8 = vpop.f32.mrb[32].mxu0  ;;  %v3190_v36 = vsel %vm1728_vm1, %v1535_v63, 0 }
 0x32c   : > { %v10412_v61 = vadd.f32 %v1957_v8, %v10326_v62  ;;  %v7767_v28 = vpop.f32.mrb[33].mxu0  ;;  %7926 = vmatpush3.bf16.xpose.msra.mxu1 %v3190_v36 }
 0x32d   : > { %v1960_v55 = vpop.f32.mrb[34].mxu0  ;;  %7937 = vmatprep.subr.bf16.mxu1 %v11999_v54 }
 0x32e   : > { %v10416_v19 = vadd.f32 %v1960_v55, %v10329_v16  ;;  %v7768_v34 = vpop.f32.mrb[35].mxu0  ;;  %v3258_v6 = vsel %vm3233_vm4, %v10412_v61, -inf }
 0x32f   : > { %3259 = vmax.xlane.f32.xlu0 %v3258_v6 }
 0x330   : > { %v3261_v25 = vsel %vm3233_vm4, %v10416_v19, -inf }
 0x331   : > { %3262 = vmax.xlane.f32.xlu1 %v3261_v25 }
 0x333   : > { %v2004_v41 = vpop.f32.mrb[32].mxu1  ;;  %7928 = vmatmul.mubr.msk.bf16.vlgmr.msra.gmra.mrb[84].mxu1 %vm1728_vm1, %v1343_v3 }
 0x334   : > { %v10424_v10 = vadd.f32 %v2004_v41, %v10326_v62  ;;  %v7773_v7 = vpop.f32.mrb[33].mxu1  ;;  %7938 = vmatpush3.bf16.msra.mxu1 %v1697_v38  ;;  %7939 = vmatprep.mubr.msk.bf16.mxu1 %vm9444_vm0, %v11999_v54  ;;  %v10459_v41 = vpop.permute.xlu0 %8511 }
 0x335   : > { %v2007_v31 = vpop.f32.mrb[34].mxu1  ;;  %7949 = vmatprep.subr.bf16.mxu1 %v11999_v54  ;;  %12087 = vst [vmem:[#allocation32_spill] sm:$0xff] %v10459_v41 }
 0x336   : > { %v10433_v42 = vadd.f32 %v2007_v31, %v10329_v16  ;;  %v3264_v51 = vsel %vm3233_vm4, %v10424_v10, -inf  ;;  %v7774_v9 = vpop.f32.mrb[35].mxu1  ;;  %v10463_v31 = vpop.permute.xlu1 %8546 }
 0x337   : > { %3265 = vmax.xlane.f32.xlu0 %v3264_v51  ;;  %12089 = vst [vmem:[#allocation34_spill] sm:$0xff] %v10463_v31 }
 0x338   : > { %v3267_v2 = vsel %vm3233_vm4, %v10433_v42, -inf  ;;  %v10461_v7 = vpop.permute.xlu0 %8521 }
 0x339   : > { %3268 = vmax.xlane.f32.xlu1 %v3267_v2  ;;  %12088 = vst [vmem:[#allocation33_spill] sm:$0xff] %v10461_v7 }
 0x33a   : > { %v10467_v9 = vpop.permute.xlu1 %8556 }
 0x33b   : > { %v2051_v56 = vpop.f32.mrb[36].mxu0  ;;  %12091 = vst [vmem:[#allocation36_spill] sm:$0xff] %v10467_v9 }
 0x33c   : > { %v10440_v58 = vadd.f32 %v2051_v56, %v10326_v62  ;;  %v7779_v38 = vpop.f32.mrb[37].mxu0  ;;  %v10465_v51 = vpop.permute.xlu0 %8531 }
 0x33d   : > { %v2054_v11 = vpop.f32.mrb[38].mxu0  ;;  %12090 = vst [vmem:[#allocation35_spill] sm:$0xff] %v10465_v51 }
 0x33e   : > { %v10443_v30 = vadd.f32 %v2054_v11, %v10329_v16  ;;  %v3270_v63 = vsel %vm3233_vm4, %v10440_v58, -inf  ;;  %v7780_v8 = vpop.f32.mrb[39].mxu0  ;;  %v10471_v56 = vpop.permute.xlu1 %8566 }
 0x33f   : > { %3271 = vmax.xlane.f32.xlu0 %v3270_v63  ;;  %12093 = vst [vmem:[#allocation38_spill] sm:$0xff] %v10471_v56 }
 0x340   : > { %v3273_v36 = vsel %vm3233_vm4, %v10443_v30, -inf  ;;  %v10469_v2 = vpop.permute.xlu0 %8536 }
 0x341   : > { %3274 = vmax.xlane.f32.xlu1 %v3273_v36  ;;  %12092 = vst [vmem:[#allocation37_spill] sm:$0xff] %v10469_v2 }
 0x342   : > { %v10475_v11 = vpop.permute.xlu1 %8576 }
 0x343   : > { %v2098_v28 = vpop.f32.mrb[36].mxu1  ;;  %12095 = vst [vmem:[#allocation40_spill] sm:$0xff] %v10475_v11 }
 0x344   : > { %v10450_v0 = vadd.f32 %v2098_v28, %v10326_v62  ;;  %v7785_v44 = vpop.f32.mrb[37].mxu1  ;;  %v10473_v38 = vpop.permute.xlu0 %8551 }
 0x345   : > { %v2101_v55 = vpop.f32.mrb[38].mxu1  ;;  %12094 = vst [vmem:[#allocation39_spill] sm:$0xff] %v10473_v38 }
 0x346   : > { %v10453_v34 = vadd.f32 %v2101_v55, %v10329_v16  ;;  %v3276_v6 = vsel %vm3233_vm4, %v10450_v0, -inf  ;;  %v7786_v25 = vpop.f32.mrb[39].mxu1  ;;  %v10489_v49 = vpop.permute.xlu1 %8581 }
 0x347   : > { %3277 = vmax.xlane.f32.xlu0 %v3276_v6  ;;  %12097 = vst [vmem:[#allocation42_spill] sm:$0xff] %v10489_v49 }
 0x348   : > { %v3279_v3 = vsel %vm3233_vm4, %v10453_v34, -inf  ;;  %v10485_v25 = vpop.permute.xlu0 %8561 }
 0x349   : > { %3280 = vmax.xlane.f32.xlu1 %v3279_v3  ;;  %12096 = vst [vmem:[#allocation41_spill] sm:$0xff] %v10485_v25 }
 0x34a   : > { %v10501_v15 = vpop.permute.xlu1 %8586 }
 0x34b   : > { %12099 = vst [vmem:[#allocation44_spill] sm:$0xff] %v10501_v15 }
 0x382   : > { %v2145_v63 = vpop.f32.mrb[40].mxu0 }
 0x383   : > { %v10478_v8 = vadd.f32 %v2145_v63, %v10326_v62  ;;  %v7791_v36 = vpop.f32.mrb[41].mxu0 }
 0x384   : > { %v2148_v28 = vpop.f32.mrb[42].mxu0 }
 0x385   : > { %v10481_v44 = vadd.f32 %v2148_v28, %v10329_v16  ;;  %v7792_v55 = vpop.f32.mrb[43].mxu0  ;;  %v3282_v6 = vsel %vm3233_vm4, %v10478_v8, -inf  ;;  %v10494_v28 = vpop.permute.xlu0 %8571 }
 0x386   : > { %3283 = vmax.xlane.f32.xlu0 %v3282_v6  ;;  %12098 = vst [vmem:[#allocation43_spill] sm:$0xff] %v10494_v28 }
 0x387   : > { %v3285_v3 = vsel %vm3233_vm4, %v10481_v44, -inf }
 0x388   : > { %3286 = vmax.xlane.f32.xlu1 %v3285_v3 }
 0x38a   : > { %v2192_v63 = vpop.f32.mrb[40].mxu1 }
 0x38b   : > { %v10492_v36 = vadd.f32 %v2192_v63, %v10326_v62  ;;  %v7797_v47 = vpop.f32.mrb[41].mxu1  ;;  %v10505_v63 = vpop.permute.xlu0 %8591 }
 0x38c   : > { %v2195_v55 = vpop.f32.mrb[42].mxu1  ;;  %12100 = vst [vmem:[#allocation45_spill] sm:$0xff] %v10505_v63 }
 0x38d   : > { %v10497_v12 = vadd.f32 %v2195_v55, %v10329_v16  ;;  %v7798_v35 = vpop.f32.mrb[43].mxu1  ;;  %v3288_v6 = vsel %vm3233_vm4, %v10492_v36, -inf  ;;  %v10510_v55 = vpop.permute.xlu1 %8596 }
 0x38e   : > { %3289 = vmax.xlane.f32.xlu0 %v3288_v6  ;;  %12101 = vst [vmem:[#allocation46_spill] sm:$0xff] %v10510_v55 }
 0x38f   : > { %v3291_v3 = vsel %vm3233_vm4, %v10497_v12, -inf  ;;  %v10519_v63 = vpop.permute.xlu0 %8606 }
 0x390   : > { %3292 = vmax.xlane.f32.xlu1 %v3291_v3  ;;  %12102 = vst [vmem:[#allocation47_spill] sm:$0xff] %v10519_v63 }
 0x392   : > { %v2239_v47 = vpop.f32.mrb[44].mxu0 }
 0x393   : > { %v10508_v20 = vadd.f32 %v2239_v47, %v10326_v62  ;;  %v7803_v54 = vpop.f32.mrb[45].mxu0  ;;  %v10521_v47 = vpop.permute.xlu1 %8601 }
 0x394   : > { %v2242_v35 = vpop.f32.mrb[46].mxu0  ;;  %12103 = vst [vmem:[#allocation48_spill] sm:$0xff] %v10521_v47 }
 0x395   : > { %v10513_v46 = vadd.f32 %v2242_v35, %v10329_v16  ;;  %v7804_v21 = vpop.f32.mrb[47].mxu0  ;;  %v3294_v6 = vsel %vm3233_vm4, %v10508_v20, -inf }
 0x396   : > { %3295 = vmax.xlane.f32.xlu0 %v3294_v6 }
 0x397   : > { %v3297_v3 = vsel %vm3233_vm4, %v10513_v46, -inf }
 0x398   : > { %3298 = vmax.xlane.f32.xlu1 %v3297_v3 }
 0x39a   : > { %v2286_v54 = vpop.f32.mrb[44].mxu1 }
 0x39b   : > { %v10524_v55 = vadd.f32 %v2286_v54, %v10326_v62  ;;  %v7809_v15 = vpop.f32.mrb[45].mxu1 }
 0x39c   : > { %v3236_v35 = vpop.xlane.xlu0 %3235  ;;  %v2289_v49 = vpop.f32.mrb[46].mxu1 }
 0x39d   : > { %v3426_v21 = vsub.f32 %v10334_v23, %v3236_v35  ;;  %v10528_v11 = vadd.f32 %v2289_v49, %v10329_v16  ;;  %v7810_v6 = vpop.f32.mrb[47].mxu1  ;;  %v3300_v28 = vsel %vm3233_vm4, %v10524_v55, -inf }
 0x39e   : > { %v3239_v63 = vpop.xlane.xlu1 %3238  ;;  %3301 = vmax.xlane.f32.xlu0 %v3300_v28 }
 0x39f   : > { %v3427_v3 = vsub.f32 %v10340_v60, %v3239_v63  ;;  %v3303_v54 = vsel %vm3233_vm4, %v10528_v11, -inf  ;;  %v3490_v47 = vmul.f32 1.442695, %v3426_v21 }
 0x3a0   : > { %3304 = vmax.xlane.f32.xlu1 %v3303_v54 }
 0x3a1   : > { %v3492_v15 = vmul.f32 1.442695, %v3427_v3  ;;  %8907 = vpow2.f32 %v3490_v47 }
 0x3a2   : > { %v2333_v52 = vpop.f32.mrb[48].mxu0 }
 0x3a3   : > { %v10536_v23 = vadd.f32 %v2333_v52, %v10326_v62  ;;  %v7815_v49 = vpop.f32.mrb[49].mxu0  ;;  %8909 = vpow2.f32 %v3492_v15 }
 0x3a4   : > { %v3242_v35 = vpop.xlane.xlu0 %3241  ;;  %v2336_v6 = vpop.f32.mrb[50].mxu0 }
 0x3a5   : > { %v3428_v45 = vsub.f32 %v10354_v59, %v3242_v35  ;;  %v10540_v28 = vadd.f32 %v2336_v6, %v10329_v16  ;;  %v7816_v60 = vpop.f32.mrb[51].mxu0  ;;  %v3306_v63 = vsel %vm3233_vm4, %v10536_v23, -inf }
 0x3a6   : > { %3307 = vmax.xlane.f32.xlu0 %v3306_v63 }
 0x3a7   : > { %v3309_v21 = vsel %vm3233_vm4, %v10540_v28, -inf  ;;  %v3494_v52 = vmul.f32 1.442695, %v3428_v45 }
 0x3a8   : > { %v3245_v3 = vpop.xlane.xlu0 %3244  ;;  %3310 = vmax.xlane.f32.xlu1 %v3309_v21 }
 0x3a9   : > { %v3429_v47 = vsub.f32 %v10360_v33, %v3245_v3  ;;  %8911 = vpow2.f32 %v3494_v52 }
 0x3aa   : > { %v2380_v54 = vpop.f32.mrb[48].mxu1 }
 0x3ab   : > { %v3496_v49 = vmul.f32 1.442695, %v3429_v47  ;;  %v10548_v59 = vadd.f32 %v2380_v54, %v10326_v62  ;;  %v7821_v35 = vpop.f32.mrb[49].mxu1  ;;  %v10555_v56 = vpop.eup %8907 }
 0x3ac   : > { %v2383_v6 = vpop.f32.mrb[50].mxu1  ;;  %v3248_v60 = vpop.xlane.xlu0 %3247  ;;  %v3618_v47 = vsel %vm3233_vm4, %v10555_v56, 0.0 }
 0x3ad   : > { %v10551_v15 = vadd.f32 %v2383_v6, %v10329_v16  ;;  %v3312_v63 = vsel %vm3233_vm4, %v10548_v59, -inf  ;;  %v7822_v45 = vpop.f32.mrb[51].mxu1  ;;  %8913 = vpow2.f32 %v3496_v49  ;;  %v10559_v3 = vpop.eup %8909  ;;  %v3430_v52 = vsub.f32 %v10374_v18, %v3248_v60 }
 0x3ae   : > { %3313 = vmax.xlane.f32.xlu0 %v3312_v63  ;;  %v3251_v33 = vpop.xlane.xlu1 %3250  ;;  %v3621_v63 = vsel %vm3233_vm4, %v10559_v3, 0.0 }
 0x3af   : > { %v3315_v21 = vsel %vm3233_vm4, %v10551_v15, -inf  ;;  %v3431_v54 = vsub.f32 %v10380_v22, %v3251_v33  ;;  %v3498_v45 = vmul.f32 1.442695, %v3430_v52 }
 0x3b0   : > { %3316 = vmax.xlane.f32.xlu1 %v3315_v21 }
 0x3b1   : > { %v3500_v33 = vmul.f32 1.442695, %v3431_v54  ;;  %8915 = vpow2.f32 %v3498_v45 }
 0x3b2   : > { %3619 = vadd.xlane.f32.xlu0 %v3618_v47  ;;  %v2427_v35 = vpop.f32.mrb[52].mxu0 }
 0x3b3   : > { %v10566_v6 = vadd.f32 %v2427_v35, %v10326_v62  ;;  %v7827_v49 = vpop.f32.mrb[53].mxu0  ;;  %v10575_v22 = vpop.eup %8911  ;;  %8917 = vpow2.f32 %v3500_v33 }
 0x3b4   : > { %3622 = vadd.xlane.f32.xlu1 %v3621_v63  ;;  %v2430_v25 = vpop.f32.mrb[54].mxu0  ;;  %v3254_v52 = vpop.xlane.xlu0 %3253 }
 0x3b5   : > { %v10571_v18 = vadd.f32 %v2430_v25, %v10329_v16  ;;  %v3318_v60 = vsel %vm3233_vm4, %v10566_v6, -inf  ;;  %v7828_v21 = vpop.f32.mrb[55].mxu0  ;;  %v3624_v25 = vsel %vm3233_vm4, %v10575_v22, 0.0  ;;  %v3432_v9 = vsub.f32 %v10395_v53, %v3254_v52 }
 0x3b6   : > { %3319 = vmax.xlane.f32.xlu0 %v3318_v60  ;;  %v3257_v63 = vpop.xlane.xlu1 %3256 }
 0x3b7   : > { %v3321_v47 = vsel %vm3233_vm4, %v10571_v18, -inf  ;;  %v10579_v35 = vpop.eup %8913  ;;  %v3502_v52 = vmul.f32 1.442695, %v3432_v9 }
 0x3b8   : > { %3322 = vmax.xlane.f32.xlu1 %v3321_v47  ;;  %v3627_v60 = vsel %vm3233_vm4, %v10579_v35, 0.0 }
 0x3b9   : > { %8919 = vpow2.f32 %v3502_v52 }
 0x3ba   : > { %v2474_v49 = vpop.f32.mrb[52].mxu1  ;;  %3625 = vadd.xlane.f32.xlu0 %v3624_v25  ;;  %v3433_v25 = vsub.f32 %v10404_v17, %v3257_v63 }
 0x3bb   : > { %v10584_v21 = vadd.f32 %v2474_v49, %v10326_v62  ;;  %v7833_v54 = vpop.f32.mrb[53].mxu1  ;;  %v10605_v17 = vpop.eup %8915 }
 0x3bc   : > { %v2477_v38 = vpop.f32.mrb[54].mxu1  ;;  %3628 = vadd.xlane.f32.xlu1 %v3627_v60  ;;  %v3504_v63 = vmul.f32 1.442695, %v3433_v25  ;;  %v3630_v27 = vsel %vm3233_vm4, %v10605_v17, 0.0 }
 0x3bd   : > { %v10590_v45 = vadd.f32 %v2477_v38, %v10329_v16  ;;  %v3324_v33 = vsel %vm3233_vm4, %v10584_v21, -inf  ;;  %v7834_v47 = vpop.f32.mrb[55].mxu1  ;;  %v10609_v51 = vpop.eup %8917 }
 0x3be   : > { %3325 = vmax.xlane.f32.xlu0 %v3324_v33  ;;  %v2521_v49 = vpop.f32.mrb[56].mxu0  ;;  %8921 = vpow2.f32 %v3504_v63  ;;  %v3633_v52 = vsel %vm3233_vm4, %v10609_v51, 0.0 }
 0x3bf   : > { %v10596_v54 = vadd.f32 %v2521_v49, %v10326_v62  ;;  %v7839_v31 = vpop.f32.mrb[57].mxu0  ;;  %v3327_v53 = vsel %vm3233_vm4, %v10590_v45, -inf }
 0x3c0   : > { %3328 = vmax.xlane.f32.xlu1 %v3327_v53  ;;  %v2524_v60 = vpop.f32.mrb[58].mxu0  ;;  %v3260_v53 = vpop.xlane.xlu0 %3259 }
 0x3c1   : > { %v10601_v38 = vadd.f32 %v2524_v60, %v10329_v16  ;;  %v7840_v2 = vpop.f32.mrb[59].mxu0  ;;  %v3330_v47 = vsel %vm3233_vm4, %v10596_v54, -inf }
 0x3c2   : > { %v2568_v33 = vpop.f32.mrb[56].mxu1  ;;  %3331 = vmax.xlane.f32.xlu0 %v3330_v47  ;;  %v3263_v47 = vpop.xlane.xlu1 %3262 }
 0x3c3   : > { %v7845_v49 = vpop.f32.mrb[57].mxu1  ;;  %v3333_v31 = vsel %vm3233_vm4, %v10601_v38, -inf  ;;  %v10612_v2 = vadd.f32 %v2568_v33, %v10326_v62  ;;  %v3435_v63 = vsub.f32 %v10416_v19, %v3263_v47  ;;  %v10635_v7 = vpop.eup %8919 }
 0x3c4   : > { %v2571_v9 = vpop.f32.mrb[58].mxu1  ;;  %3334 = vmax.xlane.f32.xlu1 %v3333_v31  ;;  %v3434_v31 = vsub.f32 %v10412_v61, %v3260_v53  ;;  %12104 = vst [vmem:[#allocation49_spill] sm:$0xff] %v10635_v7  ;;  %v3636_v41 = vsel %vm3233_vm4, %v10635_v7, 0.0 }
 0x3c5   : > { %v7846_v60 = vpop.f32.mrb[59].mxu1  ;;  %v10617_v49 = vadd.f32 %v2571_v9, %v10329_v16  ;;  %v3508_v4 = vmul.f32 1.442695, %v3435_v63 }
 0x3c6   : > { %3631 = vadd.xlane.f32.xlu0 %v3630_v27  ;;  %v2615_v25 = vpop.f32.mrb[60].mxu0  ;;  %v3336_v27 = vsel %vm3233_vm4, %v10612_v2, -inf  ;;  %v3506_v53 = vmul.f32 1.442695, %v3434_v31 }
 0x3c7   : > { %v7851_v37 = vpop.f32.mrb[61].mxu0  ;;  %v10623_v60 = vadd.f32 %v2615_v25, %v10326_v62  ;;  %v3339_v61 = vsel %vm3233_vm4, %v10617_v49, -inf }
 0x3c8   : > { %3634 = vadd.xlane.f32.xlu1 %v3633_v52  ;;  %v2618_v33 = vpop.f32.mrb[62].mxu0  ;;  %8923 = vpow2.f32 %v3506_v53 }
 0x3c9   : > { %v7852_v57 = vpop.f32.mrb[63].mxu0  ;;  %v10629_v37 = vadd.f32 %v2618_v33, %v10329_v16  ;;  %8925 = vpow2.f32 %v3508_v4 }
 0x3ca   : > { %v2662_v14 = vpop.f32.mrb[60].mxu1  ;;  %3337 = vmax.xlane.f32.xlu0 %v3336_v27  ;;  %v3342_v57 = vsel %vm3233_vm4, %v10623_v60, -inf  ;;  %v10639_v27 = vpop.eup %8921 }
 0x3cb   : > { %v7857_v9 = vpop.f32.mrb[61].mxu1  ;;  %v3345_v33 = vsel %vm3233_vm4, %v10629_v37, -inf  ;;  %12105 = vst [vmem:[#allocation50_spill] sm:$0xff] %v10639_v27  ;;  %v3639_v53 = vsel %vm3233_vm4, %v10639_v27, 0.0 }
 0x3cc   : > { %v2665_v52 = vpop.f32.mrb[62].mxu1  ;;  %3340 = vmax.xlane.f32.xlu1 %v3339_v61  ;;  %v3266_v9 = vpop.xlane.xlu0 %3265  ;;  %v10642_v61 = vadd.f32 %v2662_v14, %v10326_v62 }
 0x3cd   : > { %v7858_v25 = vpop.f32.mrb[63].mxu1 }
 0x3ce   : > { %3343 = vmax.xlane.f32.xlu0 %v3342_v57  ;;  %v2709_v19 = vpop.f32.mrb[64].mxu0  ;;  %v3269_v57 = vpop.xlane.xlu1 %3268  ;;  %v3348_v4 = vsel %vm3233_vm4, %v10642_v61, -inf }
 0x3cf   : > { %v7863_v47 = vpop.f32.mrb[65].mxu0  ;;  %v10653_v14 = vadd.f32 %v2709_v19, %v10326_v62 }
 0x3d0   : > { %3346 = vmax.xlane.f32.xlu1 %v3345_v33  ;;  %v2712_v31 = vpop.f32.mrb[66].mxu0  ;;  %v10647_v47 = vadd.f32 %v2665_v52, %v10329_v16  ;;  %v3436_v33 = vsub.f32 %v10424_v10, %v3266_v9 }
 0x3d1   : > { %v7864_v25 = vpop.f32.mrb[67].mxu0 }
 0x3d2   : > { %v2756_v63 = vpop.f32.mrb[64].mxu1  ;;  %3637 = vadd.xlane.f32.xlu0 %v3636_v41  ;;  %v3437_v41 = vsub.f32 %v10433_v42, %v3269_v57  ;;  %v3351_v10 = vsel %vm3233_vm4, %v10647_v47, -inf  ;;  %v3510_v9 = vmul.f32 1.442695, %v3436_v33  ;;  %v10665_v50 = vpop.eup %8923 }
 0x3d3   : > { %v7869_v32 = vpop.f32.mrb[65].mxu1  ;;  %12106 = vst [vmem:[#allocation51_spill] sm:$0xff] %v10665_v50  ;;  %v3272_v33 = vpop.xlane.xlu0 %3271  ;;  %v3642_v29 = vsel %vm3233_vm4, %v10665_v50, 0.0 }
 0x3d4   : > { %v2759_v40 = vpop.f32.mrb[66].mxu1  ;;  %3640 = vadd.xlane.f32.xlu1 %v3639_v53  ;;  %v10659_v32 = vadd.f32 %v2712_v31, %v10329_v16  ;;  %v3512_v43 = vmul.f32 1.442695, %v3437_v41  ;;  %8927 = vpow2.f32 %v3510_v9 }
 0x3d5   : > { %v7870_v25 = vpop.f32.mrb[67].mxu1 }
 0x3d6   : > { %3349 = vmax.xlane.f32.xlu0 %v3348_v4  ;;  %v2803_v52 = vpop.f32.mrb[68].mxu0  ;;  %v3354_v25 = vsel %vm3233_vm4, %v10653_v14, -inf  ;;  %v3357_v31 = vsel %vm3233_vm4, %v10659_v32, -inf  ;;  %8929 = vpow2.f32 %v3512_v43 }
 0x3d7   : > { %v7875_v48 = vpop.f32.mrb[69].mxu0 }
 0x3d8   : > { %3352 = vmax.xlane.f32.xlu1 %v3351_v10  ;;  %v2806_v53 = vpop.f32.mrb[70].mxu0  ;;  %v10669_v48 = vpop.eup %8925  ;;  %v10672_v10 = vadd.f32 %v2756_v63, %v10326_v62 }
 0x3d9   : > { %v7876_v19 = vpop.f32.mrb[71].mxu0  ;;  %12107 = vst [vmem:[#allocation52_spill] sm:$0xff] %v10669_v48  ;;  %v3645_v9 = vsel %vm3233_vm4, %v10669_v48, 0.0 }
 0x3da   : > { %v2850_v42 = vpop.f32.mrb[68].mxu1  ;;  %3355 = vmax.xlane.f32.xlu0 %v3354_v25  ;;  %12108 = vst [vmem:[#allocation53_spill] sm:$0xff] %v10672_v10  ;;  %v3275_v25 = vpop.xlane.xlu1 %3274  ;;  %v3360_v43 = vsel %vm3233_vm4, %v10672_v10, -inf }
 0x3db   : > { %v7881_v57 = vpop.f32.mrb[69].mxu1 }
 0x3dc   : > { %v2853_v4 = vpop.f32.mrb[70].mxu1  ;;  %3358 = vmax.xlane.f32.xlu1 %v3357_v31  ;;  %v10677_v57 = vadd.f32 %v2759_v40, %v10329_v16  ;;  %v3438_v31 = vsub.f32 %v10440_v58, %v3272_v33  ;;  %v10689_v40 = vadd.f32 %v2806_v53, %v10329_v16 }
 0x3dd   : > { %v7882_v19 = vpop.f32.mrb[71].mxu1 }
 0x3de   : > { %3643 = vadd.xlane.f32.xlu0 %v3642_v29  ;;  %v2897_v41 = vpop.f32.mrb[72].mxu0  ;;  %12109 = vst [vmem:[#allocation54_spill] sm:$0xff] %v10677_v57  ;;  %v10683_v19 = vadd.f32 %v2803_v52, %v10326_v62  ;;  %v3439_v29 = vsub.f32 %v10443_v30, %v3275_v25  ;;  %12111 = vst [vmem:[#allocation56_spill] sm:$0xff] %v10689_v40  ;;  %v3363_v58 = vsel %vm3233_vm4, %v10677_v57, -inf  ;;  %v3514_v33 = vmul.f32 1.442695, %v3438_v31  ;;  %v10695_v48 = vpop.eup %8927 }
 0x3df   : > { %v7887_v27 = vpop.f32.mrb[73].mxu0  ;;  %12112 = vst [vmem:[#allocation57_spill] sm:$0xff] %v10695_v48  ;;  %v3369_v53 = vsel %vm3233_vm4, %v10689_v40, -inf }
 0x3e0   : > { %3646 = vadd.xlane.f32.xlu1 %v3645_v9  ;;  %v2900_v63 = vpop.f32.mrb[74].mxu0  ;;  %12110 = vst [vmem:[#allocation55_spill] sm:$0xff] %v10683_v19  ;;  %v3516_v10 = vmul.f32 1.442695, %v3439_v29  ;;  %8931 = vpow2.f32 %v3514_v33 }
 0x3e1   : > { %v7888_v7 = vpop.f32.mrb[75].mxu0 }
 0x3e2   : > { %v2944_v50 = vpop.f32.mrb[72].mxu1  ;;  %3361 = vmax.xlane.f32.xlu0 %v3360_v43  ;;  %v3366_v7 = vsel %vm3233_vm4, %v10683_v19, -inf  ;;  %v10699_v43 = vpop.eup %8929  ;;  %v3648_v19 = vsel %vm3233_vm4, %v10695_v48, 0.0  ;;  %8933 = vpow2.f32 %v3516_v10 }
 0x3e3   : > { %v7893_v27 = vpop.f32.mrb[73].mxu1  ;;  %12113 = vst [vmem:[#allocation58_spill] sm:$0xff] %v10699_v43  ;;  %v3651_v33 = vsel %vm3233_vm4, %v10699_v43, 0.0 }
 0x3e4   : > { %v2947_v9 = vpop.f32.mrb[74].mxu1  ;;  %3364 = vmax.xlane.f32.xlu1 %v3363_v58  ;;  %v3278_v27 = vpop.xlane.xlu0 %3277  ;;  %v10702_v58 = vadd.f32 %v2850_v42, %v10326_v62  ;;  %v10713_v42 = vadd.f32 %v2897_v41, %v10326_v62 }
 0x3e5   : > { %v7894_v52 = vpop.f32.mrb[75].mxu1 }
 0x3e6   : > { %3367 = vmax.xlane.f32.xlu0 %v3366_v7  ;;  %v2991_v30 = vpop.f32.mrb[76].mxu0  ;;  %12114 = vst [vmem:[#allocation59_spill] sm:$0xff] %v10702_v58  ;;  %v3281_v7 = vpop.xlane.xlu1 %3280  ;;  %v3372_v10 = vsel %vm3233_vm4, %v10702_v58, -inf }
 0x3e7   : > { %v7899_v25 = vpop.f32.mrb[77].mxu0 }
 0x3e8   : > { %3370 = vmax.xlane.f32.xlu1 %v3369_v53  ;;  %v2994_v31 = vpop.f32.mrb[78].mxu0  ;;  %v10707_v25 = vadd.f32 %v2853_v4, %v10329_v16  ;;  %v3440_v53 = vsub.f32 %v10450_v0, %v3278_v27 }
 0x3e9   : > { %v7900_v52 = vpop.f32.mrb[79].mxu0 }
 0x3ea   : > { %v3038_v29 = vpop.f32.mrb[76].mxu1  ;;  %3649 = vadd.xlane.f32.xlu0 %v3648_v19  ;;  %v3441_v19 = vsub.f32 %v10453_v34, %v3281_v7  ;;  %v3375_v0 = vsel %vm3233_vm4, %v10707_v25, -inf  ;;  %v3518_v27 = vmul.f32 1.442695, %v3440_v53  ;;  %v10725_v43 = vpop.eup %8931  ;;  %v10732_v53 = vadd.f32 %v2944_v50, %v10326_v62 }
 0x3eb   : > { %v7905_v40 = vpop.f32.mrb[77].mxu1 }
 0x3ec   : > { %v3041_v57 = vpop.f32.mrb[78].mxu1  ;;  %3652 = vadd.xlane.f32.xlu1 %v3651_v33  ;;  %v10719_v40 = vadd.f32 %v2900_v63, %v10329_v16  ;;  %v3520_v58 = vmul.f32 1.442695, %v3441_v19  ;;  %8935 = vpow2.f32 %v3518_v27 }
 0x3ed   : > { %v7906_v52 = vpop.f32.mrb[79].mxu1 }
 0x3ee   : > { %3373 = vmax.xlane.f32.xlu0 %v3372_v10  ;;  %v3085_v4 = vpop.f32.mrb[80].mxu0  ;;  %12115 = vst [vmem:[#allocation60_spill] sm:$0xff] %v10719_v40  ;;  %v3378_v52 = vsel %vm3233_vm4, %v10713_v42, -inf  ;;  %v3381_v63 = vsel %vm3233_vm4, %v10719_v40, -inf  ;;  %8937 = vpow2.f32 %v3520_v58  ;;  %v10747_v58 = vadd.f32 %v2994_v31, %v10329_v16 }
 0x3ef   : > { %v7911_v48 = vpop.f32.mrb[81].mxu0 }
 0x3f0   : > { %3376 = vmax.xlane.f32.xlu1 %v3375_v0  ;;  %v3088_v33 = vpop.f32.mrb[82].mxu0  ;;  %v10729_v48 = vpop.eup %8933 }
 0x3f1   : > { %v7912_v41 = vpop.f32.mrb[83].mxu0  ;;  %12116 = vst [vmem:[#allocation61_spill] sm:$0xff] %v10729_v48  ;;  %v3657_v40 = vsel %vm3233_vm4, %v10729_v48, 0.0 }
 0x3f2   : > { %v3132_v34 = vpop.f32.mrb[80].mxu1  ;;  %3379 = vmax.xlane.f32.xlu0 %v3378_v52  ;;  %v3654_v41 = vsel %vm3233_vm4, %v10725_v43, 0.0  ;;  %v10737_v52 = vadd.f32 %v2947_v9, %v10329_v16 }
 0x3f3   : > { %v7917_v7 = vpop.f32.mrb[81].mxu1 }
 0x3f4   : > { %v3135_v10 = vpop.f32.mrb[82].mxu1  ;;  %3382 = vmax.xlane.f32.xlu1 %v3381_v63  ;;  %v10742_v63 = vadd.f32 %v2991_v30, %v10326_v62  ;;  %v3387_v9 = vsel %vm3233_vm4, %v10737_v52, -inf  ;;  %v3393_v30 = vsel %vm3233_vm4, %v10747_v58, -inf }
 0x3f5   : > { %v7918_v0 = vpop.f32.mrb[83].mxu1 }
 0x3f6   : > { %3655 = vadd.xlane.f32.xlu0 %v3654_v41  ;;  %v3179_v19 = vpop.f32.mrb[84].mxu0  ;;  %v3384_v0 = vsel %vm3233_vm4, %v10732_v53, -inf  ;;  %v3390_v41 = vsel %vm3233_vm4, %v10742_v63, -inf }
 0x3f7   : > { %v7923_v7 = vpop.f32.mrb[85].mxu0 }
 0x3f8   : > { %3658 = vadd.xlane.f32.xlu1 %v3657_v40  ;;  %v3182_v27 = vpop.f32.mrb[86].mxu0  ;;  %v10753_v40 = vpop.eup %8935 }
 0x3f9   : > { %v7924_v50 = vpop.f32.mrb[87].mxu0  ;;  %12117 = vst [vmem:[#allocation62_spill] sm:$0xff] %v10753_v40  ;;  %v10757_v7 = vpop.eup %8937  ;;  %v3660_v31 = vsel %vm3233_vm4, %v10753_v40, 0.0 }
 0x3fa   : > { %3385 = vmax.xlane.f32.xlu0 %v3384_v0  ;;  %12118 = vst [vmem:[#allocation63_spill] sm:$0xff] %v10757_v7  ;;  %v10760_v50 = vadd.f32 %v3038_v29, %v10326_v62  ;;  %v10765_v0 = vadd.f32 %v3041_v57, %v10329_v16  ;;  %v10775_v29 = vadd.f32 %v3088_v33, %v10329_v16 }
 0x3fc   : > { %3388 = vmax.xlane.f32.xlu1 %v3387_v9  ;;  %12119 = vst [vmem:[#allocation64_spill] sm:$0xff] %v10760_v50  ;;  %v3663_v9 = vsel %vm3233_vm4, %v10757_v7, 0.0  ;;  %v3399_v57 = vsel %vm3233_vm4, %v10765_v0, -inf  ;;  %v10780_v7 = vadd.f32 %v3132_v34, %v10326_v62  ;;  %v3405_v33 = vsel %vm3233_vm4, %v10775_v29, -inf }
 0x3fd   : > { %v10795_v34 = vadd.f32 %v3135_v10, %v10329_v16 }
 0x3fe   : > { %3391 = vmax.xlane.f32.xlu0 %v3390_v41  ;;  %v10770_v41 = vadd.f32 %v3085_v4, %v10326_v62 }
 0x3ff   : > { %12121 = vst [vmem:[#allocation66_spill] sm:$0xff] %v10795_v34 }
 0x400   : > { %3394 = vmax.xlane.f32.xlu1 %v3393_v30  ;;  %v3396_v30 = vsel %vm3233_vm4, %v10760_v50, -inf  ;;  %v3402_v4 = vsel %vm3233_vm4, %v10770_v41, -inf  ;;  %v10785_v50 = vadd.f32 %v3179_v19, %v10326_v62 }
 0x402   : > { %3661 = vadd.xlane.f32.xlu0 %v3660_v31 }
 0x404   : > { %3664 = vadd.xlane.f32.xlu1 %v3663_v9 }
 0x406   : > { %v3226_v48 = vpop.f32.mrb[84].mxu1  ;;  %3397 = vmax.xlane.f32.xlu0 %v3396_v30  ;;  %v3408_v30 = vsel %vm3233_vm4, %v10780_v7, -inf }
 0x407   : > { %v7929_v40 = vpop.f32.mrb[85].mxu1 }
 0x408   : > { %v3229_v31 = vpop.f32.mrb[86].mxu1  ;;  %3400 = vmax.xlane.f32.xlu1 %v3399_v57  ;;  %v10790_v40 = vadd.f32 %v3226_v48, %v10326_v62  ;;  %v3414_v57 = vsel %vm3233_vm4, %v10785_v50, -inf  ;;  %v3411_v48 = vsel %vm3233_vm4, %v10795_v34, -inf }
 0x409   : > { %v7930_v9 = vpop.f32.mrb[87].mxu1 }
 0x40a   : > { %3403 = vmax.xlane.f32.xlu0 %v3402_v4  ;;  %12120 = vst [vmem:[#allocation65_spill] sm:$0xff] %v10790_v40  ;;  %v3420_v19 = vsel %vm3233_vm4, %v10790_v40, -inf  ;;  %v10802_v9 = vadd.f32 %v3182_v27, %v10329_v16 }
 0x40c   : > { %3406 = vmax.xlane.f32.xlu1 %v3405_v33 }
 0x40e   : > { %3409 = vmax.xlane.f32.xlu0 %v3408_v30 }
 0x410   : > { %3415 = vmax.xlane.f32.xlu1 %v3414_v57  ;;  %v10809_v57 = vadd.f32 %v3229_v31, %v10329_v16 }
 0x412   : > { %3421 = vmax.xlane.f32.xlu0 %v3420_v19  ;;  %v3417_v19 = vsel %vm3233_vm4, %v10802_v9, -inf  ;;  %v3423_v34 = vsel %vm3233_vm4, %v10809_v57, -inf }
 0x413   : > { %v3284_v62 = vpop.xlane.xlu0 %3283 }
 0x414   : > { %v3442_v4 = vsub.f32 %v10478_v8, %v3284_v62  ;;  %3412 = vmax.xlane.f32.xlu1 %v3411_v48 }
 0x415   : > { %v3287_v10 = vpop.xlane.xlu1 %3286 }
 0x416   : > { %v3522_v33 = vmul.f32 1.442695, %v3442_v4  ;;  %v3443_v30 = vsub.f32 %v10481_v44, %v3287_v10 }
 0x418   : > { %8939 = vpow2.f32 %v3522_v33  ;;  %v3524_v27 = vmul.f32 1.442695, %v3443_v30  ;;  %3418 = vmax.xlane.f32.xlu1 %v3417_v19 }
 0x41a   : > { %8941 = vpow2.f32 %v3524_v27 }
 0x41b   : > { %v3290_v40 = vpop.xlane.xlu0 %3289 }
 0x41c   : > { %v3444_v8 = vsub.f32 %v10492_v36, %v3290_v40  ;;  %3424 = vmax.xlane.f32.xlu1 %v3423_v34 }
 0x41d   : > { %v3293_v62 = vpop.xlane.xlu1 %3292 }
 0x41e   : > { %v3526_v48 = vmul.f32 1.442695, %v3444_v8  ;;  %v3445_v44 = vsub.f32 %v10497_v12, %v3293_v62 }
 0x420   : > { %8943 = vpow2.f32 %v3526_v48  ;;  %v3528_v16 = vmul.f32 1.442695, %v3445_v44 }
 0x422   : > { %v10817_v31 = vpop.eup %8939  ;;  %8945 = vpow2.f32 %v3528_v16 }
 0x423   : > { %v3296_v4 = vpop.xlane.xlu0 %3295  ;;  %v3666_v10 = vsel %vm3233_vm4, %v10817_v31, 0.0 }
 0x424   : > { %v10821_v33 = vpop.eup %8941  ;;  %v3446_v30 = vsub.f32 %v10508_v20, %v3296_v4  ;;  %3667 = vadd.xlane.f32.xlu0 %v3666_v10 }
 0x425   : > { %v3299_v36 = vpop.xlane.xlu1 %3298  ;;  %v3669_v40 = vsel %vm3233_vm4, %v10821_v33, 0.0 }
 0x426   : > { %v3530_v34 = vmul.f32 1.442695, %v3446_v30  ;;  %v3447_v12 = vsub.f32 %v10513_v46, %v3299_v36  ;;  %3670 = vadd.xlane.f32.xlu1 %v3669_v40 }
 0x428   : > { %8947 = vpow2.f32 %v3530_v34  ;;  %v3532_v19 = vmul.f32 1.442695, %v3447_v12 }
 0x42a   : > { %v10827_v27 = vpop.eup %8943  ;;  %8949 = vpow2.f32 %v3532_v19 }
 0x42b   : > { %v3302_v8 = vpop.xlane.xlu0 %3301  ;;  %v3672_v62 = vsel %vm3233_vm4, %v10827_v27, 0.0 }
 0x42c   : > { %v10831_v48 = vpop.eup %8945  ;;  %v3448_v20 = vsub.f32 %v10524_v55, %v3302_v8  ;;  %3673 = vadd.xlane.f32.xlu0 %v3672_v62 }
 0x42d   : > { %v3305_v44 = vpop.xlane.xlu1 %3304  ;;  %v3675_v16 = vsel %vm3233_vm4, %v10831_v48, 0.0 }
 0x42e   : > { %v3534_v46 = vmul.f32 1.442695, %v3448_v20  ;;  %v3449_v4 = vsub.f32 %v10528_v11, %v3305_v44  ;;  %3676 = vadd.xlane.f32.xlu1 %v3675_v16 }
 0x430   : > { %8951 = vpow2.f32 %v3534_v46  ;;  %v3536_v10 = vmul.f32 1.442695, %v3449_v4 }
 0x432   : > { %v10837_v30 = vpop.eup %8947  ;;  %8953 = vpow2.f32 %v3536_v10 }
 0x433   : > { %v3308_v36 = vpop.xlane.xlu0 %3307  ;;  %v3678_v40 = vsel %vm3233_vm4, %v10837_v30, 0.0 }
 0x434   : > { %v10841_v34 = vpop.eup %8949  ;;  %v3450_v55 = vsub.f32 %v10536_v23, %v3308_v36  ;;  %3679 = vadd.xlane.f32.xlu0 %v3678_v40 }
 0x435   : > { %v3311_v12 = vpop.xlane.xlu1 %3310  ;;  %v3681_v19 = vsel %vm3233_vm4, %v10841_v34, 0.0 }
 0x436   : > { %v3538_v11 = vmul.f32 1.442695, %v3450_v55  ;;  %v3451_v8 = vsub.f32 %v10540_v28, %v3311_v12  ;;  %3682 = vadd.xlane.f32.xlu1 %v3681_v19 }
 0x438   : > { %8955 = vpow2.f32 %v3538_v11  ;;  %v3540_v62 = vmul.f32 1.442695, %v3451_v8 }
 0x43a   : > { %v10847_v20 = vpop.eup %8951  ;;  %8957 = vpow2.f32 %v3540_v62 }
 0x43b   : > { %v3314_v44 = vpop.xlane.xlu0 %3313  ;;  %v3684_v16 = vsel %vm3233_vm4, %v10847_v20, 0.0 }
 0x43c   : > { %v10851_v46 = vpop.eup %8953  ;;  %v3452_v23 = vsub.f32 %v10548_v59, %v3314_v44  ;;  %3685 = vadd.xlane.f32.xlu0 %v3684_v16 }
 0x43d   : > { %v3317_v4 = vpop.xlane.xlu1 %3316  ;;  %v3687_v10 = vsel %vm3233_vm4, %v10851_v46, 0.0 }
 0x43e   : > { %v3542_v28 = vmul.f32 1.442695, %v3452_v23  ;;  %v3453_v36 = vsub.f32 %v10551_v15, %v3317_v4  ;;  %3688 = vadd.xlane.f32.xlu1 %v3687_v10 }
 0x43f   : > { %v3620_v40 = vpop.xlane.xlu0 %3619 }
 0x440   : > { %8959 = vpow2.f32 %v3542_v28  ;;  %v3544_v55 = vmul.f32 1.442695, %v3453_v36 }
 0x441   : > { %8961 = vrcp.f32 %v3620_v40  ;;  %v3623_v12 = vpop.xlane.xlu1 %3622 }
 0x442   : > { %v10857_v19 = vpop.eup %8955  ;;  %8963 = vpow2.f32 %v3544_v55 }
 0x443   : > { %8965 = vrcp.f32 %v3623_v12  ;;  %v3320_v11 = vpop.xlane.xlu0 %3319  ;;  %v3690_v59 = vsel %vm3233_vm4, %v10857_v19, 0.0 }
 0x444   : > { %v10861_v8 = vpop.eup %8957  ;;  %v3454_v62 = vsub.f32 %v10566_v6, %v3320_v11  ;;  %3691 = vadd.xlane.f32.xlu0 %v3690_v59 }
 0x445   : > { %v3323_v15 = vpop.xlane.xlu1 %3322  ;;  %v3693_v44 = vsel %vm3233_vm4, %v10861_v8, 0.0 }
 0x446   : > { %v3546_v16 = vmul.f32 1.442695, %v3454_v62  ;;  %v3455_v23 = vsub.f32 %v10571_v18, %v3323_v15  ;;  %3694 = vadd.xlane.f32.xlu1 %v3693_v44 }
 0x447   : > { %v3626_v4 = vpop.xlane.xlu0 %3625 }
 0x448   : > { %8967 = vpow2.f32 %v3546_v16  ;;  %v3548_v10 = vmul.f32 1.442695, %v3455_v23 }
 0x449   : > { %8969 = vrcp.f32 %v3626_v4  ;;  %v3629_v28 = vpop.xlane.xlu1 %3628 }
 0x44a   : > { %v10867_v36 = vpop.eup %8959  ;;  %8971 = vpow2.f32 %v3548_v10 }
 0x44b   : > { %12122 = vst [vmem:[#allocation67_spill] sm:$0xff] %v10867_v36  ;;  %v8962_v40 = vpop.eup %8961  ;;  %8973 = vrcp.f32 %v3629_v28  ;;  %v3326_v6 = vpop.xlane.xlu0 %3325  ;;  %v3696_v55 = vsel %vm3233_vm4, %v10867_v36, 0.0 }
 0x44c   : > { %v10871_v12 = vpop.eup %8963  ;;  %v3456_v11 = vsub.f32 %v10584_v21, %v3326_v6  ;;  %3697 = vadd.xlane.f32.xlu0 %v3696_v55  ;;  %v3874_v15 = vmul.f32 %v8962_v40, %v10555_v56 }
 0x44d   : > { %v8966_v18 = vpop.eup %8965  ;;  %v3329_v59 = vpop.xlane.xlu1 %3328  ;;  %v3699_v62 = vsel %vm3233_vm4, %v10871_v12, 0.0 }
 0x44e   : > { %v3875_v44 = vmul.f32 %v8966_v18, %v10559_v3  ;;  %v3550_v16 = vmul.f32 1.442695, %v3456_v11  ;;  %v3457_v23 = vsub.f32 %v10590_v45, %v3329_v59  ;;  %3700 = vadd.xlane.f32.xlu1 %v3699_v62  ;;  %v12123_v45 = vpack.c.bf16 %v10031_v5, %v10021_v13 }
 0x44f   : > { %v3332_v4 = vpop.xlane.xlu0 %3331 }
 0x450   : > { %8975 = vpow2.f32 %v3550_v16  ;;  %v3552_v10 = vmul.f32 1.442695, %v3457_v23  ;;  %v3458_v28 = vsub.f32 %v10596_v54, %v3332_v4  ;;  %v3938_v21 = vpack.c.bf16 %v3875_v44, %v3874_v15 }
 0x451   : > { %v3335_v6 = vpop.xlane.xlu1 %3334  ;;  %v12124_v54 = vmov 0.0  }
 0x452   : > { %v10880_v55 = vpop.eup %8967  ;;  %8977 = vpow2.f32 %v3552_v10  ;;  %v3554_v36 = vmul.f32 1.442695, %v3458_v28  ;;  %7934 = vmatmul.mubr.msk.bf16.vlgmr.msra.gmra.mrb[88].mxu0 %vm3233_vm4, %v3938_v21  ;;  %v3459_v56 = vsub.f32 %v10601_v38, %v3335_v6 }
 0x453   : > { %v8970_v3 = vpop.eup %8969  ;;  %7944 = vmatpush3.bf16.msra.mxu0 %v12123_v45  ;;  %v3632_v40 = vpop.xlane.xlu0 %3631  ;;  %v3702_v11 = vsel %vm3233_vm4, %v10880_v55, 0.0  ;;  %7945 = vmatprep.mubr.msk.bf16.mxu0 %vm9444_vm0, %v12124_v54 }
 0x454   : > { %v10891_v18 = vpop.eup %8971  ;;  %8979 = vpow2.f32 %v3554_v36  ;;  %v3556_v59 = vmul.f32 1.442695, %v3459_v56  ;;  %3703 = vadd.xlane.f32.xlu1 %v3702_v11  ;;  %7955 = vmatprep.subr.bf16.mxu0 %v12124_v54  ;;  %v3876_v13 = vmul.f32 %v8970_v3, %v10575_v22 }
 0x455   : > { %v8974_v38 = vpop.eup %8973  ;;  %8981 = vrcp.f32 %v3632_v40  ;;  %v3635_v62 = vpop.xlane.xlu1 %3634  ;;  %v3705_v44 = vsel %vm3233_vm4, %v10891_v18, 0.0 }
 0x456   : > { %v3877_v5 = vmul.f32 %v8974_v38, %v10579_v35  ;;  %8983 = vpow2.f32 %v3556_v59  ;;  %v12125_v35 = vpack.c.bf16 %v10023_v24, %v10018_v39 }
 0x457   : > { %8985 = vrcp.f32 %v3635_v62  ;;  %v3338_v15 = vpop.xlane.xlu0 %3337 }
 0x458   : > { %v3460_v16 = vsub.f32 %v10612_v2, %v3338_v15  ;;  %3706 = vadd.xlane.f32.xlu1 %v3705_v44  ;;  %v3939_v36 = vpack.c.bf16 %v3877_v5, %v3876_v13 }
 0x459   : > { %v3341_v23 = vpop.xlane.xlu1 %3340 }
 0x45a   : > { %v10899_v4 = vpop.eup %8975  ;;  %v3558_v10 = vmul.f32 1.442695, %v3460_v16  ;;  %7940 = vmatmul.mubr.msk.bf16.vlgmr.msra.gmra.mrb[88].mxu1 %vm3233_vm4, %v3939_v36  ;;  %v3461_v22 = vsub.f32 %v10617_v49, %v3341_v23 }
 0x45b   : > { %7950 = vmatpush3.bf16.msra.mxu1 %v12125_v35  ;;  %v3344_v28 = vpop.xlane.xlu0 %3343  ;;  %v3708_v21 = vsel %vm3233_vm4, %v10899_v4, 0.0  ;;  %7951 = vmatprep.mubr.msk.bf16.mxu1 %vm9444_vm0, %v12124_v54 }
 0x45c   : > { %v10910_v2 = vpop.eup %8977  ;;  %8987 = vpow2.f32 %v3558_v10  ;;  %v3462_v6 = vsub.f32 %v10623_v60, %v3344_v28  ;;  %3709 = vadd.xlane.f32.xlu0 %v3708_v21  ;;  %7961 = vmatprep.subr.bf16.mxu1 %v12124_v54  ;;  %v3560_v39 = vmul.f32 1.442695, %v3461_v22 }
 0x45d   : > { %v3347_v49 = vpop.xlane.xlu1 %3346  ;;  %v3711_v11 = vsel %vm3233_vm4, %v10910_v2, 0.0 }
 0x45e   : > { %v10914_v56 = vpop.eup %8979  ;;  %v3562_v24 = vmul.f32 1.442695, %v3462_v6  ;;  %v3463_v3 = vsub.f32 %v10629_v37, %v3347_v49 }
 0x45f   : > { %v8982_v45 = vpop.eup %8981  ;;  %v3638_v40 = vpop.xlane.xlu0 %3637  ;;  %v3714_v59 = vsel %vm3233_vm4, %v10914_v56, 0.0 }
 0x460   : > { %v10921_v38 = vpop.eup %8983  ;;  %8989 = vpow2.f32 %v3562_v24  ;;  %3712 = vadd.xlane.f32.xlu0 %v3711_v11  ;;  %3715 = vadd.xlane.f32.xlu1 %v3714_v59  ;;  %v3878_v13 = vmul.f32 %v8982_v45, %v10605_v17  ;;  %v3564_v5 = vmul.f32 1.442695, %v3463_v3  ;;  %v12126_v17 = vpack.c.bf16 %v10079_v1, %v10067_v26  ;;  %v12127_v11 = vld [vmem:[#allocation49_spill] sm:$0xff] }
 0x461   : > { %v8986_v60 = vpop.eup %8985  ;;  %8991 = vrcp.f32 %v3638_v40  ;;  %v3641_v62 = vpop.xlane.xlu1 %3640  ;;  %v3717_v44 = vsel %vm3233_vm4, %v10921_v38, 0.0 }
 0x462   : > { %v3879_v37 = vmul.f32 %v8986_v60, %v10609_v51  ;;  %8993 = vpow2.f32 %v3560_v39  ;;  %v12128_v60 = vld [vmem:[#allocation50_spill] sm:$0xff] }
 0x463   : > { %8995 = vrcp.f32 %v3641_v62  ;;  %v3350_v15 = vpop.xlane.xlu0 %3349 }
 0x464   : > { %v3464_v16 = vsub.f32 %v10642_v61, %v3350_v15  ;;  %3718 = vadd.xlane.f32.xlu1 %v3717_v44  ;;  %v3940_v36 = vpack.c.bf16 %v3879_v37, %v3878_v13  ;;  %8997 = vpow2.f32 %v3564_v5  ;;  %v12129_v5 = vld [vmem:[#allocation53_spill] sm:$0xff] }
 0x465   : > { %v3353_v23 = vpop.xlane.xlu1 %3352 }
 0x466   : > { %v10928_v10 = vpop.eup %8987  ;;  %v3566_v22 = vmul.f32 1.442695, %v3464_v16  ;;  %7946 = vmatmul.mubr.msk.bf16.vlgmr.msra.gmra.mrb[92].mxu0 %vm3233_vm4, %v3940_v36  ;;  %v3465_v51 = vsub.f32 %v10647_v47, %v3353_v23  ;;  %v12130_v23 = vld [vmem:[#allocation54_spill] sm:$0xff] }
 0x467   : > { %7956 = vmatpush3.bf16.msra.mxu0 %v12126_v17  ;;  %v3356_v35 = vpop.xlane.xlu0 %3355  ;;  %v3720_v28 = vsel %vm3233_vm4, %v10928_v10, 0.0  ;;  %7957 = vmatprep.mubr.msk.bf16.mxu0 %vm9444_vm0, %v12124_v54  ;;  %v12131_v17 = vld [vmem:[#allocation20_spill] sm:$0xff] }
 0x468   : > { %v3568_v61 = vmul.f32 1.442695, %v3465_v51  ;;  %v3466_v21 = vsub.f32 %v10653_v14, %v3356_v35  ;;  %3721 = vadd.xlane.f32.xlu0 %v3720_v28  ;;  %7967 = vmatprep.subr.bf16.mxu0 %v12124_v54  ;;  %8999 = vpow2.f32 %v3566_v22  ;;  %v12132_v35 = vld [vmem:[#allocation19_spill] sm:$0xff] }
 0x469   : > { %v3359_v6 = vpop.xlane.xlu1 %3358  ;;  %v12133_v28 = vpack.c.bf16 %v12131_v17, %v12132_v35 }
 0x46a   : > { %v10941_v47 = vpop.eup %8989  ;;  %9001 = vpow2.f32 %v3568_v61  ;;  %v3570_v26 = vmul.f32 1.442695, %v3466_v21  ;;  %v3467_v1 = vsub.f32 %v10659_v32, %v3359_v6 }
 0x46b   : > { %v8992_v49 = vpop.eup %8991  ;;  %v3644_v39 = vpop.xlane.xlu0 %3643  ;;  %v3726_v24 = vsel %vm3233_vm4, %v10941_v47, 0.0 }
 0x46c   : > { %v10946_v3 = vpop.eup %8993  ;;  %9003 = vpow2.f32 %v3570_v26  ;;  %v3572_v14 = vmul.f32 1.442695, %v3467_v1  ;;  %3727 = vadd.xlane.f32.xlu1 %v3726_v24  ;;  %v3880_v59 = vmul.f32 %v8992_v49, %v12127_v11  ;;  %v12134_v1 = vld [vmem:[#allocation55_spill] sm:$0xff] }
 0x46d   : > { %v8996_v45 = vpop.eup %8995  ;;  %9005 = vrcp.f32 %v3644_v39  ;;  %v3647_v40 = vpop.xlane.xlu1 %3646  ;;  %v3723_v13 = vsel %vm3233_vm4, %v10946_v3, 0.0 }
 0x46e   : > { %v3881_v62 = vmul.f32 %v8996_v45, %v12128_v60  ;;  %9007 = vpow2.f32 %v3572_v14  ;;  %v10952_v37 = vpop.eup %8997 }
 0x46f   : > { %9009 = vrcp.f32 %v3647_v40  ;;  %v3362_v32 = vpop.xlane.xlu0 %3361  ;;  %v3729_v21 = vsel %vm3233_vm4, %v10952_v37, 0.0  ;;  %v12135_v40 = vld [vmem:[#allocation56_spill] sm:$0xff] }
 0x470   : > { %v3468_v15 = vsub.f32 %v12129_v5, %v3362_v32  ;;  %3724 = vadd.xlane.f32.xlu1 %v3723_v13  ;;  %v3941_v44 = vpack.c.bf16 %v3881_v62, %v3880_v59 }
 0x471   : > { %v3365_v16 = vpop.xlane.xlu1 %3364 }
 0x472   : > { %v3574_v36 = vmul.f32 1.442695, %v3468_v15  ;;  %7952 = vmatmul.mubr.msk.bf16.vlgmr.msra.gmra.mrb[92].mxu1 %vm3233_vm4, %v3941_v44  ;;  %v3469_v22 = vsub.f32 %v12130_v23, %v3365_v16  ;;  %v10957_v51 = vpop.eup %8999  ;;  %v12136_v16 = vld [vmem:[#allocation51_spill] sm:$0xff]  ;;  %v12137_v23 = vld [vmem:[#allocation52_spill] sm:$0xff] }
 0x473   : > { %7962 = vmatpush3.bf16.msra.mxu1 %v12133_v28  ;;  %v3368_v61 = vpop.xlane.xlu0 %3367  ;;  %7963 = vmatprep.mubr.msk.bf16.mxu1 %vm9444_vm0, %v12124_v54  ;;  %v3732_v62 = vsel %vm3233_vm4, %v10957_v51, 0.0  ;;  %v12138_v28 = vld [vmem:[#allocation59_spill] sm:$0xff] }
 0x474   : > { %v10966_v6 = vpop.eup %9001  ;;  %9011 = vpow2.f32 %v3574_v36  ;;  %v3576_v26 = vmul.f32 1.442695, %v3469_v22  ;;  %v3470_v49 = vsub.f32 %v12134_v1, %v3368_v61  ;;  %3730 = vadd.xlane.f32.xlu1 %v3729_v21  ;;  %7973 = vmatprep.subr.bf16.mxu1 %v12124_v54 }
 0x475   : > { %v3371_v39 = vpop.xlane.xlu1 %3370  ;;  %v3735_v24 = vsel %vm3233_vm4, %v10966_v6, 0.0 }
 0x476   : > { %v10972_v14 = vpop.eup %9003  ;;  %9013 = vpow2.f32 %v3576_v26  ;;  %v3578_v45 = vmul.f32 1.442695, %v3470_v49  ;;  %v3471_v11 = vsub.f32 %v12135_v40, %v3371_v39  ;;  %3736 = vadd.xlane.f32.xlu0 %v3735_v24  ;;  %v12139_v24 = vld [vmem:[#allocation27_spill] sm:$0xff] }
 0x477   : > { %v9006_v59 = vpop.eup %9005  ;;  %v3650_v60 = vpop.xlane.xlu0 %3649  ;;  %v3738_v35 = vsel %vm3233_vm4, %v10972_v14, 0.0 }
 0x478   : > { %v10977_v32 = vpop.eup %9007  ;;  %9015 = vpow2.f32 %v3578_v45  ;;  %v3580_v13 = vmul.f32 1.442695, %v3471_v11  ;;  %3733 = vadd.xlane.f32.xlu1 %v3732_v62  ;;  %v3882_v36 = vmul.f32 %v9006_v59, %v12136_v16  ;;  %v12140_v45 = vld [vmem:[#allocation24_spill] sm:$0xff] }
 0x479   : > { %v9010_v5 = vpop.eup %9009  ;;  %9017 = vrcp.f32 %v3650_v60  ;;  %v3653_v15 = vpop.xlane.xlu1 %3652  ;;  %v3741_v44 = vsel %vm3233_vm4, %v10977_v32, 0.0  ;;  %v12141_v40 = vpack.c.bf16 %v12139_v24, %v12140_v45  ;;  %v12142_v16 = vld [vmem:[#allocation60_spill] sm:$0xff] }
 0x47a   : > { %v3883_v22 = vmul.f32 %v9010_v5, %v12137_v23  ;;  %9019 = vpow2.f32 %v3580_v13  ;;  %3742 = vadd.xlane.f32.xlu0 %v3741_v44 }
 0x47b   : > { %9021 = vrcp.f32 %v3653_v15  ;;  %v3374_v17 = vpop.xlane.xlu0 %3373 }
 0x47c   : > { %v3472_v61 = vsub.f32 %v12138_v28, %v3374_v17  ;;  %3739 = vadd.xlane.f32.xlu1 %v3738_v35  ;;  %v3942_v21 = vpack.c.bf16 %v3883_v22, %v3882_v36 }
 0x47d   : > { %v3377_v26 = vpop.xlane.xlu1 %3376 }
 0x47e   : > { %v10986_v1 = vpop.eup %9011  ;;  %v3582_v49 = vmul.f32 1.442695, %v3472_v61  ;;  %7958 = vmatmul.mubr.msk.bf16.vlgmr.msra.gmra.mrb[96].mxu0 %vm3233_vm4, %v3942_v21  ;;  %v3473_v39 = vsub.f32 %v10707_v25, %v3377_v26  ;;  %v12143_v26 = vld [vmem:[#allocation57_spill] sm:$0xff] }
 0x47f   : > { %7968 = vmatpush3.bf16.msra.mxu0 %v12141_v40  ;;  %v3380_v11 = vpop.xlane.xlu0 %3379  ;;  %v3744_v59 = vsel %vm3233_vm4, %v10986_v1, 0.0  ;;  %7969 = vmatprep.mubr.msk.bf16.mxu0 %vm9444_vm0, %v12124_v54 }
 0x480   : > { %v10997_v60 = vpop.eup %9013  ;;  %9023 = vpow2.f32 %v3582_v49  ;;  %v3584_v62 = vmul.f32 1.442695, %v3473_v39  ;;  %v3474_v13 = vsub.f32 %v10713_v42, %v3380_v11  ;;  %3745 = vadd.xlane.f32.xlu1 %v3744_v59  ;;  %7979 = vmatprep.subr.bf16.mxu0 %v12124_v54  ;;  %v12144_v39 = vld [vmem:[#allocation58_spill] sm:$0xff] }
 0x481   : > { %v3383_v25 = vpop.xlane.xlu1 %3382  ;;  %v3747_v5 = vsel %vm3233_vm4, %v10997_v60, 0.0 }
 0x482   : > { %v11003_v15 = vpop.eup %9015  ;;  %9025 = vpow2.f32 %v3584_v62  ;;  %v3586_v44 = vmul.f32 1.442695, %v3474_v13  ;;  %v3475_v36 = vsub.f32 %v12142_v16, %v3383_v25  ;;  %3748 = vadd.xlane.f32.xlu0 %v3747_v5  ;;  %v12145_v5 = vld [vmem:[#allocation25_spill] sm:$0xff] }
 0x483   : > { %v9018_v23 = vpop.eup %9017  ;;  %v3656_v22 = vpop.xlane.xlu0 %3655  ;;  %v3750_v17 = vsel %vm3233_vm4, %v11003_v15, 0.0 }
 0x484   : > { %v11008_v42 = vpop.eup %9019  ;;  %9027 = vpow2.f32 %v3586_v44  ;;  %v3588_v35 = vmul.f32 1.442695, %v3475_v36  ;;  %3751 = vadd.xlane.f32.xlu1 %v3750_v17  ;;  %v3884_v49 = vmul.f32 %v9018_v23, %v12143_v26  ;;  %v12146_v44 = vld [vmem:[#allocation23_spill] sm:$0xff] }
 0x485   : > { %v9022_v28 = vpop.eup %9021  ;;  %9029 = vrcp.f32 %v3656_v22  ;;  %v3659_v61 = vpop.xlane.xlu1 %3658  ;;  %v3753_v21 = vsel %vm3233_vm4, %v11008_v42, 0.0  ;;  %v12147_v16 = vpack.c.bf16 %v12145_v5, %v12146_v44  ;;  %v12149_v5 = vld [vmem:[#allocation61_spill] sm:$0xff] }
 0x486   : > { %v3885_v24 = vmul.f32 %v9022_v28, %v12144_v39  ;;  %9031 = vpow2.f32 %v3588_v35  ;;  %3754 = vadd.xlane.f32.xlu0 %v3753_v21 }
 0x487   : > { %9033 = vrcp.f32 %v3659_v61  ;;  %v3386_v45 = vpop.xlane.xlu0 %3385 }
 0x488   : > { %v3476_v40 = vsub.f32 %v10732_v53, %v3386_v45  ;;  %v3943_v11 = vpack.c.bf16 %v3885_v24, %v3884_v49 }
 0x489   : > { %v3389_v59 = vpop.xlane.xlu1 %3388 }
 0x48a   : > { %v11015_v62 = vpop.eup %9023  ;;  %v3590_v13 = vmul.f32 1.442695, %v3476_v40  ;;  %7964 = vmatmul.mubr.msk.bf16.vlgmr.msra.gmra.mrb[96].mxu1 %vm3233_vm4, %v3943_v11  ;;  %v3477_v25 = vsub.f32 %v10737_v52, %v3389_v59  ;;  %v12148_v40 = vld [vmem:[#allocation32_spill] sm:$0xff] }
 0x48b   : > { %7974 = vmatpush3.bf16.msra.mxu1 %v12147_v16  ;;  %v3392_v36 = vpop.xlane.xlu0 %3391  ;;  %v3756_v23 = vsel %vm3233_vm4, %v11015_v62, 0.0  ;;  %7975 = vmatprep.mubr.msk.bf16.mxu1 %vm9444_vm0, %v12124_v54  ;;  %v8514_v11 = vunpack.i.h.bf16 %v12148_v40  ;;  %v8513_v59 = vunpack.i.l.bf16 %v12148_v40 }
 0x48c   : > { %v11026_v53 = vpop.eup %9025  ;;  %9035 = vpow2.f32 %v3590_v13  ;;  %v3592_v22 = vmul.f32 1.442695, %v3477_v25  ;;  %v3478_v17 = vsub.f32 %v10742_v63, %v3392_v36  ;;  %3757 = vadd.xlane.f32.xlu1 %v3756_v23  ;;  %7985 = vmatprep.subr.bf16.mxu1 %v12124_v54  ;;  %v12150_v36 = vld [vmem:[#allocation64_spill] sm:$0xff] }
 0x48d   : > { %v3395_v52 = vpop.xlane.xlu1 %3394  ;;  %v3759_v35 = vsel %vm3233_vm4, %v11026_v53, 0.0 }
 0x48e   : > { %v11032_v28 = vpop.eup %9027  ;;  %9037 = vpow2.f32 %v3592_v22  ;;  %v3594_v61 = vmul.f32 1.442695, %v3478_v17  ;;  %v3479_v21 = vsub.f32 %v10747_v58, %v3395_v52  ;;  %3760 = vadd.xlane.f32.xlu0 %v3759_v35  ;;  %v1704_v17 = vpack.c.bf16 %v8514_v11, %v8513_v59 }
 0x48f   : > { %v9030_v26 = vpop.eup %9029  ;;  %v3662_v49 = vpop.xlane.xlu0 %3661  ;;  %v3762_v39 = vsel %vm3233_vm4, %v11032_v28, 0.0 }
 0x490   : > { %v11037_v63 = vpop.eup %9031  ;;  %9039 = vpow2.f32 %v3594_v61  ;;  %v3596_v24 = vmul.f32 1.442695, %v3479_v21  ;;  %3763 = vadd.xlane.f32.xlu1 %v3762_v39  ;;  %v3886_v25 = vmul.f32 %v9030_v26, %v10725_v43 }
 0x491   : > { %v9034_v45 = vpop.eup %9033  ;;  %9041 = vrcp.f32 %v3662_v49  ;;  %v3665_v13 = vpop.xlane.xlu1 %3664  ;;  %v3765_v58 = vsel %vm3233_vm4, %v11037_v63, 0.0 }
 0x492   : > { %v3887_v44 = vmul.f32 %v9034_v45, %v12149_v5  ;;  %9043 = vpow2.f32 %v3596_v24  ;;  %3766 = vadd.xlane.f32.xlu0 %v3765_v58 }
 0x493   : > { %9045 = vrcp.f32 %v3665_v13  ;;  %v3398_v16 = vpop.xlane.xlu0 %3397 }
 0x494   : > { %v3480_v23 = vsub.f32 %v12150_v36, %v3398_v16  ;;  %v3944_v22 = vpack.c.bf16 %v3887_v44, %v3886_v25  ;;  %v12151_v36 = vld [vmem:[#allocation30_spill] sm:$0xff] }
 0x495   : > { %v3401_v52 = vpop.xlane.xlu1 %3400 }
 0x496   : > { %v11046_v35 = vpop.eup %9035  ;;  %v3598_v61 = vmul.f32 1.442695, %v3480_v23  ;;  %7970 = vmatmul.mubr.msk.bf16.vlgmr.msra.gmra.mrb[100].mxu0 %vm3233_vm4, %v3944_v22  ;;  %v3481_v21 = vsub.f32 %v10765_v0, %v3401_v52  ;;  %v8519_v23 = vunpack.i.h.bf16 %v12151_v36  ;;  %v8518_v22 = vunpack.i.l.bf16 %v12151_v36 }
 0x497   : > { %7980 = vmatpush3.bf16.msra.mxu0 %v1704_v17  ;;  %v3404_v43 = vpop.xlane.xlu0 %3403  ;;  %v3768_v26 = vsel %vm3233_vm4, %v11046_v35, 0.0  ;;  %7981 = vmatprep.mubr.msk.bf16.mxu0 %vm9444_vm0, %v12124_v54  ;;  %v12152_v17 = vld [vmem:[#allocation62_spill] sm:$0xff] }
 0x498   : > { %v11054_v49 = vpop.eup %9037  ;;  %9047 = vpow2.f32 %v3598_v61  ;;  %v3600_v39 = vmul.f32 1.442695, %v3481_v21  ;;  %v3482_v24 = vsub.f32 %v10770_v41, %v3404_v43  ;;  %3769 = vadd.xlane.f32.xlu1 %v3768_v26  ;;  %7991 = vmatprep.subr.bf16.mxu0 %v12124_v54  ;;  %v12153_v21 = vld [vmem:[#allocation63_spill] sm:$0xff] }
 0x499   : > { %v3407_v45 = vpop.xlane.xlu1 %3406  ;;  %v3771_v0 = vsel %vm3233_vm4, %v11054_v49, 0.0 }
 0x49a   : > { %v11060_v40 = vpop.eup %9039  ;;  %9049 = vpow2.f32 %v3600_v39  ;;  %v3602_v11 = vmul.f32 1.442695, %v3482_v24  ;;  %v3483_v59 = vsub.f32 %v10775_v29, %v3407_v45  ;;  %3772 = vadd.xlane.f32.xlu0 %v3771_v0  ;;  %v1705_v45 = vpack.c.bf16 %v8519_v23, %v8518_v22 }
 0x49b   : > { %v9042_v13 = vpop.eup %9041  ;;  %v3410_v58 = vpop.xlane.xlu0 %3409  ;;  %v3774_v25 = vsel %vm3233_vm4, %v11060_v40, 0.0 }
 0x49c   : > { %v11065_v41 = vpop.eup %9043  ;;  %9051 = vpow2.f32 %v3602_v11  ;;  %v3604_v5 = vmul.f32 1.442695, %v3483_v59  ;;  %v3484_v44 = vsub.f32 %v10780_v7, %v3410_v58  ;;  %3775 = vadd.xlane.f32.xlu1 %v3774_v25  ;;  %v3888_v29 = vmul.f32 %v9042_v13, %v12152_v17  ;;  %v12154_v59 = vld [vmem:[#allocation66_spill] sm:$0xff] }
 0x49d   : > { %v9046_v16 = vpop.eup %9045  ;;  %v3416_v52 = vpop.xlane.xlu1 %3415  ;;  %v3777_v61 = vsel %vm3233_vm4, %v11065_v41, 0.0 }
 0x49e   : > { %v3889_v43 = vmul.f32 %v9046_v16, %v12153_v21  ;;  %9053 = vpow2.f32 %v3604_v5  ;;  %v3606_v26 = vmul.f32 1.442695, %v3484_v44  ;;  %v3486_v39 = vsub.f32 %v10785_v50, %v3416_v52  ;;  %3778 = vadd.xlane.f32.xlu0 %v3777_v61 }
 0x49f   : > { %v11104_v61 = vpop.xlane.xlu0 %3421 }
 0x4a0   : > { %9055 = vpow2.f32 %v3606_v26  ;;  %v3610_v7 = vmul.f32 1.442695, %v3486_v39  ;;  %v3945_v24 = vpack.c.bf16 %v3889_v43, %v3888_v29 }
 0x4a1   : > { %v3413_v0 = vpop.xlane.xlu1 %3412 }
 0x4a2   : > { %v11075_v11 = vpop.eup %9047  ;;  %9057 = vpow2.f32 %v3610_v7  ;;  %7976 = vmatmul.mubr.msk.bf16.vlgmr.msra.gmra.mrb[100].mxu1 %vm3233_vm4, %v3945_v24  ;;  %v3485_v13 = vsub.f32 %v12154_v59, %v3413_v0 }
 0x4a3   : > { %7986 = vmatpush3.bf16.msra.mxu1 %v1705_v45  ;;  %v3780_v58 = vsel %vm3233_vm4, %v11075_v11, 0.0  ;;  %7987 = vmatprep.mubr.msk.bf16.mxu1 %vm9444_vm0, %v12124_v54 }
 0x4a4   : > { %v11083_v50 = vpop.eup %9049  ;;  %v3608_v25 = vmul.f32 1.442695, %v3485_v13  ;;  %3781 = vadd.xlane.f32.xlu0 %v3780_v58  ;;  %7997 = vmatprep.subr.bf16.mxu1 %v12124_v54  ;;  %v12155_v58 = vld [vmem:[#allocation33_spill] sm:$0xff] }
 0x4a5   : > { %v3783_v5 = vsel %vm3233_vm4, %v11083_v50, 0.0  ;;  %v11094_v23 = vpop.xlane.xlu1 %3418 }
 0x4a6   : > { %v11088_v44 = vpop.eup %9051  ;;  %9059 = vpow2.f32 %v3608_v25  ;;  %3784 = vadd.xlane.f32.xlu1 %v3783_v5  ;;  %v8524_v25 = vunpack.i.h.bf16 %v12155_v58  ;;  %v8523_v5 = vunpack.i.l.bf16 %v12155_v58 }
 0x4a7   : > { %v3786_v16 = vsel %vm3233_vm4, %v11088_v44, 0.0 }
 0x4a8   : > { %v11092_v36 = vpop.eup %9053  ;;  %3787 = vadd.xlane.f32.xlu0 %v3786_v16 }
 0x4a9   : > { %v3789_v22 = vsel %vm3233_vm4, %v11092_v36, 0.0  ;;  %v11108_v43 = vpop.xlane.xlu1 %3424 }
 0x4aa   : > { %v11098_v17 = vpop.eup %9055  ;;  %3790 = vadd.xlane.f32.xlu1 %v3789_v22 }
 0x4ab   : > { %v3792_v29 = vsel %vm3233_vm4, %v11098_v17, 0.0 }
 0x4ac   : > { %v11102_v52 = vpop.eup %9057  ;;  %3793 = vadd.xlane.f32.xlu0 %v3792_v29  ;;  %v12156_v29 = vld [vmem:[#allocation22_spill] sm:$0xff] }
 0x4ad   : > { %v3798_v21 = vsel %vm3233_vm4, %v11102_v52, 0.0 }
 0x4ae   : > { %3799 = vadd.xlane.f32.xlu1 %v3798_v21 }
 0x4b0   : > { %v11110_v26 = vpop.eup %9059 }
 0x4b1   : > { %v3668_v39 = vpop.xlane.xlu0 %3667  ;;  %v3795_v7 = vsel %vm3233_vm4, %v11110_v26, 0.0 }
 0x4b2   : > { %9061 = vrcp.f32 %v3668_v39  ;;  %3796 = vadd.xlane.f32.xlu0 %v3795_v7  ;;  %v1706_v7 = vpack.c.bf16 %v8524_v25, %v8523_v5  ;;  %v12159_v5 = vld [vmem:[#allocation18_spill] sm:$0xff] }
 0x4b3   : > { %v3671_v24 = vpop.xlane.xlu1 %3670 }
 0x4b4   : > { %9063 = vrcp.f32 %v3671_v24  ;;  %v12157_v24 = vld [vmem:[#allocation21_spill] sm:$0xff] }
 0x4b9   : > { %v3674_v45 = vpop.xlane.xlu0 %3673 }
 0x4ba   : > { %9065 = vrcp.f32 %v3674_v45 }
 0x4bb   : > { %v3677_v0 = vpop.xlane.xlu1 %3676 }
 0x4bc   : > { %v9062_v59 = vpop.eup %9061  ;;  %9067 = vrcp.f32 %v3677_v0 }
 0x4bd   : > { %v3890_v16 = vmul.f32 %v9062_v59, %v10817_v31 }
 0x4be   : > { %v9064_v13 = vpop.eup %9063 }
 0x4bf   : > { %v3891_v22 = vmul.f32 %v9064_v13, %v10821_v33  ;;  %8616 = vrot.lane.b32.xlu1 %v12156_v29, %s9447_s18  ;;  %v12158_v33 = vld [vmem:[#allocation31_spill] sm:$0xff] }
 0x4c0   : > { %v8529_v59 = vunpack.i.h.bf16 %v12158_v33  ;;  %v8528_v13 = vunpack.i.l.bf16 %v12158_v33 }
 0x4c1   : > { %v3680_v21 = vpop.xlane.xlu0 %3679  ;;  %v3946_v39 = vpack.c.bf16 %v3891_v22, %v3890_v16 }
 0x4c2   : > { %9069 = vrcp.f32 %v3680_v21  ;;  %v1707_v29 = vpack.c.bf16 %v8529_v59, %v8528_v13  ;;  %v3487_v59 = vsub.f32 %v10802_v9, %v11094_v23  ;;  %v12162_v23 = vld [vmem:[#allocation37_spill] sm:$0xff] }
 0x4c3   : > { %8621 = vrot.lane.b32.xlu1 %v12157_v24, %s9447_s18  ;;  %7982 = vmatmul.mubr.msk.bf16.vlgmr.msra.gmra.mrb[104].mxu0 %vm3233_vm4, %v3946_v39  ;;  %v3683_v45 = vpop.xlane.xlu1 %3682 }
 0x4c4   : > { %v9066_v0 = vpop.eup %9065  ;;  %7992 = vmatpush3.bf16.msra.mxu0 %v1706_v7  ;;  %9071 = vrcp.f32 %v3683_v45  ;;  %7993 = vmatprep.mubr.msk.bf16.mxu0 %vm9444_vm0, %v12124_v54 }
 0x4c5   : > { %8003 = vmatprep.subr.bf16.mxu0 %v12124_v54  ;;  %v3892_v58 = vmul.f32 %v9066_v0, %v10827_v27 }
 0x4c6   : > { %v9068_v31 = vpop.eup %9067 }
 0x4c7   : > { %v3893_v25 = vmul.f32 %v9068_v31, %v10831_v48  ;;  %v12160_v48 = vld [vmem:[#allocation35_spill] sm:$0xff]  ;;  %v12161_v31 = vld [vmem:[#allocation65_spill] sm:$0xff] }
 0x4c8   : > { %8611 = vrot.lane.b32.xlu0 %v12159_v5, %s9447_s18  ;;  %v8534_v7 = vunpack.i.h.bf16 %v12160_v48  ;;  %v8533_v24 = vunpack.i.l.bf16 %v12160_v48  ;;  %v3488_v33 = vsub.f32 %v12161_v31, %v11104_v61  ;;  %v8539_v61 = vunpack.i.h.bf16 %v12162_v23 }
 0x4c9   : > { %v3686_v16 = vpop.xlane.xlu0 %3685  ;;  %v3947_v22 = vpack.c.bf16 %v3893_v25, %v3892_v58 }
 0x4ca   : > { %9073 = vrcp.f32 %v3686_v16  ;;  %v1708_v25 = vpack.c.bf16 %v8534_v7, %v8533_v24 }
 0x4cb   : > { %7988 = vmatmul.mubr.msk.bf16.vlgmr.msra.gmra.mrb[104].mxu1 %vm3233_vm4, %v3947_v22  ;;  %v3689_v21 = vpop.xlane.xlu1 %3688  ;;  %v3614_v22 = vmul.f32 1.442695, %v3488_v33 }
 0x4cc   : > { %v9070_v39 = vpop.eup %9069  ;;  %7998 = vmatpush3.bf16.msra.mxu1 %v1707_v29  ;;  %9075 = vrcp.f32 %v3689_v21  ;;  %7999 = vmatprep.mubr.msk.bf16.mxu1 %vm9444_vm0, %v12124_v54  ;;  %v8538_v29 = vunpack.i.l.bf16 %v12162_v23 }
 0x4cd   : > { %8009 = vmatprep.subr.bf16.mxu1 %v12124_v54  ;;  %v3894_v45 = vmul.f32 %v9070_v39, %v10837_v30  ;;  %v3612_v30 = vmul.f32 1.442695, %v3487_v59 }
 0x4ce   : > { %v9072_v27 = vpop.eup %9071  ;;  %v1709_v24 = vpack.c.bf16 %v8539_v61, %v8538_v29  ;;  %v12165_v29 = vld [vmem:[#allocation67_spill] sm:$0xff] }
 0x4cf   : > { %v3895_v0 = vmul.f32 %v9072_v27, %v10841_v34  ;;  %v3489_v34 = vsub.f32 %v10809_v57, %v11108_v43 }
 0x4d1   : > { %v3692_v13 = vpop.xlane.xlu0 %3691  ;;  %v3948_v58 = vpack.c.bf16 %v3895_v0, %v3894_v45  ;;  %v3616_v27 = vmul.f32 1.442695, %v3489_v34 }
 0x4d2   : > { %9077 = vrcp.f32 %v3692_v13 }
 0x4d3   : > { %7994 = vmatmul.mubr.msk.bf16.vlgmr.msra.gmra.mrb[108].mxu0 %vm3233_vm4, %v3948_v58  ;;  %v3695_v5 = vpop.xlane.xlu1 %3694 }
 0x4d4   : > { %v9074_v16 = vpop.eup %9073  ;;  %8004 = vmatpush3.bf16.msra.mxu0 %v1708_v25  ;;  %9079 = vrcp.f32 %v3695_v5  ;;  %8005 = vmatprep.mubr.msk.bf16.mxu0 %vm9444_vm0, %v12124_v54 }
 0x4d5   : > { %8015 = vmatprep.subr.bf16.mxu0 %v12124_v54  ;;  %v3896_v21 = vmul.f32 %v9074_v16, %v10847_v20  ;;  %9081 = vpow2.f32 %v3614_v22  ;;  %v12164_v22 = vld [vmem:[#allocation39_spill] sm:$0xff] }
 0x4d6   : > { %v9076_v9 = vpop.eup %9075  ;;  %9083 = vpow2.f32 %v3612_v30  ;;  %v8554_v30 = vunpack.i.h.bf16 %v12164_v22  ;;  %v8553_v34 = vunpack.i.l.bf16 %v12164_v22 }
 0x4d7   : > { %v3897_v39 = vmul.f32 %v9076_v9, %v10851_v46  ;;  %v12163_v46 = vld [vmem:[#allocation34_spill] sm:$0xff] }
 0x4d8   : > { %v8549_v45 = vunpack.i.h.bf16 %v12163_v46  ;;  %v8548_v0 = vunpack.i.l.bf16 %v12163_v46  ;;  %v12166_v46 = vld [vmem:[#allocation36_spill] sm:$0xff] }
 0x4d9   : > { %v3698_v48 = vpop.xlane.xlu0 %3697  ;;  %v3949_v7 = vpack.c.bf16 %v3897_v39, %v3896_v21 }
 0x4da   : > { %9085 = vrcp.f32 %v3698_v48  ;;  %v1710_v25 = vpack.c.bf16 %v8549_v45, %v8548_v0  ;;  %v8559_v45 = vunpack.i.h.bf16 %v12166_v46  ;;  %v8558_v0 = vunpack.i.l.bf16 %v12166_v46 }
 0x4db   : > { %8000 = vmatmul.mubr.msk.bf16.vlgmr.msra.gmra.mrb[108].mxu1 %vm3233_vm4, %v3949_v7  ;;  %v3701_v57 = vpop.xlane.xlu1 %3700  ;;  %v1711_v7 = vpack.c.bf16 %v8554_v30, %v8553_v34  ;;  %v12167_v30 = vld [vmem:[#allocation41_spill] sm:$0xff] }
 0x4dc   : > { %v9078_v43 = vpop.eup %9077  ;;  %8010 = vmatpush3.bf16.msra.mxu1 %v1709_v24  ;;  %9087 = vrcp.f32 %v3701_v57  ;;  %8011 = vmatprep.mubr.msk.bf16.mxu1 %vm9444_vm0, %v12124_v54 }
 0x4dd   : > { %9089 = vpow2.f32 %v3616_v27  ;;  %8021 = vmatprep.subr.bf16.mxu1 %v12124_v54  ;;  %v3898_v31 = vmul.f32 %v9078_v43, %v10857_v19 }
 0x4de   : > { %v9080_v20 = vpop.eup %9079 }
 0x4df   : > { %v3899_v33 = vmul.f32 %v9080_v20, %v10861_v8  ;;  %v11162_v58 = vpop.eup %9081 }
 0x4e0   : > { %v11164_v5 = vpop.eup %9083  ;;  %v3804_v9 = vsel %vm3233_vm4, %v11162_v58, 0.0 }
 0x4e1   : > { %v3704_v59 = vpop.xlane.xlu1 %3703  ;;  %v3950_v13 = vpack.c.bf16 %v3899_v33, %v3898_v31  ;;  %v3801_v23 = vsel %vm3233_vm4, %v11164_v5, 0.0 }
 0x4e2   : > { %9091 = vrcp.f32 %v3704_v59 }
 0x4e3   : > { %8006 = vmatmul.mubr.msk.bf16.vlgmr.msra.gmra.mrb[112].mxu0 %vm3233_vm4, %v3950_v13 }
 0x4e4   : > { %v9086_v16 = vpop.eup %9085  ;;  %8016 = vmatpush3.bf16.msra.mxu0 %v1710_v25  ;;  %8017 = vmatprep.mubr.msk.bf16.mxu0 %vm9444_vm0, %v12124_v54  ;;  %v1712_v25 = vpack.c.bf16 %v8559_v45, %v8558_v0 }
 0x4e5   : > { %v3707_v19 = vpop.xlane.xlu1 %3706  ;;  %8027 = vmatprep.subr.bf16.mxu0 %v12124_v54  ;;  %v3900_v21 = vmul.f32 %v9086_v16, %v12165_v29 }
 0x4e6   : > { %v9088_v8 = vpop.eup %9087  ;;  %9093 = vrcp.f32 %v3707_v19  ;;  %v8564_v19 = vunpack.i.h.bf16 %v12167_v30 }
 0x4e7   : > { %v11176_v61 = vpop.eup %9089  ;;  %v3901_v39 = vmul.f32 %v9088_v8, %v10871_v12  ;;  %3805 = vadd.xlane.f32.xlu1 %v3804_v9  ;;  %3802 = vadd.xlane.f32.xlu0 %v3801_v23 }
 0x4e8   : > { %v3807_v24 = vsel %vm3233_vm4, %v11176_v61, 0.0 }
 0x4e9   : > { %v3710_v27 = vpop.xlane.xlu0 %3709  ;;  %v3951_v48 = vpack.c.bf16 %v3901_v39, %v3900_v21 }
 0x4ea   : > { %9095 = vrcp.f32 %v3710_v27  ;;  %v12168_v27 = vld [vmem:[#allocation38_spill] sm:$0xff] }
 0x4eb   : > { %3808 = vadd.xlane.f32.xlu1 %v3807_v24  ;;  %8012 = vmatmul.mubr.msk.bf16.vlgmr.msra.gmra.mrb[112].mxu1 %vm3233_vm4, %v3951_v48  ;;  %v8569_v48 = vunpack.i.h.bf16 %v12168_v27  ;;  %v12169_v24 = vld [vmem:[#allocation26_spill] sm:$0xff] }
 0x4ec   : > { %8022 = vmatpush3.bf16.msra.mxu1 %v1711_v7  ;;  %8023 = vmatprep.mubr.msk.bf16.mxu1 %vm9444_vm0, %v12124_v54  ;;  %v9092_v12 = vpop.eup %9091  ;;  %v8568_v7 = vunpack.i.l.bf16 %v12168_v27 }
 0x4ed   : > { %v3713_v57 = vpop.xlane.xlu0 %3712  ;;  %v3716_v43 = vpop.xlane.xlu1 %3715  ;;  %8033 = vmatprep.subr.bf16.mxu1 %v12124_v54  ;;  %v3902_v31 = vmul.f32 %v9092_v12, %v10880_v55  ;;  %v8563_v55 = vunpack.i.l.bf16 %v12167_v30 }
 0x4ee   : > { %9097 = vrcp.f32 %v3713_v57 }
 0x4ef   : > { %9099 = vrcp.f32 %v3716_v43  ;;  %v1713_v39 = vpack.c.bf16 %v8564_v19, %v8563_v55 }
 0x4f0   : > { %v9094_v20 = vpop.eup %9093 }
 0x4f1   : > { %v3903_v33 = vmul.f32 %v9094_v20, %v10891_v18  ;;  %v3719_v59 = vpop.xlane.xlu1 %3718  ;;  %v1714_v20 = vpack.c.bf16 %v8569_v48, %v8568_v7  ;;  %v12173_v7 = vld [vmem:[#allocation42_spill] sm:$0xff] }
 0x4f2   : > { %9101 = vrcp.f32 %v3719_v59 }
 0x4f3   : > { %v3952_v13 = vpack.c.bf16 %v3903_v33, %v3902_v31  ;;  %v12171_v33 = vld [vmem:[#allocation43_spill] sm:$0xff] }
 0x4f4   : > { %v9096_v16 = vpop.eup %9095  ;;  %v8574_v59 = vunpack.i.h.bf16 %v12171_v33 }
 0x4f5   : > { %8018 = vmatmul.mubr.msk.bf16.vlgmr.msra.gmra.mrb[116].mxu0 %vm3233_vm4, %v3952_v13  ;;  %v3904_v18 = vmul.f32 %v9096_v16, %v10899_v4  ;;  %v3722_v34 = vpop.xlane.xlu0 %3721  ;;  %v8573_v13 = vunpack.i.l.bf16 %v12171_v33 }
 0x4f6   : > { %8028 = vmatpush3.bf16.msra.mxu0 %v1712_v25  ;;  %8029 = vmatprep.mubr.msk.bf16.mxu0 %vm9444_vm0, %v12124_v54  ;;  %9103 = vrcp.f32 %v3722_v34 }
 0x4f7   : > { %8039 = vmatprep.subr.bf16.mxu0 %v12124_v54 }
 0x4f8   : > { %v9098_v22 = vpop.eup %9097 }
 0x4f9   : > { %v3905_v8 = vmul.f32 %v9098_v22, %v10910_v2  ;;  %v3728_v9 = vpop.xlane.xlu1 %3727  ;;  %v9100_v23 = vpop.eup %9099  ;;  %v12170_v2 = vld [vmem:[#allocation28_spill] sm:$0xff] }
 0x4fa   : > { %v3906_v57 = vmul.f32 %v9100_v23, %v10914_v56 }
 0x4fb   : > { %v3953_v29 = vpack.c.bf16 %v3905_v8, %v3904_v18  ;;  %v1715_v18 = vpack.c.bf16 %v8574_v59, %v8573_v13  ;;  %v12172_v8 = vld [vmem:[#allocation40_spill] sm:$0xff] }
 0x4fc   : > { %v9102_v21 = vpop.eup %9101  ;;  %8631 = vrot.lane.b32.xlu1 %v12169_v24, %s9447_s18  ;;  %v8579_v34 = vunpack.i.h.bf16 %v12172_v8  ;;  %v8584_v24 = vunpack.i.h.bf16 %v12173_v7 }
 0x4fd   : > { %v3907_v4 = vmul.f32 %v9102_v21, %v10921_v38  ;;  %8626 = vrot.lane.b32.xlu0 %v12170_v2, %s9447_s18  ;;  %8024 = vmatmul.mubr.msk.bf16.vlgmr.msra.gmra.mrb[116].mxu1 %vm3233_vm4, %v3953_v29  ;;  %v3725_v43 = vpop.xlane.xlu1 %3724 }
 0x4fe   : > { %8034 = vmatpush3.bf16.msra.mxu1 %v1713_v39  ;;  %9105 = vrcp.f32 %v3725_v43  ;;  %8035 = vmatprep.mubr.msk.bf16.mxu1 %vm9444_vm0, %v12124_v54 }
 0x4ff   : > { %v3954_v12 = vpack.c.bf16 %v3907_v4, %v3906_v57  ;;  %8045 = vmatprep.subr.bf16.mxu1 %v12124_v54  ;;  %9107 = vrcp.f32 %v3728_v9  ;;  %v8578_v9 = vunpack.i.l.bf16 %v12172_v8 }
 0x500   : > { %v9104_v45 = vpop.eup %9103 }
 0x501   : > { %8030 = vmatmul.mubr.msk.bf16.vlgmr.msra.gmra.mrb[120].mxu0 %vm3233_vm4, %v3954_v12  ;;  %v3731_v56 = vpop.xlane.xlu1 %3730  ;;  %v3908_v25 = vmul.f32 %v9104_v45, %v10928_v10  ;;  %v1716_v48 = vpack.c.bf16 %v8579_v34, %v8578_v9  ;;  %v12176_v9 = vld [vmem:[#allocation46_spill] sm:$0xff] }
 0x502   : > { %8040 = vmatpush3.bf16.msra.mxu0 %v1714_v20  ;;  %9109 = vrcp.f32 %v3731_v56  ;;  %8041 = vmatprep.mubr.msk.bf16.mxu0 %vm9444_vm0, %v12124_v54 }
 0x503   : > { %v3737_v38 = vpop.xlane.xlu0 %3736  ;;  %8051 = vmatprep.subr.bf16.mxu0 %v12124_v54 }
 0x504   : > { %9111 = vrcp.f32 %v3737_v38  ;;  %v12174_v38 = vld [vmem:[#allocation44_spill] sm:$0xff] }
 0x505   : > { %v3734_v46 = vpop.xlane.xlu1 %3733 }
 0x506   : > { %9113 = vrcp.f32 %v3734_v46  ;;  %v8589_v46 = vunpack.i.h.bf16 %v12174_v38 }
 0x507   : > { %v3743_v0 = vpop.xlane.xlu0 %3742 }
 0x508   : > { %v9106_v31 = vpop.eup %9105  ;;  %9115 = vrcp.f32 %v3743_v0 }
 0x509   : > { %v3909_v16 = vmul.f32 %v9106_v31, %v10946_v3  ;;  %v3740_v22 = vpop.xlane.xlu1 %3739  ;;  %v9108_v30 = vpop.eup %9107 }
 0x50a   : > { %9117 = vrcp.f32 %v3740_v22  ;;  %v3910_v23 = vmul.f32 %v9108_v30, %v10941_v47  ;;  %v8583_v47 = vunpack.i.l.bf16 %v12173_v7 }
 0x50b   : > { %v3955_v19 = vpack.c.bf16 %v3909_v16, %v3908_v25  ;;  %v12175_v25 = vld [vmem:[#allocation45_spill] sm:$0xff] }
 0x50c   : > { %v9110_v55 = vpop.eup %9109  ;;  %v1717_v56 = vpack.c.bf16 %v8584_v24, %v8583_v47  ;;  %v8594_v16 = vunpack.i.h.bf16 %v12175_v25 }
 0x50d   : > { %v3911_v29 = vmul.f32 %v9110_v55, %v10952_v37  ;;  %8036 = vmatmul.mubr.msk.bf16.vlgmr.msra.gmra.mrb[120].mxu1 %vm3233_vm4, %v3955_v19  ;;  %v3746_v21 = vpop.xlane.xlu1 %3745 }
 0x50e   : > { %v9112_v10 = vpop.eup %9111  ;;  %8046 = vmatpush3.bf16.msra.mxu1 %v1715_v18  ;;  %9119 = vrcp.f32 %v3746_v21  ;;  %8047 = vmatprep.mubr.msk.bf16.mxu1 %vm9444_vm0, %v12124_v54 }
 0x50f   : > { %v3749_v3 = vpop.xlane.xlu0 %3748  ;;  %v3956_v39 = vpack.c.bf16 %v3911_v29, %v3910_v23  ;;  %8057 = vmatprep.subr.bf16.mxu1 %v12124_v54  ;;  %v3913_v37 = vmul.f32 %v9112_v10, %v10966_v6  ;;  %v8588_v6 = vunpack.i.l.bf16 %v12174_v38  ;;  %v8599_v23 = vunpack.i.h.bf16 %v12176_v9 }
 0x510   : > { %v9114_v27 = vpop.eup %9113  ;;  %9121 = vrcp.f32 %v3749_v3  ;;  %v8598_v29 = vunpack.i.l.bf16 %v12176_v9 }
 0x511   : > { %v3912_v57 = vmul.f32 %v9114_v27, %v10957_v51  ;;  %8042 = vmatmul.mubr.msk.bf16.vlgmr.msra.gmra.mrb[124].mxu0 %vm3233_vm4, %v3956_v39  ;;  %v3752_v4 = vpop.xlane.xlu1 %3751  ;;  %v1718_v33 = vpack.c.bf16 %v8589_v46, %v8588_v6  ;;  %v12178_v46 = vld [vmem:[#allocation47_spill] sm:$0xff] }
 0x512   : > { %v9116_v2 = vpop.eup %9115  ;;  %8052 = vmatpush3.bf16.msra.mxu0 %v1716_v48  ;;  %9123 = vrcp.f32 %v3752_v4  ;;  %8053 = vmatprep.mubr.msk.bf16.mxu0 %vm9444_vm0, %v12124_v54  ;;  %v1720_v3 = vpack.c.bf16 %v8599_v23, %v8598_v29  ;;  %v12177_v48 = vld [vmem:[#allocation48_spill] sm:$0xff]  ;;  %v8609_v6 = vunpack.i.h.bf16 %v12178_v46 }
 0x513   : > { %v3755_v43 = vpop.xlane.xlu0 %3754  ;;  %v3957_v12 = vpack.c.bf16 %v3913_v37, %v3912_v57  ;;  %8063 = vmatprep.subr.bf16.mxu0 %v12124_v54  ;;  %v3915_v51 = vmul.f32 %v9116_v2, %v10977_v32  ;;  %v8593_v32 = vunpack.i.l.bf16 %v12175_v25  ;;  %v8604_v7 = vunpack.i.h.bf16 %v12177_v48 }
 0x514   : > { %v9118_v20 = vpop.eup %9117  ;;  %9125 = vrcp.f32 %v3755_v43  ;;  %v8603_v24 = vunpack.i.l.bf16 %v12177_v48 }
 0x515   : > { %v3914_v45 = vmul.f32 %v9118_v20, %v10972_v14  ;;  %8048 = vmatmul.mubr.msk.bf16.vlgmr.msra.gmra.mrb[124].mxu1 %vm3233_vm4, %v3957_v12  ;;  %v1719_v34 = vpack.c.bf16 %v8594_v16, %v8593_v32 }
 0x516   : > { %8058 = vmatpush3.bf16.msra.mxu1 %v1717_v56  ;;  %8059 = vmatprep.mubr.msk.bf16.mxu1 %vm9444_vm0, %v12124_v54 }
 0x517   : > { %v3958_v0 = vpack.c.bf16 %v3915_v51, %v3914_v45  ;;  %8069 = vmatprep.subr.bf16.mxu1 %v12124_v54  ;;  %v8608_v51 = vunpack.i.l.bf16 %v12178_v46  ;;  %v1721_v45 = vpack.c.bf16 %v8604_v7, %v8603_v24 }
 0x518   : > { %v9120_v31 = vpop.eup %9119 }
 0x519   : > { %8054 = vmatmul.mubr.msk.bf16.vlgmr.msra.gmra.mrb[128].mxu0 %vm3233_vm4, %v3958_v0  ;;  %v3758_v59 = vpop.xlane.xlu1 %3757  ;;  %v3916_v14 = vmul.f32 %v9120_v31, %v10986_v1 }
 0x51a   : > { %v9122_v13 = vpop.eup %9121  ;;  %8064 = vmatpush3.bf16.msra.mxu0 %v1718_v33  ;;  %9127 = vrcp.f32 %v3758_v59  ;;  %8065 = vmatprep.mubr.msk.bf16.mxu0 %vm9444_vm0, %v12124_v54  ;;  %v1722_v59 = vpack.c.bf16 %v8609_v6, %v8608_v51 }
 0x51b   : > { %v3917_v22 = vmul.f32 %v9122_v13, %v10997_v60  ;;  %v3761_v30 = vpop.xlane.xlu0 %3760  ;;  %8075 = vmatprep.subr.bf16.mxu0 %v12124_v54 }
 0x51c   : > { %v9124_v19 = vpop.eup %9123  ;;  %9129 = vrcp.f32 %v3761_v30 }
 0x51d   : > { %v3764_v55 = vpop.xlane.xlu1 %3763  ;;  %v3959_v18 = vpack.c.bf16 %v3917_v22, %v3916_v14  ;;  %v3918_v21 = vmul.f32 %v9124_v19, %v11003_v15 }
 0x51e   : > { %v9126_v8 = vpop.eup %9125  ;;  %9131 = vrcp.f32 %v3764_v55 }
 0x51f   : > { %v3919_v1 = vmul.f32 %v9126_v8, %v11008_v42  ;;  %v3767_v10 = vpop.xlane.xlu0 %3766  ;;  %8060 = vmatmul.mubr.msk.bf16.vlgmr.msra.gmra.mrb[128].mxu1 %vm3233_vm4, %v3959_v18 }
 0x520   : > { %9133 = vrcp.f32 %v3767_v10  ;;  %8070 = vmatpush3.bf16.msra.mxu1 %v1719_v34  ;;  %8071 = vmatprep.mubr.msk.bf16.mxu1 %vm9444_vm0, %v12124_v54 }
 0x521   : > { %v3960_v60 = vpack.c.bf16 %v3919_v1, %v3918_v21  ;;  %8081 = vmatprep.subr.bf16.mxu1 %v12124_v54 }
 0x523   : > { %8066 = vmatmul.mubr.msk.bf16.vlgmr.msra.gmra.mrb[132].mxu0 %vm3233_vm4, %v3960_v60 }
 0x524   : > { %v9128_v39 = vpop.eup %9127  ;;  %8076 = vmatpush3.bf16.msra.mxu0 %v1720_v3  ;;  %8077 = vmatprep.mubr.msk.bf16.mxu0 %vm9444_vm0, %v12124_v54 }
 0x525   : > { %v11261_v15 = vpop.f32.mrb[88].mxu0  ;;  %v3770_v42 = vpop.xlane.xlu1 %3769  ;;  %8087 = vmatprep.subr.bf16.mxu0 %v12124_v54  ;;  %v3920_v37 = vmul.f32 %v9128_v39, %v11015_v62 }
 0x526   : > { %v9130_v27 = vpop.eup %9129  ;;  %9135 = vrcp.f32 %v3770_v42  ;;  %v7935_v47 = vpop.f32.mrb[89].mxu0 }
 0x527   : > { %v3921_v57 = vmul.f32 %v9130_v27, %v11026_v53  ;;  %v11268_v4 = vpop.f32.mrb[90].mxu0  ;;  %v3773_v2 = vpop.xlane.xlu0 %3772 }
 0x528   : > { %v9132_v43 = vpop.eup %9131  ;;  %9137 = vrcp.f32 %v3773_v2  ;;  %v7936_v12 = vpop.f32.mrb[91].mxu0 }
 0x529   : > { %v3776_v20 = vpop.xlane.xlu1 %3775  ;;  %v3961_v56 = vpack.c.bf16 %v3921_v57, %v3920_v37  ;;  %v3922_v0 = vmul.f32 %v9132_v43, %v11032_v28 }
 0x52a   : > { %v9134_v38 = vpop.eup %9133  ;;  %9139 = vrcp.f32 %v3776_v20 }
 0x52b   : > { %v3923_v62 = vmul.f32 %v9134_v38, %v11037_v63  ;;  %v3779_v53 = vpop.xlane.xlu0 %3778  ;;  %8072 = vmatmul.mubr.msk.bf16.vlgmr.msra.gmra.mrb[132].mxu1 %vm3233_vm4, %v3961_v56 }
 0x52c   : > { %9141 = vrcp.f32 %v3779_v53  ;;  %8082 = vmatpush3.bf16.msra.mxu1 %v1721_v45  ;;  %8083 = vmatprep.mubr.msk.bf16.mxu1 %vm9444_vm0, %v12124_v54 }
 0x52d   : > { %v11277_v31 = vpop.f32.mrb[88].mxu1  ;;  %v3962_v33 = vpack.c.bf16 %v3923_v62, %v3922_v0  ;;  %8093 = vmatprep.subr.bf16.mxu1 %v12124_v54 }
 0x52e   : > { %v7941_v13 = vpop.f32.mrb[89].mxu1 }
 0x52f   : > { %v11280_v25 = vpop.f32.mrb[90].mxu1  ;;  %8078 = vmatmul.mubr.msk.bf16.vlgmr.msra.gmra.mrb[136].mxu0 %vm3233_vm4, %v3962_v33 }
 0x530   : > { %v9136_v28 = vpop.eup %9135  ;;  %v7942_v63 = vpop.f32.mrb[91].mxu1  ;;  %8088 = vmatpush3.bf16.msra.mxu0 %v1722_v59  ;;  %8089 = vmatprep.mubr.msk.bf16.mxu0 %vm9444_vm0, %v12124_v54 }
 0x531   : > { %v3782_v16 = vpop.xlane.xlu0 %3781  ;;  %8099 = vmatprep.subr.bf16.mxu0 %v12124_v54  ;;  %v3924_v14 = vmul.f32 %v9136_v28, %v11046_v35 }
 0x532   : > { %v9138_v32 = vpop.eup %9137 }
 0x533   : > { %v3925_v22 = vmul.f32 %v9138_v32, %v11054_v49  ;;  %v3785_v30 = vpop.xlane.xlu1 %3784 }
 0x534   : > { %v9140_v19 = vpop.eup %9139 }
 0x535   : > { %v3788_v55 = vpop.xlane.xlu0 %3787  ;;  %v3963_v18 = vpack.c.bf16 %v3925_v22, %v3924_v14  ;;  %v3926_v34 = vmul.f32 %v9140_v19, %v11060_v40 }
 0x536   : > { %v9142_v8 = vpop.eup %9141  ;;  %9143 = vrcp.f32 %v3788_v55 }
 0x537   : > { %v3927_v9 = vmul.f32 %v9142_v8, %v11065_v41  ;;  %9145 = vrcp.f32 %v3785_v30  ;;  %8084 = vmatmul.mubr.msk.bf16.vlgmr.msra.gmra.mrb[136].mxu1 %vm3233_vm4, %v3963_v18  ;;  %v3791_v23 = vpop.xlane.xlu1 %3790 }
 0x538   : > { %9147 = vrcp.f32 %v3791_v23  ;;  %8095 = vmatprep.mubr.msk.bf16.mxu1 %vm9444_vm0, %v12124_v54 }
 0x539   : > { %v11293_v35 = vpop.f32.mrb[92].mxu0  ;;  %v3964_v49 = vpack.c.bf16 %v3927_v9, %v3926_v34  ;;  %9149 = vrcp.f32 %v3782_v16  ;;  %v3794_v29 = vpop.xlane.xlu0 %3793 }
 0x53a   : > { %v7947_v21 = vpop.f32.mrb[93].mxu0 }
 0x53b   : > { %v11295_v1 = vpop.f32.mrb[94].mxu0  ;;  %8090 = vmatmul.mubr.msk.bf16.vlgmr.msra.gmra.mrb[140].mxu0 %vm3233_vm4, %v3964_v49  ;;  %v3800_v40 = vpop.xlane.xlu1 %3799 }
 0x53c   : > { %v7948_v41 = vpop.f32.mrb[95].mxu0  ;;  %8101 = vmatprep.mubr.msk.bf16.mxu0 %vm9444_vm0, %v12124_v54 }
 0x53f   : > { %v3797_v10 = vpop.xlane.xlu0 %3796  ;;  %v8617_v60 = vpop.permute.xlu1 %8616 }
 0x540   : > { %v9144_v3 = vpop.eup %9143  ;;  %9151 = vrcp.f32 %v3797_v10  ;;  %v8619_v39 = vunpack.i.h.bf16 %v8617_v60  ;;  %v8618_v42 = vunpack.i.l.bf16 %v8617_v60 }
 0x541   : > { %v9146_v27 = vpop.eup %9145  ;;  %9153 = vrcp.f32 %v3794_v29  ;;  %v3930_v24 = vmul.f32 %v9144_v3, %v11088_v44 }
 0x542   : > { %v9148_v48 = vpop.eup %9147  ;;  %v1724_v7 = vpack.c.bf16 %v8619_v39, %v8618_v42  ;;  %v3929_v20 = vmul.f32 %v9146_v27, %v11083_v50  ;;  %9155 = vrcp.f32 %v3800_v40 }
 0x543   : > { %v3931_v47 = vmul.f32 %v9148_v48, %v11092_v36  ;;  %v8612_v37 = vpop.permute.xlu0 %8611  ;;  %v8622_v57 = vpop.permute.xlu1 %8621 }
 0x544   : > { %v9150_v2 = vpop.eup %9149  ;;  %v8614_v43 = vunpack.i.h.bf16 %v8612_v37  ;;  %v8613_v12 = vunpack.i.l.bf16 %v8612_v37  ;;  %8100 = vmatpush3.bf16.msra.mxu0 %v1724_v7  ;;  %v8624_v6 = vunpack.i.h.bf16 %v8622_v57  ;;  %v8623_v51 = vunpack.i.l.bf16 %v8622_v57 }
 0x545   : > { %v11303_v56 = vpop.f32.mrb[92].mxu1  ;;  %v3966_v38 = vpack.c.bf16 %v3931_v47, %v3930_v24  ;;  %8111 = vmatprep.subr.bf16.mxu0 %v12124_v54  ;;  %v3928_v44 = vmul.f32 %v9150_v2, %v11075_v11 }
 0x546   : > { %v1723_v46 = vpack.c.bf16 %v8614_v43, %v8613_v12  ;;  %v7953_v45 = vpop.f32.mrb[93].mxu1  ;;  %v1725_v53 = vpack.c.bf16 %v8624_v6, %v8623_v51 }
 0x547   : > { %v11307_v36 = vpop.f32.mrb[94].mxu1  ;;  %8102 = vmatmul.mubr.msk.bf16.vlgmr.msra.gmra.mrb[144].mxu0 %vm3233_vm4, %v3966_v38  ;;  %v3965_v50 = vpack.c.bf16 %v3929_v20, %v3928_v44  ;;  %v12179_v20 = vmov 0  }
 0x548   : > { %v7954_v0 = vpop.f32.mrb[95].mxu1  ;;  %8094 = vmatpush3.bf16.msra.mxu1 %v1723_v46  ;;  %8113 = vmatprep.mubr.msk.bf16.mxu0 %vm9444_vm0, %v12124_v54 }
 0x549   : > { %8105 = vmatprep.subr.bf16.mxu1 %v12124_v54 }
 0x54a   : > { %v9152_v62 = vpop.eup %9151 }
 0x54b   : > { %8096 = vmatmul.mubr.msk.bf16.vlgmr.msra.gmra.mrb[140].mxu1 %vm3233_vm4, %v3965_v50  ;;  %v9154_v33 = vpop.eup %9153  ;;  %v3933_v11 = vmul.f32 %v9152_v62, %v11110_v26 }
 0x54c   : > { %8106 = vmatpush3.bf16.msra.mxu1 %v1725_v53  ;;  %8107 = vmatprep.mubr.msk.bf16.mxu1 %vm9444_vm0, %v12124_v54  ;;  %v3932_v59 = vmul.f32 %v9154_v33, %v11098_v17  ;;  %v9156_v3 = vpop.eup %9155 }
 0x54d   : > { %8117 = vmatprep.subr.bf16.mxu1 %v12124_v54  ;;  %v3934_v48 = vmul.f32 %v9156_v3, %v11102_v52 }
 0x54e   : > { %v3967_v28 = vpack.c.bf16 %v3933_v11, %v3932_v59 }
 0x551   : > { %v11319_v13 = vpop.f32.mrb[96].mxu0 }
 0x552   : > { %v7959_v63 = vpop.f32.mrb[97].mxu0 }
 0x553   : > { %v11321_v16 = vpop.f32.mrb[98].mxu0  ;;  %8108 = vmatmul.mubr.msk.bf16.vlgmr.msra.gmra.mrb[144].mxu1 %vm3233_vm4, %v3967_v28 }
 0x554   : > { %v7960_v32 = vpop.f32.mrb[99].mxu0  ;;  %8119 = vmatprep.mubr.msk.bf16.mxu1 %vm9444_vm0, %v12124_v54 }
 0x55d   : > { %v11326_v14 = vpop.f32.mrb[96].mxu1 }
 0x55e   : > { %v7965_v22 = vpop.f32.mrb[97].mxu1 }
 0x55f   : > { %v11328_v26 = vpop.f32.mrb[98].mxu1 }
 0x560   : > { %v7966_v30 = vpop.f32.mrb[99].mxu1 }
 0x569   : > { %v11330_v19 = vpop.f32.mrb[100].mxu0 }
 0x56a   : > { %v7971_v17 = vpop.f32.mrb[101].mxu0 }
 0x56b   : > { %v11332_v55 = vpop.f32.mrb[102].mxu0 }
 0x56c   : > { %v7972_v18 = vpop.f32.mrb[103].mxu0 }
 0x574   : > { %v3803_v8 = vpop.xlane.xlu0 %3802  ;;  %v3806_v34 = vpop.xlane.xlu1 %3805 }
 0x575   : > { %v11334_v9 = vpop.f32.mrb[100].mxu1  ;;  %9157 = vrcp.f32 %v3803_v8 }
 0x576   : > { %v7977_v23 = vpop.f32.mrb[101].mxu1  ;;  %9159 = vrcp.f32 %v3806_v34 }
 0x577   : > { %v11336_v54 = vpop.f32.mrb[102].mxu1 }
 0x578   : > { %v7978_v49 = vpop.f32.mrb[103].mxu1  ;;  %v8627_v29 = vpop.permute.xlu0 %8626 }
 0x579   : > { %v8629_v21 = vunpack.i.h.bf16 %v8627_v29  ;;  %v8628_v41 = vunpack.i.l.bf16 %v8627_v29  ;;  %v3809_v10 = vpop.xlane.xlu1 %3808 }
 0x57a   : > { %9161 = vrcp.f32 %v3809_v10 }
 0x57b   : > { %v1726_v60 = vpack.c.bf16 %v8629_v21, %v8628_v41 }
 0x57d   : > { %v8632_v39 = vpop.permute.xlu1 %8631  ;;  %8112 = vmatpush3.bf16.msra.mxu0 %v1726_v60 }
 0x57e   : > { %v8634_v40 = vunpack.i.h.bf16 %v8632_v39  ;;  %v8633_v42 = vunpack.i.l.bf16 %v8632_v39 }
 0x57f   : > { %v9158_v27 = vpop.eup %9157 }
 0x580   : > { %v3935_v7 = vmul.f32 %v9158_v27, %v11164_v5  ;;  %v1727_v24 = vpack.c.bf16 %v8634_v40, %v8633_v42  ;;  %v9160_v47 = vpop.eup %9159 }
 0x581   : > { %v3936_v2 = vmul.f32 %v9160_v47, %v11162_v58 }
 0x582   : > { %8118 = vmatpush3.bf16.msra.mxu1 %v1727_v24  ;;  %v3968_v37 = vpack.c.bf16 %v3935_v7, %v3934_v48 }
 0x584   : > { %v9162_v57 = vpop.eup %9161  ;;  %8114 = vmatmul.mubr.msk.bf16.vlgmr.msra.gmra.mrb[148].mxu0 %vm3233_vm4, %v3968_v37 }
 0x585   : > { %v3937_v43 = vmul.f32 %v9162_v57, %v11176_v61 }
 0x587   : > { %v3969_v12 = vpack.c.bf16 %v3937_v43, %v3936_v2 }
 0x589   : > { %8120 = vmatmul.mubr.msk.bf16.vlgmr.msra.gmra.mrb[148].mxu1 %vm3233_vm4, %v3969_v12 }
 0x58a   : > { %6320 = vmatprep.mubr.bf16.mxu1 %v12179_v20 }
 0x596   : > { %v4359_v38 = vpop.f32.mrb[104].mxu0 }
 0x597   : > { %v7983_v52 = vpop.f32.mrb[105].mxu0 }
 0x598   : > { %v4362_v46 = vpop.f32.mrb[106].mxu0  ;;  %v8788_v52 = vld [vmem:[#allocation7 + $0x8] sm:$0xff]  }
 0x599   : > { %v8635_v5 = vpack.i.bf16 %v4362_v46, %v4359_v38  ;;  %v7984_v6 = vpop.f32.mrb[107].mxu0  ;;  %v8787_v38 = vld [vmem:[#allocation7] sm:$0xff]  }
 0x59a   : > { %8123 = vmatprep.subr.bf16.mxu0 %v8787_v38 }
 0x59b   : > { %8636 = vrot.lane.b32.xlu1 %v8635_v5, %s9447_s18  ;;  %8124 = vmatpush3.bf16.msra.mxu0 %v8787_v38 }
 0x59c   : > { %8125 = vmatprep.subr.bf16.mxu0 %v8788_v52 }
 0x59e   : > { %v4403_v51 = vpop.f32.mrb[104].mxu1 }
 0x59f   : > { %v7989_v45 = vpop.f32.mrb[105].mxu1  ;;  %8126 = vmatpush3.bf16.msra.mxu0 %v8788_v52 }
 0x5a0   : > { %v4406_v44 = vpop.f32.mrb[106].mxu1 }
 0x5a1   : > { %v8640_v0 = vpack.i.bf16 %v4406_v44, %v4403_v51  ;;  %v7990_v50 = vpop.f32.mrb[107].mxu1  ;;  %v8789_v44 = vld [vmem:[#allocation7 + $0x10] sm:$0xff]  }
 0x5a2   : > { %8127 = vmatprep.subr.bf16.mxu0 %v8789_v44 }
 0x5a3   : > { %8641 = vrot.lane.b32.xlu1 %v8640_v0, %s9447_s18  ;;  %8128 = vmatpush3.bf16.msra.mxu0 %v8789_v44 }
 0x5a6   : > { %v11347_v58 = vpop.f32.mrb[108].mxu0 }
 0x5a7   : > { %v7995_v61 = vpop.f32.mrb[109].mxu0 }
 0x5a8   : > { %v11349_v62 = vpop.f32.mrb[110].mxu0 }
 0x5a9   : > { %v8665_v53 = vpack.i.bf16 %v11349_v62, %v11347_v58  ;;  %v7996_v33 = vpop.f32.mrb[111].mxu0 }
 0x5ae   : > { %v11353_v11 = vpop.f32.mrb[108].mxu1 }
 0x5af   : > { %v8001_v59 = vpop.f32.mrb[109].mxu1 }
 0x5b0   : > { %v11355_v28 = vpop.f32.mrb[110].mxu1 }
 0x5b1   : > { %v8670_v63 = vpack.i.bf16 %v11355_v28, %v11353_v11  ;;  %v8002_v32 = vpop.f32.mrb[111].mxu1 }
 0x5b2   : > { %v8790_v32 = vld [vmem:[#allocation7 + $0x18] sm:$0xff]  }
 0x5b3   : > { %8129 = vmatprep.subr.bf16.mxu0 %v8790_v32 }
 0x5b4   : > { %8130 = vmatpush3.bf16.msra.mxu0 %v8790_v32 }
 0x5b6   : > { %v11359_v22 = vpop.f32.mrb[112].mxu0 }
 0x5b7   : > { %v8007_v30 = vpop.f32.mrb[113].mxu0 }
 0x5b8   : > { %v11361_v17 = vpop.f32.mrb[114].mxu0 }
 0x5b9   : > { %v8695_v18 = vpack.i.bf16 %v11361_v17, %v11359_v22  ;;  %v8008_v8 = vpop.f32.mrb[115].mxu0 }
 0x5be   : > { %v11365_v34 = vpop.f32.mrb[112].mxu1 }
 0x5bf   : > { %v8013_v23 = vpop.f32.mrb[113].mxu1 }
 0x5c0   : > { %v11367_v49 = vpop.f32.mrb[114].mxu1 }
 0x5c1   : > { %v8700_v29 = vpack.i.bf16 %v11367_v49, %v11365_v34  ;;  %v8014_v21 = vpop.f32.mrb[115].mxu1 }
 0x5c8   : > { %v11371_v41 = vpop.f32.mrb[116].mxu0 }
 0x5c9   : > { %v8019_v10 = vpop.f32.mrb[117].mxu0 }
 0x5ca   : > { %v11373_v60 = vpop.f32.mrb[118].mxu0 }
 0x5cb   : > { %v8725_v3 = vpack.i.bf16 %v11373_v60, %v11371_v41  ;;  %v8020_v39 = vpop.f32.mrb[119].mxu0 }
 0x5cc   : > { %v8791_v39 = vld [vmem:[#allocation7 + $0x20] sm:$0xff]  }
 0x5cd   : > { %8131 = vmatprep.subr.bf16.mxu0 %v8791_v39 }
 0x5ce   : > { %8132 = vmatpush3.bf16.msra.mxu0 %v8791_v39 }
 0x5d0   : > { %v11377_v40 = vpop.f32.mrb[116].mxu1 }
 0x5d1   : > { %v8025_v42 = vpop.f32.mrb[117].mxu1 }
 0x5d2   : > { %v11379_v27 = vpop.f32.mrb[118].mxu1 }
 0x5d3   : > { %v8730_v48 = vpack.i.bf16 %v11379_v27, %v11377_v40  ;;  %v8026_v7 = vpop.f32.mrb[119].mxu1 }
 0x5d4   : > { %v4711_v24 = vpop.f32.mrb[120].mxu0 }
 0x5d5   : > { %v8031_v47 = vpop.f32.mrb[121].mxu0 }
 0x5d6   : > { %v4714_v37 = vpop.f32.mrb[122].mxu0 }
 0x5d7   : > { %v8645_v57 = vpack.i.bf16 %v4714_v37, %v4711_v24  ;;  %v8032_v2 = vpop.f32.mrb[123].mxu0 }
 0x5d9   : > { %8646 = vrot.lane.b32.xlu1 %v8645_v57, %s9446_s3 }
 0x5e0   : > { %v4755_v43 = vpop.f32.mrb[120].mxu1 }
 0x5e1   : > { %v8037_v12 = vpop.f32.mrb[121].mxu1 }
 0x5e2   : > { %v4758_v46 = vpop.f32.mrb[122].mxu1 }
 0x5e3   : > { %v8650_v5 = vpack.i.bf16 %v4758_v46, %v4755_v43  ;;  %v8038_v6 = vpop.f32.mrb[123].mxu1 }
 0x5e4   : > { %v11384_v51 = vpop.f32.mrb[124].mxu0  ;;  %v8792_v6 = vld [vmem:[#allocation7 + $0x28] sm:$0xff]  }
 0x5e5   : > { %8651 = vrot.lane.b32.xlu1 %v8650_v5, %s9446_s3  ;;  %v8043_v45 = vpop.f32.mrb[125].mxu0  ;;  %8133 = vmatprep.subr.bf16.mxu0 %v8792_v6 }
 0x5e6   : > { %v4802_v0 = vpop.f32.mrb[126].mxu0  ;;  %8134 = vmatpush3.bf16.msra.mxu0 %v8792_v6 }
 0x5e7   : > { %v8675_v50 = vpack.i.bf16 %v4802_v0, %v11384_v51  ;;  %v8044_v61 = vpop.f32.mrb[127].mxu0  ;;  %v8793_v0 = vld [vmem:[#allocation7 + $0x30] sm:$0xff]  }
 0x5e8   : > { %v11388_v33 = vpop.f32.mrb[124].mxu1  ;;  %8135 = vmatprep.subr.bf16.mxu0 %v8793_v0 }
 0x5e9   : > { %v8049_v59 = vpop.f32.mrb[125].mxu1 }
 0x5ea   : > { %v4846_v30 = vpop.f32.mrb[126].mxu1  ;;  %8136 = vmatpush3.bf16.msra.mxu0 %v8793_v0 }
 0x5eb   : > { %v8680_v8 = vpack.i.bf16 %v4846_v30, %v11388_v33  ;;  %v8050_v23 = vpop.f32.mrb[127].mxu1 }
 0x5ec   : > { %v4887_v21 = vpop.f32.mrb[128].mxu0 }
 0x5ed   : > { %v8055_v10 = vpop.f32.mrb[129].mxu0 }
 0x5ee   : > { %v4890_v42 = vpop.f32.mrb[130].mxu0  ;;  %v8794_v10 = vld [vmem:[#allocation7 + $0x38] sm:$0xff]  }
 0x5ef   : > { %v8705_v7 = vpack.i.bf16 %v4890_v42, %v4887_v21  ;;  %v8056_v24 = vpop.f32.mrb[131].mxu0  ;;  %8137 = vmatprep.subr.bf16.mxu0 %v8794_v10 }
 0x5f0   : > { %8138 = vmatpush3.bf16.msra.mxu0 %v8794_v10 }
 0x5f2   : > { %v11391_v47 = vpop.f32.mrb[128].mxu1 }
 0x5f3   : > { %v8061_v37 = vpop.f32.mrb[129].mxu1 }
 0x5f4   : > { %v11393_v57 = vpop.f32.mrb[130].mxu1 }
 0x5f5   : > { %v8710_v2 = vpack.i.bf16 %v11393_v57, %v11391_v47  ;;  %v8062_v43 = vpop.f32.mrb[131].mxu1 }
 0x5f6   : > { %v4975_v12 = vpop.f32.mrb[132].mxu0 }
 0x5f7   : > { %v8067_v38 = vpop.f32.mrb[133].mxu0 }
 0x5f8   : > { %v4978_v52 = vpop.f32.mrb[134].mxu0 }
 0x5f9   : > { %v8735_v46 = vpack.i.bf16 %v4978_v52, %v4975_v12  ;;  %v8068_v5 = vpop.f32.mrb[135].mxu0 }
 0x5fe   : > { %v5019_v51 = vpop.f32.mrb[132].mxu1 }
 0x5ff   : > { %v8073_v45 = vpop.f32.mrb[133].mxu1 }
 0x600   : > { %v5022_v44 = vpop.f32.mrb[134].mxu1 }
 0x601   : > { %v8740_v61 = vpack.i.bf16 %v5022_v44, %v5019_v51  ;;  %v8074_v33 = vpop.f32.mrb[135].mxu1 }
 0x602   : > { %v5063_v59 = vpop.f32.mrb[136].mxu0 }
 0x603   : > { %v8079_v32 = vpop.f32.mrb[137].mxu0 }
 0x604   : > { %v5066_v30 = vpop.f32.mrb[138].mxu0 }
 0x605   : > { %v8655_v23 = vpack.i.bf16 %v5066_v30, %v5063_v59  ;;  %v8080_v21 = vpop.f32.mrb[139].mxu0 }
 0x607   : > { %8656 = vrot.lane.b32.xlu1 %v8655_v23, %s9445_s28 }
 0x60a   : > { %v5107_v39 = vpop.f32.mrb[136].mxu1 }
 0x60b   : > { %v8085_v42 = vpop.f32.mrb[137].mxu1  ;;  %8666 = vrot.lane.b32.xlu1 %v8665_v53, %s9447_s18 }
 0x60c   : > { %v5110_v24 = vpop.f32.mrb[138].mxu1 }
 0x60d   : > { %v8660_v37 = vpack.i.bf16 %v5110_v24, %v5107_v39  ;;  %v8086_v43 = vpop.f32.mrb[139].mxu1  ;;  %v8637_v0 = vpop.permute.xlu1 %8636 }
 0x60e   : > { %v5151_v12 = vpop.f32.mrb[140].mxu0 }
 0x60f   : > { %8661 = vrot.lane.b32.xlu0 %v8660_v37, %s9445_s28  ;;  %8676 = vrot.lane.b32.xlu1 %v8675_v50, %s9446_s3  ;;  %v8091_v38 = vpop.f32.mrb[141].mxu0 }
 0x610   : > { %v5154_v52 = vpop.f32.mrb[142].mxu0 }
 0x611   : > { %v8685_v5 = vpack.i.bf16 %v5154_v52, %v5151_v12  ;;  %v8092_v6 = vpop.f32.mrb[143].mxu0 }
 0x613   : > { %8671 = vrot.lane.b32.xlu0 %v8670_v63, %s9447_s18  ;;  %8686 = vrot.lane.b32.xlu1 %v8685_v5, %s9445_s28 }
 0x615   : > { %v8642_v33 = vpop.permute.xlu1 %8641 }
 0x616   : > { %v8644_v12 = vunpack.i.h.bf16 %v8642_v33  ;;  %v8643_v38 = vunpack.i.l.bf16 %v8642_v33 }
 0x617   : > { %8681 = vrot.lane.b32.xlu0 %v8680_v8, %s9446_s3  ;;  %8696 = vrot.lane.b32.xlu1 %v8695_v18, %s9447_s18 }
 0x61a   : > { %v5239_v58 = vpop.f32.mrb[144].mxu0 }
 0x61b   : > { %8706 = vrot.lane.b32.xlu1 %v8705_v7, %s9446_s3  ;;  %v8103_v62 = vpop.f32.mrb[145].mxu0 }
 0x61c   : > { %v5242_v53 = vpop.f32.mrb[146].mxu0 }
 0x61d   : > { %v8715_v50 = vpack.i.bf16 %v5242_v53, %v5239_v58  ;;  %v8104_v51 = vpop.f32.mrb[147].mxu0 }
 0x61e   : > { %v5195_v45 = vpop.f32.mrb[140].mxu1 }
 0x61f   : > { %v8097_v44 = vpop.f32.mrb[141].mxu1  ;;  %8716 = vrot.lane.b32.xlu1 %v8715_v50, %s9445_s28 }
 0x620   : > { %v5198_v11 = vpop.f32.mrb[142].mxu1 }
 0x621   : > { %v8690_v28 = vpack.i.bf16 %v5198_v11, %v5195_v45  ;;  %v8098_v63 = vpop.f32.mrb[143].mxu1 }
 0x623   : > { %8691 = vrot.lane.b32.xlu0 %v8690_v28, %s9445_s28  ;;  %8726 = vrot.lane.b32.xlu1 %v8725_v3, %s9447_s18 }
 0x626   : > { %v5283_v22 = vpop.f32.mrb[144].mxu1 }
 0x627   : > { %8701 = vrot.lane.b32.xlu0 %v8700_v29, %s9447_s18  ;;  %v8109_v17 = vpop.f32.mrb[145].mxu1  ;;  %8736 = vrot.lane.b32.xlu1 %v8735_v46, %s9446_s3 }
 0x628   : > { %v5286_v18 = vpop.f32.mrb[146].mxu1 }
 0x629   : > { %v8720_v8 = vpack.i.bf16 %v5286_v18, %v5283_v22  ;;  %v8110_v7 = vpop.f32.mrb[147].mxu1 }
 0x62b   : > { %8711 = vrot.lane.b32.xlu0 %v8710_v2, %s9446_s3 }
 0x62f   : > { %8721 = vrot.lane.b32.xlu0 %v8720_v8, %s9445_s28 }
 0x633   : > { %8731 = vrot.lane.b32.xlu0 %v8730_v48, %s9447_s18  ;;  %v8639_v48 = vunpack.i.h.bf16 %v8637_v0  ;;  %s11880_s18 = scalar_lea.vmem [#allocation11], %s7237_s11  ;;  %s7418_s11 = sshll.u32 %s9538_s25, 11 }
 0x634   : > { %s7114_s13 = sshll.u32 %s11880_s18, 4  ;;  %s11929_s9 = scalar_lea.hbm %s12183_s14, %s7418_s11  ;;  %s11931_s13 = int_to_ptr.vmem [resolvable:$true] %s7114_s13 }
 0x635   : > { %v5571_v23 = vsel %vm1728_vm1, %v11268_v4, %v8639_v48  ;;  %v5572_v4 = vsel %vm1728_vm1, %v11277_v31, %v8643_v38  ;;  %s9353_s25 = scalar_lea.vmem %s11931_s13, 2048  ;;  %p9360_p12 = scmp.lt.s32.totalorder %s11931_s13, %s9358_s29 }
 0x636   : > { %p9354_p3 = scmp.ne.s32.totalorder %s11931_s13, %s9353_s25 }
 0x637   : > { %8741 = vrot.lane.b32.xlu0 %v8740_v61, %s9446_s3  ;;  %v8638_v61 = vunpack.i.l.bf16 %v8637_v0  ;;  %s12182_s3 = sld [smem:[#allocation70_spill]] }
 0x638   : > { %p9355_p5 = pnand %p9354_p3, %p9673_p10 }
 0x639   : > { %v5570_v21 = vsel %vm1728_vm1, %v11261_v15, %v8638_v61  ;;  %v5573_v15 = vsel %vm1728_vm1, %v11280_v25, %v8644_v12 }
 0x63a   : > { %p9356_p7 = pneg %p9355_p5 }
 0x64b   : > { %v8647_v40 = vpop.permute.xlu1 %8646 }
 0x64c   : > { %v8649_v59 = vunpack.i.h.bf16 %v8647_v40  ;;  %v8648_v32 = vunpack.i.l.bf16 %v8647_v40 }
 0x64e   : > { %v5588_v42 = vsel %vm5586_vm5, %v5571_v23, %v8649_v59  ;;  %v5587_v24 = vsel %vm5586_vm5, %v5570_v21, %v8648_v32 }
 0x657   : > { %v5327_v34 = vpop.f32.mrb[148].mxu0  ;;  %v8652_v27 = vpop.permute.xlu1 %8651 }
 0x658   : > { %v8115_v49 = vpop.f32.mrb[149].mxu0  ;;  %v8654_v6 = vunpack.i.h.bf16 %v8652_v27  ;;  %v8653_v58 = vunpack.i.l.bf16 %v8652_v27 }
 0x659   : > { %v5330_v29 = vpop.f32.mrb[150].mxu0 }
 0x65a   : > { %v8745_v41 = vpack.i.bf16 %v5330_v29, %v5327_v34  ;;  %v8116_v60 = vpop.f32.mrb[151].mxu0  ;;  %v5590_v11 = vsel %vm5586_vm5, %v5573_v15, %v8654_v6  ;;  %v5589_v28 = vsel %vm5586_vm5, %v5572_v4, %v8653_v58 }
 0x65c   : > { %v5371_v3 = vpop.f32.mrb[148].mxu1  ;;  %8746 = vrot.lane.b32.xlu1 %v8745_v41, %s9445_s28 }
 0x65d   : > { %v8121_v46 = vpop.f32.mrb[149].mxu1 }
 0x65e   : > { %v5374_v47 = vpop.f32.mrb[150].mxu1 }
 0x65f   : > { %v8750_v57 = vpack.i.bf16 %v5374_v47, %v5371_v3  ;;  %v8122_v2 = vpop.f32.mrb[151].mxu1 }
 0x661   : > { %8751 = vrot.lane.b32.xlu0 %v8750_v57, %s9445_s28 }
 0x679   : > { %v8657_v30 = vpop.permute.xlu1 %8656 }
 0x67a   : > { %v8659_v10 = vunpack.i.h.bf16 %v8657_v30  ;;  %v8658_v39 = vunpack.i.l.bf16 %v8657_v30 }
 0x67c   : > { %v5604_v37 = vsel %vm5603_vm6, %v5587_v24, %v8658_v39  ;;  %v5605_v43 = vsel %vm5603_vm6, %v5588_v42, %v8659_v10 }
 0x67d   : > { %v8667_v52 = vpop.permute.xlu1 %8666  ;;  %v5620_v5 = vpack.c.bf16 %v5605_v43, %v5604_v37 }
 0x67e   : > { %v8669_v50 = vunpack.i.h.bf16 %v8667_v52  ;;  %v8668_v51 = vunpack.i.l.bf16 %v8667_v52 }
 0x67f   : > { %8139 = vmatprep.mubr.bf16.mxu0 %v5620_v5 }
 0x680   : > { %v5575_v31 = vsel %vm1728_vm1, %v11295_v1, %v8669_v50  ;;  %v5574_v7 = vsel %vm1728_vm1, %v11293_v35, %v8668_v51 }
 0x681   : > { %v8662_v62 = vpop.permute.xlu0 %8661  ;;  %v8677_v53 = vpop.permute.xlu1 %8676 }
 0x682   : > { %v8664_v45 = vunpack.i.h.bf16 %v8662_v62  ;;  %v8663_v44 = vunpack.i.l.bf16 %v8662_v62  ;;  %v8679_v63 = vunpack.i.h.bf16 %v8677_v53  ;;  %v8678_v22 = vunpack.i.l.bf16 %v8677_v53 }
 0x684   : > { %v5606_v17 = vsel %vm5603_vm6, %v5589_v28, %v8663_v44  ;;  %v5607_v18 = vsel %vm5603_vm6, %v5590_v11, %v8664_v45  ;;  %v5591_v29 = vsel %vm5586_vm5, %v5574_v7, %v8678_v22  ;;  %v5592_v41 = vsel %vm5586_vm5, %v5575_v31, %v8679_v63 }
 0x685   : > { %v5621_v25 = vpack.c.bf16 %v5607_v18, %v5606_v17  ;;  %v8687_v8 = vpop.permute.xlu1 %8686  ;;  %v8672_v57 = vpop.permute.xlu0 %8671 }
 0x686   : > { %v8689_v34 = vunpack.i.h.bf16 %v8687_v8  ;;  %v8688_v49 = vunpack.i.l.bf16 %v8687_v8  ;;  %v8674_v27 = vunpack.i.h.bf16 %v8672_v57  ;;  %v8673_v48 = vunpack.i.l.bf16 %v8672_v57 }
 0x687   : > { %8140 = vmatmul.mubr.bf16.vlgmr.msra.gmra.mrb[152].mxu0 %v5621_v25 }
 0x688   : > { %v5608_v60 = vsel %vm5603_vm6, %v5591_v29, %v8688_v49  ;;  %v5609_v3 = vsel %vm5603_vm6, %v5592_v41, %v8689_v34 }
 0x689   : > { %v8697_v46 = vpop.permute.xlu1 %8696  ;;  %v5622_v47 = vpack.c.bf16 %v5609_v3, %v5608_v60  ;;  %v8682_v40 = vpop.permute.xlu0 %8681 }
 0x68a   : > { %v8699_v1 = vunpack.i.h.bf16 %v8697_v46  ;;  %v8698_v0 = vunpack.i.l.bf16 %v8697_v46  ;;  %v8684_v21 = vunpack.i.h.bf16 %v8682_v40  ;;  %v8683_v10 = vunpack.i.l.bf16 %v8682_v40 }
 0x68b   : > { %8143 = vmatprep.mubr.bf16.mxu0 %v5622_v47 }
 0x68c   : > { %v5579_v59 = vsel %vm1728_vm1, %v11321_v16, %v8699_v1  ;;  %v5578_v32 = vsel %vm1728_vm1, %v11319_v13, %v8698_v0  ;;  %v5577_v16 = vsel %vm1728_vm1, %v11307_v36, %v8674_v27  ;;  %v5576_v13 = vsel %vm1728_vm1, %v11303_v56, %v8673_v48 }
 0x68d   : > { %v8707_v2 = vpop.permute.xlu1 %8706  ;;  %v5593_v5 = vsel %vm5586_vm5, %v5576_v13, %v8683_v10  ;;  %v5594_v6 = vsel %vm5586_vm5, %v5577_v16, %v8684_v21 }
 0x68e   : > { %v8709_v33 = vunpack.i.h.bf16 %v8707_v2  ;;  %v8708_v35 = vunpack.i.l.bf16 %v8707_v2 }
 0x690   : > { %v5595_v39 = vsel %vm5586_vm5, %v5578_v32, %v8708_v35  ;;  %v5596_v42 = vsel %vm5586_vm5, %v5579_v59, %v8709_v33 }
 0x691   : > { %v8717_v61 = vpop.permute.xlu1 %8716 }
 0x692   : > { %v8719_v30 = vunpack.i.h.bf16 %v8717_v61  ;;  %v8718_v23 = vunpack.i.l.bf16 %v8717_v61 }
 0x694   : > { %v5612_v24 = vsel %vm5603_vm6, %v5595_v39, %v8718_v23  ;;  %v5613_v37 = vsel %vm5603_vm6, %v5596_v42, %v8719_v30 }
 0x695   : > { %v8692_v43 = vpop.permute.xlu0 %8691  ;;  %v5624_v12 = vpack.c.bf16 %v5613_v37, %v5612_v24  ;;  %v8727_v31 = vpop.permute.xlu1 %8726  ;;  %v8797_v24 = vld [vmem:[#allocation8 + $0x4] ss:$16 sps:$4 sm:$0xff]   ;;  %v8800_v37 = vld [vmem:[#allocation8 + $0xc] ss:$16 sps:$4 sm:$0xff]  }
 0x696   : > { %v8694_v38 = vunpack.i.h.bf16 %v8692_v43  ;;  %v8693_v52 = vunpack.i.l.bf16 %v8692_v43  ;;  %v8729_v49 = vunpack.i.h.bf16 %v8727_v31  ;;  %6288 = vmatprep.subr.bf16.mxu1 %v8797_v24  ;;  %6401 = vmatprep.subr.bf16.mxu0 %v8800_v37  ;;  %v11506_v43 = vld [vmem:[%s11983_s5] ss:$0 sm:$0xff]  ;;  %v8822_v37 = vld [vmem:[#allocation8 + $0x88] ss:$16 sps:$4 sm:$0xff]  }
 0x698   : > { %v5610_v58 = vsel %vm5603_vm6, %v5593_v5, %v8693_v52  ;;  %v5611_v15 = vsel %vm5603_vm6, %v5594_v6, %v8694_v38  ;;  %v5583_v3 = vsel %vm1728_vm1, %v11332_v55, %v8729_v49  ;;  %v9195_v5 = vld [vmem:[%s9731_s26] sm:$0xff] }
 0x699   : > { %v8702_v4 = vpop.permute.xlu0 %8701  ;;  %v5623_v62 = vpack.c.bf16 %v5611_v15, %v5610_v58  ;;  %v8737_v34 = vpop.permute.xlu1 %8736  ;;  %v9196_v15 = vld [vmem:[%s9731_s26 + $0x8] sm:$0xff]  ;;  %v8803_v49 = vld [vmem:[#allocation8 + $0x24] ss:$16 sps:$4 sm:$0xff]  }
 0x69a   : > { %v8704_v50 = vunpack.i.h.bf16 %v8702_v4  ;;  %v8703_v36 = vunpack.i.l.bf16 %v8702_v4  ;;  %v8739_v29 = vunpack.i.h.bf16 %v8737_v34  ;;  %v8738_v41 = vunpack.i.l.bf16 %v8737_v34  ;;  %v8801_v34 = vld [vmem:[#allocation8 + $0x20] ss:$16 sps:$4 sm:$0xff]  }
 0x69b   : > { %8144 = vmatmul.mubr.bf16.gmra.mrb[156].mxu0 %v5623_v62 }
 0x69c   : > { %8147 = vmatprep.mubr.bf16.mxu0 %v5624_v12  ;;  %v5581_v44 = vsel %vm1728_vm1, %v11328_v26, %v8704_v50  ;;  %v5580_v11 = vsel %vm1728_vm1, %v11326_v14, %v8703_v36  ;;  %v8728_v26 = vunpack.i.l.bf16 %v8727_v31  ;;  %v5600_v1 = vsel %vm5586_vm5, %v5583_v3, %v8739_v29  ;;  %v8806_v29 = vld [vmem:[#allocation8 + $0x2c] ss:$16 sps:$4 sm:$0xff]  }
 0x69d   : > { %v8712_v53 = vpop.permute.xlu0 %8711 }
 0x69e   : > { %v8714_v51 = vunpack.i.h.bf16 %v8712_v53  ;;  %v8713_v45 = vunpack.i.l.bf16 %v8712_v53  ;;  %v5582_v46 = vsel %vm1728_vm1, %v11330_v19, %v8728_v26  ;;  %v8804_v26 = vld [vmem:[#allocation8 + $0x28] ss:$16 sps:$4 sm:$0xff]  }
 0x69f   : > { %v5599_v2 = vsel %vm5586_vm5, %v5582_v46, %v8738_v41  ;;  %v9200_v41 = vld [vmem:[%s9731_s26 + $0x28] sm:$0xff]  ;;  %v8809_v46 = vld [vmem:[#allocation8 + $0x44] ss:$16 sps:$4 sm:$0xff]  }
 0x6a0   : > { %v5597_v22 = vsel %vm5586_vm5, %v5580_v11, %v8713_v45  ;;  %v5598_v17 = vsel %vm5586_vm5, %v5581_v44, %v8714_v51  ;;  %v9197_v51 = vld [vmem:[%s9731_s26 + $0x18] sm:$0xff] }
 0x6a1   : > { %v8722_v56 = vpop.permute.xlu0 %8721 }
 0x6a2   : > { %v8724_v28 = vunpack.i.h.bf16 %v8722_v56  ;;  %v8723_v63 = vunpack.i.l.bf16 %v8722_v56  ;;  %v9198_v56 = vld [vmem:[%s9731_s26 + $0x10] sm:$0xff] }
 0x6a4   : > { %v5614_v18 = vsel %vm5603_vm6, %v5597_v22, %v8723_v63  ;;  %v5615_v25 = vsel %vm5603_vm6, %v5598_v17, %v8724_v28 }
 0x6a5   : > { %v5625_v8 = vpack.c.bf16 %v5615_v25, %v5614_v18  ;;  %v8732_v7 = vpop.permute.xlu0 %8731 }
 0x6a6   : > { %v8734_v0 = vunpack.i.h.bf16 %v8732_v7  ;;  %v8733_v33 = vunpack.i.l.bf16 %v8732_v7 }
 0x6a7   : > { %8148 = vmatmul.mubr.bf16.gmra.mrb[160].mxu0 %v5625_v8  ;;  %v9199_v8 = vld [vmem:[%s9731_s26 + $0x20] sm:$0xff] }
 0x6a8   : > { %v5585_v55 = vsel %vm1728_vm1, %v11336_v54, %v8734_v0  ;;  %v5584_v19 = vsel %vm1728_vm1, %v11334_v9, %v8733_v33  ;;  %v8795_v54 = vld [vmem:[#allocation8] ss:$16 sps:$4 sm:$0xff]   ;;  %v8798_v9 = vld [vmem:[#allocation8 + $0x8] ss:$16 sps:$4 sm:$0xff]  }
 0x6a9   : > { %v8742_v14 = vpop.permute.xlu0 %8741  ;;  %6289 = vmatpush1.bf16.msra.mxu1 %v8795_v54  ;;  %6402 = vmatpush1.bf16.msra.mxu0 %v8798_v9  ;;  %v8810_v0 = vld [vmem:[#allocation8 + $0x48] ss:$16 sps:$4 sm:$0xff]   ;;  %v9201_v33 = vld [vmem:[%s9731_s26 + $0x30] sm:$0xff] }
 0x6aa   : > { %v8744_v35 = vunpack.i.h.bf16 %v8742_v14  ;;  %v8743_v40 = vunpack.i.l.bf16 %v8742_v14  ;;  %6290 = vmatprep.subr.bf16.mxu1 %v8803_v49  ;;  %6403 = vmatprep.subr.bf16.mxu0 %v8806_v29  ;;  %v8819_v9 = vld [vmem:[#allocation8 + $0x80] ss:$16 sps:$4 sm:$0xff]  }
 0x6ac   : > { %v5601_v23 = vsel %vm5586_vm5, %v5584_v19, %v8743_v40  ;;  %v5602_v21 = vsel %vm5586_vm5, %v5585_v55, %v8744_v35 }
 0x6ad   : > { %6291 = vmatpush1.bf16.msra.mxu1 %v8801_v34  ;;  %6404 = vmatpush1.bf16.msra.mxu0 %v8804_v26  ;;  %v8840_v34 = vld [vmem:[#allocation8 + $0xe8] ss:$16 sps:$4 sm:$0xff]  }
 0x6ae   : > { %6292 = vmatprep.subr.bf16.mxu1 %v8809_v46 }
 0x6ce   : > { %v8747_v60 = vpop.permute.xlu1 %8746 }
 0x6cf   : > { %v8749_v47 = vunpack.i.h.bf16 %v8747_v60  ;;  %v8748_v57 = vunpack.i.l.bf16 %v8747_v60 }
 0x6d1   : > { %v5616_v27 = vsel %vm5603_vm6, %v5599_v2, %v8748_v57  ;;  %v5617_v48 = vsel %vm5603_vm6, %v5600_v1, %v8749_v47  ;;  %v8812_v47 = vld [vmem:[#allocation8 + $0x4c] ss:$16 sps:$4 sm:$0xff]   ;;  %v8807_v1 = vld [vmem:[#allocation8 + $0x40] ss:$16 sps:$4 sm:$0xff]  }
 0x6d2   : > { %v5626_v61 = vpack.c.bf16 %v5617_v48, %v5616_v27  ;;  %6405 = vmatprep.subr.bf16.mxu0 %v8812_v47  ;;  %6293 = vmatpush1.bf16.msra.mxu1 %v8807_v1  ;;  %v8813_v48 = vld [vmem:[#allocation8 + $0x60] ss:$16 sps:$4 sm:$0xff]   ;;  %v9208_v1 = vld [vmem:[%s9731_s26 + $0x68] sm:$0xff] }
 0x6d3   : > { %v8752_v59 = vpop.permute.xlu0 %8751  ;;  %6406 = vmatpush1.bf16.msra.mxu0 %v8810_v0  ;;  %v9207_v47 = vld [vmem:[%s9731_s26 + $0x60] sm:$0xff] }
 0x6d4   : > { %v8754_v32 = vunpack.i.h.bf16 %v8752_v59  ;;  %v8753_v30 = vunpack.i.l.bf16 %v8752_v59  ;;  %8151 = vmatprep.mubr.bf16.mxu0 %v5626_v61  ;;  %v8815_v61 = vld [vmem:[#allocation8 + $0x64] ss:$16 sps:$4 sm:$0xff]   ;;  %v9202_v59 = vld [vmem:[%s9731_s26 + $0x38] sm:$0xff] }
 0x6d5   : > { %6294 = vmatprep.subr.bf16.mxu1 %v8815_v61  ;;  %v9209_v61 = vld [vmem:[%s9731_s26 + $0x70] sm:$0xff] }
 0x6d6   : > { %v5618_v10 = vsel %vm5603_vm6, %v5601_v23, %v8753_v30  ;;  %v5619_v39 = vsel %vm5603_vm6, %v5602_v21, %v8754_v32  ;;  %v8816_v32 = vld [vmem:[#allocation8 + $0x68] ss:$16 sps:$4 sm:$0xff]   ;;  %v8818_v30 = vld [vmem:[#allocation8 + $0x6c] ss:$16 sps:$4 sm:$0xff]   ;;  %6295 = vmatpush1.bf16.msra.mxu1 %v8813_v48 }
 0x6d7   : > { %v5627_v42 = vpack.c.bf16 %v5619_v39, %v5618_v10  ;;  %6407 = vmatprep.subr.bf16.mxu0 %v8818_v30  ;;  %v8821_v39 = vld [vmem:[#allocation8 + $0x84] ss:$16 sps:$4 sm:$0xff]  }
 0x6d8   : > { %6408 = vmatpush1.bf16.msra.mxu0 %v8816_v32  ;;  %6296 = vmatprep.subr.bf16.mxu1 %v8821_v39 }
 0x6d9   : > { %8152 = vmatmul.mubr.bf16.gmra.mrb[164].mxu0 %v5627_v42  ;;  %v8824_v42 = vld [vmem:[#allocation8 + $0x8c] ss:$16 sps:$4 sm:$0xff]  }
 0x6da   : > { %6433 = vmatprep.mubr.bf16.mxu0 %v12179_v20  ;;  %6409 = vmatprep.subr.bf16.mxu0 %v8824_v42 }
 0x6db   : > { %6297 = vmatpush1.bf16.msra.mxu1 %v8819_v9 }
 0x6dc   : > { %6410 = vmatpush1.bf16.msra.mxu0 %v8822_v37 }
 0x75a   : > { %v8141_v12 = vpop.f32.mrb[152].mxu0 }
 0x75b   : > { %v5733_v16 = vpop.f32.mrb[153].mxu0  ;;  %v5742_v50 = vadd.f32 %v8141_v12, %v11506_v43  ;;  %v9203_v12 = vld [vmem:[%s9731_s26 + $0x40] sm:$0xff] }
 0x75c   : > { %v5734_v13 = vadd.f32 %v11506_v43, %v5733_v16  ;;  %v8142_v38 = vpop.f32.mrb[154].mxu0 }
 0x75d   : > { %v5736_v52 = vpop.f32.mrb[155].mxu0  ;;  %v5745_v62 = vadd.f32 %v8142_v38, %v11506_v43  ;;  %v11528_v44 = vadd.f32 %v9198_v56, %v5742_v50  ;;  %v8825_v38 = vld [vmem:[#allocation8 + $0xa0] ss:$16 sps:$4 sm:$0xff]   ;;  %v8833_v50 = vld [vmem:[#allocation8 + $0xc4] ss:$16 sps:$4 sm:$0xff]  }
 0x75e   : > { %v11510_v6 = vadd.f32 %v9195_v5, %v5734_v13  ;;  %v5737_v58 = vadd.f32 %v11506_v43, %v5736_v52  ;;  %v8827_v13 = vld [vmem:[#allocation8 + $0xa4] ss:$16 sps:$4 sm:$0xff]   ;;  %v8828_v52 = vld [vmem:[#allocation8 + $0xa8] ss:$16 sps:$4 sm:$0xff]   ;;  %v8830_v5 = vld [vmem:[#allocation8 + $0xac] ss:$16 sps:$4 sm:$0xff]  }
 0x75f   : > { %v11525_v45 = vadd.f32 %v9197_v51, %v5745_v62  ;;  %v5864_v28 = vmul.f32 %v11528_v44, %v11528_v44  ;;  %6298 = vmatprep.subr.bf16.mxu1 %v8827_v13  ;;  %6411 = vmatprep.subr.bf16.mxu0 %v8830_v5  ;;  %v8834_v51 = vld [vmem:[#allocation8 + $0xc8] ss:$16 sps:$4 sm:$0xff]   ;;  %v8836_v56 = vld [vmem:[#allocation8 + $0xcc] ss:$16 sps:$4 sm:$0xff]  }
 0x760   : > { %v11514_v4 = vadd.f32 %v9196_v15, %v5737_v58  ;;  %5814 = vadd.xlane.f32.xlu1 %v11510_v6  ;;  %v5862_v36 = vmul.f32 %v11510_v6, %v11510_v6  ;;  %v9204_v58 = vld [vmem:[%s9731_s26 + $0x48] sm:$0xff]  ;;  %6299 = vmatpush1.bf16.msra.mxu1 %v8825_v38 }
 0x761   : > { %v5865_v11 = vmul.f32 %v11525_v45, %v11525_v45  ;;  %6412 = vmatpush1.bf16.msra.mxu0 %v8828_v52  ;;  %6300 = vmatprep.subr.bf16.mxu1 %v8833_v50 }
 0x762   : > { %5816 = vadd.xlane.f32.xlu0 %v11514_v4  ;;  %v5863_v53 = vmul.f32 %v11514_v4, %v11514_v4  ;;  %6413 = vmatprep.subr.bf16.mxu0 %v8836_v56 }
 0x764   : > { %5880 = vadd.xlane.f32.xlu1 %v5863_v53 }
 0x765   : > { %6414 = vmatpush1.bf16.msra.mxu0 %v8834_v51 }
 0x766   : > { %5878 = vadd.xlane.f32.xlu0 %v5862_v36  ;;  %v8831_v36 = vld [vmem:[#allocation8 + $0xc0] ss:$16 sps:$4 sm:$0xff]  }
 0x767   : > { %6301 = vmatpush1.bf16.msra.mxu1 %v8831_v36 }
 0x768   : > { %5820 = vadd.xlane.f32.xlu1 %v11525_v45 }
 0x76a   : > { %5818 = vadd.xlane.f32.xlu0 %v11528_v44 }
 0x76c   : > { %5884 = vadd.xlane.f32.xlu1 %v5865_v11 }
 0x76e   : > { %v8145_v63 = vpop.f32.mrb[156].mxu0  ;;  %5882 = vadd.xlane.f32.xlu0 %v5864_v28 }
 0x76f   : > { %v5749_v22 = vpop.f32.mrb[157].mxu0  ;;  %v5758_v60 = vadd.f32 %v8145_v63, %v11506_v43  ;;  %v9205_v63 = vld [vmem:[%s9731_s26 + $0x50] sm:$0xff] }
 0x770   : > { %v5750_v17 = vadd.f32 %v11506_v43, %v5749_v22  ;;  %v8146_v18 = vpop.f32.mrb[158].mxu0 }
 0x771   : > { %v5752_v25 = vpop.f32.mrb[159].mxu0  ;;  %v5761_v57 = vadd.f32 %v8146_v18, %v11506_v43  ;;  %v11553_v35 = vadd.f32 %v9201_v33, %v5758_v60  ;;  %v8842_v18 = vld [vmem:[#allocation8 + $0xec] ss:$16 sps:$4 sm:$0xff]  }
 0x772   : > { %v11538_v31 = vadd.f32 %v9199_v8, %v5750_v17  ;;  %v5753_v7 = vadd.f32 %v11506_v43, %v5752_v25  ;;  %v8839_v17 = vld [vmem:[#allocation8 + $0xe4] ss:$16 sps:$4 sm:$0xff]   ;;  %v9206_v25 = vld [vmem:[%s9731_s26 + $0x58] sm:$0xff]  ;;  %6415 = vmatprep.subr.bf16.mxu0 %v8842_v18 }
 0x773   : > { %v11556_v55 = vadd.f32 %v9202_v59, %v5761_v57  ;;  %v5868_v10 = vmul.f32 %v11553_v35, %v11553_v35  ;;  %6302 = vmatprep.subr.bf16.mxu1 %v8839_v17  ;;  %6416 = vmatpush1.bf16.msra.mxu0 %v8840_v34 }
 0x774   : > { %v11542_v14 = vadd.f32 %v9200_v41, %v5753_v7  ;;  %5822 = vadd.xlane.f32.xlu0 %v11538_v31  ;;  %v5866_v3 = vmul.f32 %v11538_v31, %v11538_v31  ;;  %v8837_v7 = vld [vmem:[#allocation8 + $0xe0] ss:$16 sps:$4 sm:$0xff]  }
 0x775   : > { %v5869_v24 = vmul.f32 %v11556_v55, %v11556_v55  ;;  %6303 = vmatpush1.bf16.msra.mxu1 %v8837_v7 }
 0x776   : > { %5824 = vadd.xlane.f32.xlu1 %v11542_v14  ;;  %v5867_v2 = vmul.f32 %v11542_v14, %v11542_v14 }
 0x778   : > { %5886 = vadd.xlane.f32.xlu0 %v5866_v3 }
 0x77a   : > { %v8149_v40 = vpop.f32.mrb[160].mxu0  ;;  %5888 = vadd.xlane.f32.xlu1 %v5867_v2 }
 0x77b   : > { %v5765_v27 = vpop.f32.mrb[161].mxu0  ;;  %v5774_v62 = vadd.f32 %v8149_v40, %v11506_v43 }
 0x77c   : > { %v8150_v19 = vpop.f32.mrb[162].mxu0  ;;  %5826 = vadd.xlane.f32.xlu0 %v11553_v35  ;;  %v5766_v21 = vadd.f32 %v11506_v43, %v5765_v27 }
 0x77d   : > { %v5768_v23 = vpop.f32.mrb[163].mxu0  ;;  %v5777_v11 = vadd.f32 %v8150_v19, %v11506_v43  ;;  %v11581_v22 = vadd.f32 %v9205_v63, %v5774_v62  ;;  %v9210_v19 = vld [vmem:[%s9731_s26 + $0x78] sm:$0xff]  ;;  %s7100_s26 = scalar_lea.sflag [#allocation4], %s9725_s15 }
 0x77e   : > { %5828 = vadd.xlane.f32.xlu1 %v11556_v55  ;;  %v5769_v54 = vadd.f32 %v11506_v43, %v5768_v23  ;;  %v11567_v16 = vadd.f32 %v9203_v12, %v5766_v21  ;;  %v8843_v23 = vld [vmem:[#allocation10 + $0x40] sm:$0xff]  }
 0x77f   : > { %v11584_v8 = vadd.f32 %v9206_v25, %v5777_v11  ;;  %v5872_v49 = vmul.f32 %v11581_v22, %v11581_v22  ;;  %v11620_v21 = vld [vmem:[#allocation10 + $0xc0] sm:$0xff]   ;;  %7579 = vmatprep.subr.bf16.mxu1 %v8843_v23 }
 0x780   : > { %5890 = vadd.xlane.f32.xlu0 %v5868_v10  ;;  %v11570_v15 = vadd.f32 %v9204_v58, %v5769_v54  ;;  %v5870_v53 = vmul.f32 %v11567_v16, %v11567_v16  ;;  %7643 = vmatprep.subr.bf16.mxu0 %v11620_v21 }
 0x781   : > { %v5873_v26 = vmul.f32 %v11584_v8, %v11584_v8 }
 0x782   : > { %5892 = vadd.xlane.f32.xlu1 %v5869_v24  ;;  %v5871_v28 = vmul.f32 %v11570_v15, %v11570_v15 }
 0x784   : > { %5830 = vadd.xlane.f32.xlu0 %v11567_v16 }
 0x786   : > { %5832 = vadd.xlane.f32.xlu1 %v11570_v15 }
 0x788   : > { %5894 = vadd.xlane.f32.xlu0 %v5870_v53 }
 0x78a   : > { %5896 = vadd.xlane.f32.xlu1 %v5871_v28 }
 0x78c   : > { %5834 = vadd.xlane.f32.xlu0 %v11581_v22 }
 0x78e   : > { %5836 = vadd.xlane.f32.xlu1 %v11584_v8 }
 0x790   : > { %5898 = vadd.xlane.f32.xlu0 %v5872_v49 }
 0x792   : > { %5900 = vadd.xlane.f32.xlu1 %v5873_v26 }
 0x7ac   : > { %v8153_v29 = vpop.f32.mrb[164].mxu0 }
 0x7ad   : > { %v5781_v41 = vpop.f32.mrb[165].mxu0  ;;  %v5790_v33 = vadd.f32 %v8153_v29, %v11506_v43 }
 0x7ae   : > { %v5782_v60 = vadd.f32 %v11506_v43, %v5781_v41  ;;  %v8154_v3 = vpop.f32.mrb[166].mxu0 }
 0x7af   : > { %v5784_v46 = vpop.f32.mrb[167].mxu0  ;;  %v5793_v27 = vadd.f32 %v8154_v3, %v11506_v43  ;;  %v11609_v59 = vadd.f32 %v9209_v61, %v5790_v33  ;;  %v11629_v3 = vld [vmem:[%s11984_s6] ss:$0 sm:$0xff] }
 0x7b0   : > { %v11594_v57 = vadd.f32 %v9207_v47, %v5782_v60  ;;  %v5785_v2 = vadd.f32 %v11506_v43, %v5784_v46 }
 0x7b1   : > { %v11612_v32 = vadd.f32 %v9210_v19, %v5793_v27  ;;  %v5876_v30 = vmul.f32 %v11609_v59, %v11609_v59 }
 0x7b2   : > { %v11598_v0 = vadd.f32 %v9208_v1, %v5785_v2  ;;  %5838 = vadd.xlane.f32.xlu0 %v11594_v57  ;;  %v5874_v40 = vmul.f32 %v11594_v57, %v11594_v57 }
 0x7b3   : > { %v5877_v43 = vmul.f32 %v11612_v32, %v11612_v32 }
 0x7b4   : > { %5840 = vadd.xlane.f32.xlu1 %v11598_v0  ;;  %v5875_v48 = vmul.f32 %v11598_v0, %v11598_v0 }
 0x7b6   : > { %5902 = vadd.xlane.f32.xlu0 %v5874_v40 }
 0x7b8   : > { %5904 = vadd.xlane.f32.xlu1 %v5875_v48 }
 0x7ba   : > { %5842 = vadd.xlane.f32.xlu0 %v11609_v59 }
 0x7bc   : > { %5844 = vadd.xlane.f32.xlu1 %v11612_v32 }
 0x7be   : > { %5906 = vadd.xlane.f32.xlu0 %v5876_v30  ;;  %v11640_v30 = vld [vmem:[%s11985_s7] ss:$0 sm:$0xff] }
 0x7c0   : > { %5908 = vadd.xlane.f32.xlu1 %v5877_v43 }
 0x7ed   : > { %v5815_v10 = vpop.xlane.xlu1 %5814 }
 0x7ee   : > { %v5846_v42 = vmul.f32 0.0078125, %v5815_v10 }
 0x7ef   : > { %v5817_v39 = vpop.xlane.xlu0 %5816 }
 0x7f0   : > { %v5847_v54 = vmul.f32 0.0078125, %v5817_v39  ;;  %v5926_v13 = vmul.f32 %v5846_v42, %v5846_v42  ;;  %v5958_v46 = vsub.f32 %v11510_v6, %v5846_v42 }
 0x7f1   : > { %v5881_v24 = vpop.xlane.xlu1 %5880 }
 0x7f2   : > { %v5927_v9 = vmul.f32 %v5847_v54, %v5847_v54  ;;  %v5911_v37 = vmul.f32 0.0078125, %v5881_v24  ;;  %v5959_v26 = vsub.f32 %v11514_v4, %v5847_v54 }
 0x7f3   : > { %v5879_v12 = vpop.xlane.xlu0 %5878 }
 0x7f4   : > { %v5943_v38 = vsub.f32 %v5911_v37, %v5927_v9  ;;  %v5910_v52 = vmul.f32 0.0078125, %v5879_v12 }
 0x7f5   : > { %v5821_v5 = vpop.xlane.xlu1 %5820 }
 0x7f6   : > { %v5975_v58 = vadd.f32 1e-05, %v5943_v38  ;;  %v5942_v62 = vsub.f32 %v5910_v52, %v5926_v13  ;;  %v5849_v53 = vmul.f32 0.0078125, %v5821_v5 }
 0x7f7   : > { %v5819_v50 = vpop.xlane.xlu0 %5818 }
 0x7f8   : > { %9163 = vrsqrt.f32 %v5975_v58  ;;  %v5974_v36 = vadd.f32 1e-05, %v5942_v62  ;;  %v5848_v51 = vmul.f32 0.0078125, %v5819_v50  ;;  %v5929_v11 = vmul.f32 %v5849_v53, %v5849_v53 }
 0x7f9   : > { %v5885_v56 = vpop.xlane.xlu1 %5884  ;;  %v5961_v54 = vsub.f32 %v11525_v45, %v5849_v53  ;;  %v11651_v53 = vld [vmem:[#allocation10 + $0x80] sm:$0xff]  }
 0x7fa   : > { %9165 = vrsqrt.f32 %v5974_v36  ;;  %v5913_v28 = vmul.f32 0.0078125, %v5885_v56  ;;  %v5928_v17 = vmul.f32 %v5848_v51, %v5848_v51  ;;  %v5960_v5 = vsub.f32 %v11528_v44, %v5848_v51  ;;  %v8845_v36 = vld [vmem:[#allocation10] sm:$0xff]  }
 0x7fb   : > { %v5883_v63 = vpop.xlane.xlu0 %5882 }
 0x7fc   : > { %v5945_v18 = vsub.f32 %v5913_v28, %v5929_v11  ;;  %v5912_v25 = vmul.f32 0.0078125, %v5883_v63  ;;  %v8847_v28 = vld [vmem:[#allocation10 + $0x48] sm:$0xff]  }
 0x7fe   : > { %v5977_v7 = vadd.f32 1e-05, %v5945_v18  ;;  %v5944_v34 = vsub.f32 %v5912_v25, %v5928_v17 }
 0x800   : > { %9167 = vrsqrt.f32 %v5977_v7  ;;  %v5976_v49 = vadd.f32 1e-05, %v5944_v34  ;;  %v11656_v7 = vld [vmem:[#allocation10 + $0xc8] sm:$0xff]  }
 0x801   : > { %v5823_v29 = vpop.xlane.xlu0 %5822 }
 0x802   : > { %v9164_v41 = vpop.eup %9163  ;;  %9169 = vrsqrt.f32 %v5976_v49  ;;  %v11624_v60 = vmul.f32 0.0078125, %v5823_v29  ;;  %v8849_v29 = vld [vmem:[#allocation10 + $0x8] sm:$0xff]  }
 0x803   : > { %v5825_v47 = vpop.xlane.xlu1 %5824  ;;  %v6007_v2 = vmul.f32 %v9164_v41, %v5959_v26 }
 0x804   : > { %v9166_v1 = vpop.eup %9165  ;;  %v11632_v33 = vmul.f32 0.0078125, %v5825_v47  ;;  %v5930_v61 = vmul.f32 %v11624_v60, %v11624_v60 }
 0x805   : > { %v5887_v40 = vpop.xlane.xlu0 %5886  ;;  %v6006_v27 = vmul.f32 %v9166_v1, %v5958_v46  ;;  %v6029_v48 = vmul.f32 %v11629_v3, %v6007_v2  ;;  %v11666_v2 = vld [vmem:[#allocation10 + $0x88] sm:$0xff]   ;;  %v8851_v1 = vld [vmem:[#allocation10 + $0x50] sm:$0xff]  }
 0x806   : > { %v5914_v19 = vmul.f32 0.0078125, %v5887_v40  ;;  %v5931_v10 = vmul.f32 %v11632_v33, %v11632_v33 }
 0x807   : > { %v5889_v43 = vpop.xlane.xlu1 %5888  ;;  %v6028_v23 = vmul.f32 %v11629_v3, %v6006_v27  ;;  %v6051_v37 = vadd.f32 %v11640_v30, %v6029_v48 }
 0x808   : > { %v5946_v39 = vsub.f32 %v5914_v19, %v5930_v61  ;;  %v5915_v42 = vmul.f32 0.0078125, %v5889_v43 }
 0x809   : > { %v5827_v24 = vpop.xlane.xlu0 %5826  ;;  %v6050_v9 = vadd.f32 %v11640_v30, %v6028_v23 }
 0x80a   : > { %v9168_v12 = vpop.eup %9167  ;;  %v5978_v13 = vadd.f32 1e-05, %v5946_v39  ;;  %v5947_v38 = vsub.f32 %v5915_v42, %v5931_v10  ;;  %v11648_v52 = vmul.f32 0.0078125, %v5827_v24  ;;  %v11673_v39 = vld [vmem:[#allocation10 + $0xd0] sm:$0xff]  }
 0x80b   : > { %v5829_v58 = vpop.xlane.xlu1 %5828  ;;  %v6066_v62 = vpack.c.bf16 %v6051_v37, %v6050_v9  ;;  %v6009_v50 = vmul.f32 %v9168_v12, %v5961_v54  ;;  %v8853_v42 = vld [vmem:[#allocation10 + $0x10] sm:$0xff]   ;;  %v8855_v9 = vld [vmem:[#allocation10 + $0x58] sm:$0xff]   ;;  %v5962_v37 = vsub.f32 %v11538_v31, %v11624_v60  ;;  %v5963_v60 = vsub.f32 %v11542_v14, %v11632_v33 }
 0x80c   : > { %v9170_v56 = vpop.eup %9169  ;;  %9171 = vrsqrt.f32 %v5978_v13  ;;  %v5979_v11 = vadd.f32 1e-05, %v5947_v38  ;;  %v11653_v63 = vmul.f32 0.0078125, %v5829_v58  ;;  %v5932_v51 = vmul.f32 %v11648_v52, %v11648_v52  ;;  %v11676_v24 = vld [vmem:[#allocation10 + $0x90] sm:$0xff]   ;;  %v11682_v38 = vld [vmem:[#allocation10 + $0xd8] sm:$0xff]  }
 0x80d   : > { %6321 = vmatmul.mubr.bf16.vlgmr.msra.gmra.mrb[152].mxu1 %v6066_v62  ;;  %6434 = vmatmul.mubr.bf16.vlgmr.msra.gmra.mrb[168].mxu0 %v6066_v62  ;;  %v5891_v17 = vpop.xlane.xlu0 %5890  ;;  %v6008_v18 = vmul.f32 %v9170_v56, %v5960_v5  ;;  %v6031_v25 = vmul.f32 %v11629_v3, %v6009_v50  ;;  %v8857_v56 = vld [vmem:[#allocation10 + $0x18] sm:$0xff]  }
 0x80e   : > { %9173 = vrsqrt.f32 %v5979_v11  ;;  %v5916_v34 = vmul.f32 0.0078125, %v5891_v17  ;;  %6330 = vmatprep.mubr.bf16.mxu1 %v12179_v20  ;;  %6443 = vmatprep.mubr.bf16.mxu0 %v12179_v20  ;;  %v5933_v41 = vmul.f32 %v11653_v63, %v11653_v63 }
 0x80f   : > { %v5893_v49 = vpop.xlane.xlu1 %5892  ;;  %v6030_v26 = vmul.f32 %v11629_v3, %v6008_v18  ;;  %7580 = vmatpush3.bf16.msra.mxu1 %v8845_v36  ;;  %7644 = vmatpush3.bf16.msra.mxu0 %v11651_v53  ;;  %v6053_v48 = vadd.f32 %v11640_v30, %v6031_v25  ;;  %v11694_v25 = vld [vmem:[#allocation10 + $0x98] sm:$0xff]  }
 0x810   : > { %v5948_v46 = vsub.f32 %v5916_v34, %v5932_v51  ;;  %v5917_v47 = vmul.f32 0.0078125, %v5893_v49  ;;  %7581 = vmatprep.subr.bf16.mxu1 %v8847_v28  ;;  %7645 = vmatprep.subr.bf16.mxu0 %v11656_v7  ;;  %v8859_v51 = vld [vmem:[#allocation10 + $0x60] sm:$0xff]  }
 0x811   : > { %v5831_v40 = vpop.xlane.xlu0 %5830  ;;  %v6052_v27 = vadd.f32 %v11640_v30, %v6030_v26  ;;  %v11698_v26 = vld [vmem:[#allocation10 + $0xe0] sm:$0xff]  }
 0x812   : > { %v5980_v61 = vadd.f32 1e-05, %v5948_v46  ;;  %v5949_v19 = vsub.f32 %v5917_v47, %v5933_v41  ;;  %v11671_v43 = vmul.f32 0.0078125, %v5831_v40  ;;  %v8861_v40 = vld [vmem:[#allocation10 + $0x20] sm:$0xff]  }
 0x813   : > { %v5833_v23 = vpop.xlane.xlu1 %5832  ;;  %v6067_v10 = vpack.c.bf16 %v6053_v48, %v6052_v27  ;;  %7582 = vmatpush3.bf16.msra.mxu1 %v8849_v29  ;;  %7646 = vmatpush3.bf16.msra.mxu0 %v11666_v2  ;;  %v11704_v48 = vld [vmem:[#allocation10 + $0xa0] sm:$0xff]  }
 0x814   : > { %9175 = vrsqrt.f32 %v5980_v61  ;;  %v5981_v54 = vadd.f32 1e-05, %v5949_v19  ;;  %7583 = vmatprep.subr.bf16.mxu1 %v8851_v1  ;;  %v11680_v12 = vmul.f32 0.0078125, %v5833_v23  ;;  %v5934_v58 = vmul.f32 %v11671_v43, %v11671_v43  ;;  %7647 = vmatprep.subr.bf16.mxu0 %v11673_v39  ;;  %v8863_v61 = vld [vmem:[#allocation10 + $0x68] sm:$0xff]  }
 0x815   : > { %6331 = vmatmul.mubr.bf16.gmra.mrb[156].mxu1 %v6067_v10  ;;  %6444 = vmatmul.mubr.bf16.gmra.mrb[172].mxu0 %v6067_v10  ;;  %v5895_v13 = vpop.xlane.xlu0 %5894  ;;  %v5964_v19 = vsub.f32 %v11553_v35, %v11648_v52 }
 0x816   : > { %v9172_v5 = vpop.eup %9171  ;;  %9177 = vrsqrt.f32 %v5981_v54  ;;  %v5918_v62 = vmul.f32 0.0078125, %v5895_v13  ;;  %6340 = vmatprep.mubr.bf16.mxu1 %v12179_v20  ;;  %6453 = vmatprep.mubr.bf16.mxu0 %v12179_v20  ;;  %v5935_v28 = vmul.f32 %v11680_v12, %v11680_v12 }
 0x817   : > { %v5897_v50 = vpop.xlane.xlu1 %5896  ;;  %v6010_v36 = vmul.f32 %v9172_v5, %v5962_v37  ;;  %7584 = vmatpush3.bf16.msra.mxu1 %v8853_v42  ;;  %7648 = vmatpush3.bf16.msra.mxu0 %v11676_v24  ;;  %v5965_v5 = vsub.f32 %v11556_v55, %v11653_v63 }
 0x818   : > { %v9174_v11 = vpop.eup %9173  ;;  %v5950_v17 = vsub.f32 %v5918_v62, %v5934_v58  ;;  %v5919_v18 = vmul.f32 0.0078125, %v5897_v50  ;;  %7585 = vmatprep.subr.bf16.mxu1 %v8855_v9  ;;  %7649 = vmatprep.subr.bf16.mxu0 %v11682_v38 }
 0x819   : > { %v5835_v34 = vpop.xlane.xlu0 %5834  ;;  %v6011_v33 = vmul.f32 %v9174_v11, %v5963_v60  ;;  %v6032_v49 = vmul.f32 %v11629_v3, %v6010_v36  ;;  %v11715_v60 = vld [vmem:[#allocation10 + $0xe8] sm:$0xff]  }
 0x81a   : > { %v5982_v29 = vadd.f32 1e-05, %v5950_v17  ;;  %v5951_v41 = vsub.f32 %v5919_v18, %v5935_v28  ;;  %v11700_v46 = vmul.f32 0.0078125, %v5835_v34 }
 0x81b   : > { %v5837_v47 = vpop.xlane.xlu1 %5836  ;;  %v6033_v1 = vmul.f32 %v11629_v3, %v6011_v33  ;;  %7586 = vmatpush3.bf16.msra.mxu1 %v8857_v56  ;;  %7650 = vmatpush3.bf16.msra.mxu0 %v11694_v25  ;;  %v6054_v42 = vadd.f32 %v11640_v30, %v6032_v49  ;;  %v5966_v33 = vsub.f32 %v11567_v16, %v11671_v43 }
 0x81c   : > { %9179 = vrsqrt.f32 %v5982_v29  ;;  %v5983_v27 = vadd.f32 1e-05, %v5951_v41  ;;  %7587 = vmatprep.subr.bf16.mxu1 %v8859_v51  ;;  %v5857_v23 = vmul.f32 0.0078125, %v5837_v47  ;;  %7651 = vmatprep.subr.bf16.mxu0 %v11698_v26  ;;  %v5936_v37 = vmul.f32 %v11700_v46, %v11700_v46 }
 0x81d   : > { %v5899_v10 = vpop.xlane.xlu0 %5898  ;;  %v6055_v54 = vadd.f32 %v11640_v30, %v6033_v1  ;;  %v5967_v47 = vsub.f32 %v11570_v15, %v11680_v12 }
 0x81e   : > { %v9176_v9 = vpop.eup %9175  ;;  %9181 = vrsqrt.f32 %v5983_v27  ;;  %v5920_v13 = vmul.f32 0.0078125, %v5899_v10  ;;  %v5937_v36 = vmul.f32 %v5857_v23, %v5857_v23  ;;  %v5968_v10 = vsub.f32 %v11581_v22, %v11700_v46 }
 0x81f   : > { %v5901_v58 = vpop.xlane.xlu1 %5900  ;;  %v6068_v62 = vpack.c.bf16 %v6055_v54, %v6054_v42  ;;  %v6012_v52 = vmul.f32 %v9176_v9, %v5964_v19  ;;  %7588 = vmatpush3.bf16.msra.mxu1 %v8861_v40  ;;  %7652 = vmatpush3.bf16.msra.mxu0 %v11704_v48  ;;  %v5969_v9 = vsub.f32 %v11584_v8, %v5857_v23 }
 0x820   : > { %v9178_v50 = vpop.eup %9177  ;;  %v5952_v56 = vsub.f32 %v5920_v13, %v5936_v37  ;;  %v5921_v11 = vmul.f32 0.0078125, %v5901_v58  ;;  %7589 = vmatprep.subr.bf16.mxu1 %v8863_v61  ;;  %7653 = vmatprep.subr.bf16.mxu0 %v11715_v60 }
 0x821   : > { %6341 = vmatmul.mubr.bf16.gmra.mrb[160].mxu1 %v6068_v62  ;;  %6454 = vmatmul.mubr.bf16.gmra.mrb[176].mxu0 %v6068_v62  ;;  %v6013_v28 = vmul.f32 %v9178_v50, %v5965_v5  ;;  %v6034_v17 = vmul.f32 %v11629_v3, %v6012_v52 }
 0x822   : > { %v5984_v18 = vadd.f32 1e-05, %v5952_v56  ;;  %v5953_v63 = vsub.f32 %v5921_v11, %v5937_v36  ;;  %6350 = vmatprep.mubr.bf16.mxu1 %v12179_v20  ;;  %6463 = vmatprep.mubr.bf16.mxu0 %v12179_v20 }
 0x823   : > { %v6035_v51 = vmul.f32 %v11629_v3, %v6013_v28  ;;  %v6056_v49 = vadd.f32 %v11640_v30, %v6034_v17 }
 0x824   : > { %9183 = vrsqrt.f32 %v5984_v18  ;;  %v5985_v34 = vadd.f32 1e-05, %v5953_v63 }
 0x825   : > { %v6057_v29 = vadd.f32 %v11640_v30, %v6035_v51 }
 0x826   : > { %v9180_v41 = vpop.eup %9179  ;;  %9185 = vrsqrt.f32 %v5985_v34 }
 0x827   : > { %v6069_v1 = vpack.c.bf16 %v6057_v29, %v6056_v49  ;;  %v6014_v40 = vmul.f32 %v9180_v41, %v5966_v33 }
 0x828   : > { %v9182_v27 = vpop.eup %9181 }
 0x829   : > { %6351 = vmatmul.mubr.bf16.gmra.mrb[164].mxu1 %v6069_v1  ;;  %6464 = vmatmul.mubr.bf16.gmra.mrb[180].mxu0 %v6069_v1  ;;  %v6015_v61 = vmul.f32 %v9182_v27, %v5967_v47  ;;  %v6036_v19 = vmul.f32 %v11629_v3, %v6014_v40 }
 0x82a   : > { %6360 = vmatprep.mubr.bf16.mxu1 %v12179_v20  ;;  %6473 = vmatprep.mubr.bf16.mxu0 %v12179_v20 }
 0x82b   : > { %v6037_v43 = vmul.f32 %v11629_v3, %v6015_v61  ;;  %v6058_v42 = vadd.f32 %v11640_v30, %v6036_v19 }
 0x82d   : > { %v6059_v12 = vadd.f32 %v11640_v30, %v6037_v43 }
 0x82e   : > { %v9184_v54 = vpop.eup %9183 }
 0x82f   : > { %v6070_v37 = vpack.c.bf16 %v6059_v12, %v6058_v42  ;;  %v6016_v13 = vmul.f32 %v9184_v54, %v5968_v10 }
 0x830   : > { %v9186_v5 = vpop.eup %9185 }
 0x831   : > { %6361 = vmatmul.mubr.bf16.gmra.mrb[168].mxu1 %v6070_v37  ;;  %6474 = vmatmul.mubr.bf16.gmra.mrb[184].mxu0 %v6070_v37  ;;  %v6017_v58 = vmul.f32 %v9186_v5, %v5969_v9  ;;  %v6038_v62 = vmul.f32 %v11629_v3, %v6016_v13 }
 0x832   : > { %6370 = vmatprep.mubr.bf16.mxu1 %v12179_v20  ;;  %6483 = vmatprep.mubr.bf16.mxu0 %v12179_v20 }
 0x833   : > { %v6039_v46 = vmul.f32 %v11629_v3, %v6017_v58  ;;  %v6060_v52 = vadd.f32 %v11640_v30, %v6038_v62 }
 0x835   : > { %v6061_v50 = vadd.f32 %v11640_v30, %v6039_v46 }
 0x837   : > { %v6071_v36 = vpack.c.bf16 %v6061_v50, %v6060_v52 }
 0x839   : > { %6371 = vmatmul.mubr.bf16.gmra.mrb[172].mxu1 %v6071_v36  ;;  %6484 = vmatmul.mubr.bf16.gmra.mrb[188].mxu0 %v6071_v36 }
 0x83a   : > { %6380 = vmatprep.mubr.bf16.mxu1 %v12179_v20  ;;  %6493 = vmatprep.mubr.bf16.mxu0 %v12179_v20 }
 0x83f   : > { %v5839_v23 = vpop.xlane.xlu0 %5838 }
 0x840   : > { %v5858_v56 = vmul.f32 0.0078125, %v5839_v23 }
 0x841   : > { %v5841_v11 = vpop.xlane.xlu1 %5840 }
 0x842   : > { %v5859_v28 = vmul.f32 0.0078125, %v5841_v11  ;;  %v5938_v18 = vmul.f32 %v5858_v56, %v5858_v56  ;;  %v5970_v58 = vsub.f32 %v11594_v57, %v5858_v56 }
 0x843   : > { %v5903_v17 = vpop.xlane.xlu0 %5902 }
 0x844   : > { %v5922_v63 = vmul.f32 0.0078125, %v5903_v17  ;;  %v5939_v34 = vmul.f32 %v5859_v28, %v5859_v28  ;;  %v5971_v46 = vsub.f32 %v11598_v0, %v5859_v28 }
 0x845   : > { %v5905_v51 = vpop.xlane.xlu1 %5904 }
 0x846   : > { %v5954_v33 = vsub.f32 %v5922_v63, %v5938_v18  ;;  %v5923_v49 = vmul.f32 0.0078125, %v5905_v51 }
 0x847   : > { %v5843_v29 = vpop.xlane.xlu0 %5842 }
 0x848   : > { %v5986_v41 = vadd.f32 1e-05, %v5954_v33  ;;  %v5955_v47 = vsub.f32 %v5923_v49, %v5939_v34  ;;  %v5860_v1 = vmul.f32 0.0078125, %v5843_v29 }
 0x849   : > { %v5845_v40 = vpop.xlane.xlu1 %5844 }
 0x84a   : > { %9187 = vrsqrt.f32 %v5986_v41  ;;  %v5987_v27 = vadd.f32 1e-05, %v5955_v47  ;;  %v5861_v61 = vmul.f32 0.0078125, %v5845_v40  ;;  %v5940_v43 = vmul.f32 %v5860_v1, %v5860_v1  ;;  %v8865_v47 = vld [vmem:[#allocation10 + $0x28] sm:$0xff]  }
 0x84b   : > { %v5907_v19 = vpop.xlane.xlu0 %5906  ;;  %v5972_v17 = vsub.f32 %v11609_v59, %v5860_v1  ;;  %v11758_v1 = vld [vmem:[#allocation10 + $0xa8] sm:$0xff]   ;;  %7590 = vmatpush3.bf16.msra.mxu1 %v8865_v47 }
 0x84c   : > { %9189 = vrsqrt.f32 %v5987_v27  ;;  %v5924_v10 = vmul.f32 0.0078125, %v5907_v19  ;;  %v5941_v12 = vmul.f32 %v5861_v61, %v5861_v61  ;;  %v5973_v56 = vsub.f32 %v11612_v32, %v5861_v61  ;;  %7654 = vmatpush3.bf16.msra.mxu0 %v11758_v1  ;;  %v8867_v19 = vld [vmem:[#allocation10 + $0x70] sm:$0xff]  }
 0x84d   : > { %v5909_v42 = vpop.xlane.xlu1 %5908  ;;  %7591 = vmatprep.subr.bf16.mxu1 %v8867_v19 }
 0x84e   : > { %v5956_v54 = vsub.f32 %v5924_v10, %v5940_v43  ;;  %v5925_v9 = vmul.f32 0.0078125, %v5909_v42  ;;  %v11763_v43 = vld [vmem:[#allocation10 + $0xf0] sm:$0xff]  }
 0x84f   : > { %v8869_v10 = vld [vmem:[#allocation10 + $0x30] sm:$0xff]   ;;  %7655 = vmatprep.subr.bf16.mxu0 %v11763_v43 }
 0x850   : > { %v5988_v37 = vadd.f32 1e-05, %v5956_v54  ;;  %v5957_v13 = vsub.f32 %v5925_v9, %v5941_v12  ;;  %v11765_v42 = vld [vmem:[#allocation10 + $0xb0] sm:$0xff]   ;;  %7592 = vmatpush3.bf16.msra.mxu1 %v8869_v10  ;;  %v11772_v12 = vld [vmem:[#allocation10 + $0xb8] sm:$0xff]  }
 0x851   : > { %7656 = vmatpush3.bf16.msra.mxu0 %v11765_v42  ;;  %v12180_v54 = vld [vmem:[#allocation29_spill] sm:$0xff] }
 0x852   : > { %9191 = vrsqrt.f32 %v5988_v37  ;;  %v5989_v5 = vadd.f32 1e-05, %v5957_v13  ;;  %v6110_v9 = vsub.s32 0, %v12180_v54  ;;  %v6118_v37 = vsub.s32 2, %v12180_v54  ;;  %v6106_v13 = vld [vmem:[%s12181_s17] sm:$0xf] }
 0x853   : > { %s9359_s17 = scalar_lea.vmem %s9358_s29, 4096 }
 0x854   : > { %v9188_v62 = vpop.eup %9187  ;;  %9193 = vrsqrt.f32 %v5989_v5  ;;  %v6114_v5 = vsub.s32 1, %v12180_v54  ;;  %p9361_p2 = scmp.lt.s32.totalorder %s9359_s17, %s9353_s25 }
 0x855   : > { %v6018_v52 = vmul.f32 %v9188_v62, %v5970_v58  ;;  %v6122_v58 = vsub.s32 3, %v12180_v54  ;;  %v11783_v62 = vrot.slane %v6106_v13, %v6110_v9 }
 0x856   : > { %v9190_v50 = vpop.eup %9189  ;;  %p9362_p1 = por %p9361_p2, %p9360_p12 }
 0x857   : > { %v6019_v36 = vmul.f32 %v9190_v50, %v5971_v46  ;;  %v6040_v23 = vmul.f32 %v11629_v3, %v6018_v52  ;;  %v11785_v46 = vrot.slane %v6106_v13, %v6118_v37  ;;  %v11787_v52 = vrot.slane %v6106_v13, %v6114_v5 }
 0x858   : > { %v11789_v50 = vrot.slane %v6106_v13, %v6122_v58  ;;  %p9363_p13 = pnand %p9362_p1, %p9356_p7 }
 0x859   : > { %v6041_v11 = vmul.f32 %v11629_v3, %v6019_v36  ;;  %v6062_v18 = vadd.f32 %v11640_v30, %v6040_v23 }
 0x85b   : > { %v6063_v63 = vadd.f32 %v11640_v30, %v6041_v11 }
 0x85c   : > { %v9192_v51 = vpop.eup %9191 }
 0x85d   : > { %v6072_v34 = vpack.c.bf16 %v6063_v63, %v6062_v18  ;;  %v6020_v33 = vmul.f32 %v9192_v51, %v5972_v17 }
 0x85e   : > { %v9194_v49 = vpop.eup %9193 }
 0x85f   : > { %6381 = vmatmul.mubr.bf16.gmra.mrb[176].mxu1 %v6072_v34  ;;  %6494 = vmatmul.mubr.bf16.gmra.mrb[192].mxu0 %v6072_v34  ;;  %v6021_v28 = vmul.f32 %v9194_v49, %v5973_v56  ;;  %v6042_v29 = vmul.f32 %v11629_v3, %v6020_v33 }
 0x860   : > { %6390 = vmatprep.mubr.bf16.mxu1 %v12179_v20  ;;  %6503 = vmatprep.mubr.bf16.mxu0 %v12179_v20  ;;  %v8871_v20 = vld [vmem:[#allocation10 + $0x78] sm:$0xff]  }
 0x861   : > { %v6043_v41 = vmul.f32 %v11629_v3, %v6021_v28  ;;  %v6064_v40 = vadd.f32 %v11640_v30, %v6042_v29  ;;  %v11768_v3 = vld [vmem:[#allocation10 + $0xf8] sm:$0xff]   ;;  %7593 = vmatprep.subr.bf16.mxu1 %v8871_v20 }
 0x862   : > { %7657 = vmatprep.subr.bf16.mxu0 %v11768_v3 }
 0x863   : > { %v6065_v27 = vadd.f32 %v11640_v30, %v6043_v41  ;;  %v8873_v30 = vld [vmem:[#allocation10 + $0x38] sm:$0xff]   ;;  %7658 = vmatpush3.bf16.msra.mxu0 %v11772_v12 }
 0x864   : > { %7594 = vmatpush3.bf16.msra.mxu1 %v8873_v30 }
 0x865   : > { %v6073_v61 = vpack.c.bf16 %v6065_v27, %v6064_v40  ;;  %8155 = vmatprep.subr.bf16.mxu1 %v11620_v21 }
 0x867   : > { %6391 = vmatmul.mubr.bf16.gmra.mrb[180].mxu1 %v6073_v61  ;;  %6504 = vmatmul.mubr.bf16.gmra.mrb[196].mxu0 %v6073_v61 }
 0x8e0   : > { %v6322_v21 = vpop.f32.mrb[152].mxu1  ;;  %v6435_v36 = vpop.f32.mrb[168].mxu0 }
 0x8e1   : > { %v6323_v23 = vadd.f32 %v6322_v21, %v11783_v62  ;;  %v6436_v11 = vadd.f32 %v6435_v36, %v11785_v46  ;;  %v6324_v17 = vpop.f32.mrb[153].mxu1  ;;  %v6437_v18 = vpop.f32.mrb[169].mxu0 }
 0x8e2   : > { %v6325_v63 = vadd.f32 %v6324_v17, %v11787_v52  ;;  %v6438_v51 = vadd.f32 %v6437_v18, %v11789_v50  ;;  %v6326_v56 = vpop.f32.mrb[154].mxu1  ;;  %v6439_v34 = vpop.f32.mrb[170].mxu0 }
 0x8e3   : > { %v6327_v33 = vadd.f32 %v6326_v56, %v11783_v62  ;;  %v6440_v49 = vadd.f32 %v6439_v34, %v11785_v46  ;;  %v6328_v28 = vpop.f32.mrb[155].mxu1  ;;  %v6441_v29 = vpop.f32.mrb[171].mxu0  ;;  %v6514_v40 = vmax.f32 %v6323_v23, 0.0  ;;  %v6516_v27 = vmax.f32 %v6436_v11, 0.0 }
 0x8e4   : > { %v6329_v41 = vadd.f32 %v6328_v28, %v11787_v52  ;;  %v6442_v47 = vadd.f32 %v6441_v29, %v11789_v50  ;;  %v6515_v10 = vmax.f32 %v6325_v63, 0.0  ;;  %v6517_v20 = vmax.f32 %v6438_v51, 0.0 }
 0x8e5   : > { %v6518_v61 = vmax.f32 %v6327_v33, 0.0  ;;  %v6520_v19 = vmax.f32 %v6440_v49, 0.0 }
 0x8e6   : > { %v6519_v30 = vmax.f32 %v6329_v41, 0.0  ;;  %v6521_v54 = vmax.f32 %v6442_v47, 0.0 }
 0x8e7   : > { %v6578_v9 = vpack.c.bf16 %v6518_v61, %v6514_v40  ;;  %v6580_v37 = vpack.c.bf16 %v6520_v19, %v6516_v27 }
 0x8e8   : > { %v6579_v13 = vpack.c.bf16 %v6519_v30, %v6515_v10  ;;  %v6581_v5 = vpack.c.bf16 %v6521_v54, %v6517_v20  ;;  %v6332_v58 = vpop.f32.mrb[156].mxu1  ;;  %v6445_v21 = vpop.f32.mrb[172].mxu0 }
 0x8e9   : > { %v6333_v36 = vadd.f32 %v6332_v58, %v11783_v62  ;;  %v6446_v17 = vadd.f32 %v6445_v21, %v11785_v46  ;;  %v6334_v18 = vpop.f32.mrb[157].mxu1  ;;  %v6447_v56 = vpop.f32.mrb[173].mxu0 }
 0x8ea   : > { %v6335_v23 = vadd.f32 %v6334_v18, %v11787_v52  ;;  %v6448_v11 = vadd.f32 %v6447_v56, %v11789_v50  ;;  %v6336_v63 = vpop.f32.mrb[158].mxu1  ;;  %v6449_v51 = vpop.f32.mrb[174].mxu0  ;;  %6905 = vmatprep.mubr.bf16.mxu1 %v6579_v13  ;;  %7002 = vmatprep.mubr.bf16.mxu0 %v6581_v5 }
 0x8eb   : > { %v6337_v34 = vadd.f32 %v6336_v63, %v11783_v62  ;;  %v6450_v33 = vadd.f32 %v6449_v51, %v11785_v46  ;;  %v6338_v49 = vpop.f32.mrb[159].mxu1  ;;  %v6451_v28 = vpop.f32.mrb[175].mxu0  ;;  %6906 = vmatmul.mubr.bf16.vlgmr.msra.gmra.mrb[184].mxu1 %v6578_v9  ;;  %7003 = vmatmul.mubr.bf16.vlgmr.msra.gmra.mrb[200].mxu0 %v6580_v37  ;;  %v6522_v47 = vmax.f32 %v6333_v36, 0.0  ;;  %v6524_v40 = vmax.f32 %v6446_v17, 0.0 }
 0x8ec   : > { %v6339_v29 = vadd.f32 %v6338_v49, %v11787_v52  ;;  %v6452_v41 = vadd.f32 %v6451_v28, %v11789_v50  ;;  %8163 = vmatpush3.bf16.msra.mxu1 %v11651_v53  ;;  %v6523_v19 = vmax.f32 %v6335_v23, 0.0  ;;  %v6525_v10 = vmax.f32 %v6448_v11, 0.0 }
 0x8ed   : > { %v6526_v27 = vmax.f32 %v6337_v34, 0.0  ;;  %v6528_v61 = vmax.f32 %v6450_v33, 0.0  ;;  %8156 = vmatprep.subr.bf16.mxu1 %v11656_v7 }
 0x8ee   : > { %v6527_v20 = vmax.f32 %v6339_v29, 0.0  ;;  %v6529_v30 = vmax.f32 %v6452_v41, 0.0 }
 0x8ef   : > { %v6582_v54 = vpack.c.bf16 %v6526_v27, %v6522_v47  ;;  %v6584_v13 = vpack.c.bf16 %v6528_v61, %v6524_v40 }
 0x8f0   : > { %v6583_v9 = vpack.c.bf16 %v6527_v20, %v6523_v19  ;;  %v6585_v37 = vpack.c.bf16 %v6529_v30, %v6525_v10  ;;  %8164 = vmatpush3.bf16.msra.mxu1 %v11666_v2 }
 0x8f1   : > { %8157 = vmatprep.subr.bf16.mxu1 %v11673_v39 }
 0x8f2   : > { %6913 = vmatprep.mubr.bf16.mxu1 %v6583_v9  ;;  %7010 = vmatprep.mubr.bf16.mxu0 %v6585_v37 }
 0x8f3   : > { %6914 = vmatmul.mubr.bf16.gmra.mrb[188].mxu1 %v6582_v54  ;;  %7011 = vmatmul.mubr.bf16.gmra.mrb[204].mxu0 %v6584_v13 }
 0x8f4   : > { %v6342_v53 = vpop.f32.mrb[160].mxu1  ;;  %v6455_v5 = vpop.f32.mrb[176].mxu0  ;;  %8165 = vmatpush3.bf16.msra.mxu1 %v11676_v24 }
 0x8f5   : > { %v6343_v7 = vadd.f32 %v6342_v53, %v11783_v62  ;;  %v6456_v58 = vadd.f32 %v6455_v5, %v11785_v46  ;;  %v6344_v21 = vpop.f32.mrb[161].mxu1  ;;  %v6457_v36 = vpop.f32.mrb[177].mxu0  ;;  %8158 = vmatprep.subr.bf16.mxu1 %v11682_v38 }
 0x8f6   : > { %v6345_v2 = vadd.f32 %v6344_v21, %v11787_v52  ;;  %v6458_v39 = vadd.f32 %v6457_v36, %v11789_v50  ;;  %v6346_v17 = vpop.f32.mrb[162].mxu1  ;;  %v6459_v18 = vpop.f32.mrb[178].mxu0 }
 0x8f7   : > { %v6347_v56 = vadd.f32 %v6346_v17, %v11783_v62  ;;  %v6460_v23 = vadd.f32 %v6459_v18, %v11785_v46  ;;  %v6348_v11 = vpop.f32.mrb[163].mxu1  ;;  %v6461_v24 = vpop.f32.mrb[179].mxu0  ;;  %v6530_v34 = vmax.f32 %v6343_v7, 0.0  ;;  %v6532_v38 = vmax.f32 %v6456_v58, 0.0 }
 0x8f8   : > { %v6349_v63 = vadd.f32 %v6348_v11, %v11787_v52  ;;  %v6462_v51 = vadd.f32 %v6461_v24, %v11789_v50  ;;  %8166 = vmatpush3.bf16.msra.mxu1 %v11694_v25  ;;  %v6531_v28 = vmax.f32 %v6345_v2, 0.0  ;;  %v6533_v29 = vmax.f32 %v6458_v39, 0.0 }
 0x8f9   : > { %v6534_v33 = vmax.f32 %v6347_v56, 0.0  ;;  %v6536_v49 = vmax.f32 %v6460_v23, 0.0  ;;  %8159 = vmatprep.subr.bf16.mxu1 %v11698_v26 }
 0x8fa   : > { %v6535_v41 = vmax.f32 %v6349_v63, 0.0  ;;  %v6537_v47 = vmax.f32 %v6462_v51, 0.0 }
 0x8fb   : > { %v6586_v40 = vpack.c.bf16 %v6534_v33, %v6530_v34  ;;  %v6588_v27 = vpack.c.bf16 %v6536_v49, %v6532_v38 }
 0x8fc   : > { %v6587_v61 = vpack.c.bf16 %v6535_v41, %v6531_v28  ;;  %v6589_v19 = vpack.c.bf16 %v6537_v47, %v6533_v29  ;;  %v6352_v10 = vpop.f32.mrb[164].mxu1  ;;  %v6465_v20 = vpop.f32.mrb[180].mxu0  ;;  %8167 = vmatpush3.bf16.msra.mxu1 %v11704_v48 }
 0x8fd   : > { %v6353_v25 = vadd.f32 %v6352_v10, %v11783_v62  ;;  %v6466_v30 = vadd.f32 %v6465_v20, %v11785_v46  ;;  %v6354_v54 = vpop.f32.mrb[165].mxu1  ;;  %v6467_v13 = vpop.f32.mrb[181].mxu0  ;;  %8160 = vmatprep.subr.bf16.mxu1 %v11715_v60 }
 0x8fe   : > { %v6355_v26 = vadd.f32 %v6354_v54, %v11787_v52  ;;  %v6468_v9 = vadd.f32 %v6467_v13, %v11789_v50  ;;  %v6356_v37 = vpop.f32.mrb[166].mxu1  ;;  %v6469_v53 = vpop.f32.mrb[182].mxu0  ;;  %6921 = vmatprep.mubr.bf16.mxu1 %v6587_v61  ;;  %7018 = vmatprep.mubr.bf16.mxu0 %v6589_v19 }
 0x8ff   : > { %v6357_v5 = vadd.f32 %v6356_v37, %v11783_v62  ;;  %v6470_v48 = vadd.f32 %v6469_v53, %v11785_v46  ;;  %v6358_v7 = vpop.f32.mrb[167].mxu1  ;;  %v6471_v58 = vpop.f32.mrb[183].mxu0  ;;  %6922 = vmatmul.mubr.bf16.gmra.mrb[192].mxu1 %v6586_v40  ;;  %7019 = vmatmul.mubr.bf16.gmra.mrb[208].mxu0 %v6588_v27  ;;  %v6538_v36 = vmax.f32 %v6353_v25, 0.0  ;;  %v6540_v2 = vmax.f32 %v6466_v30, 0.0 }
 0x900   : > { %v6359_v21 = vadd.f32 %v6358_v7, %v11787_v52  ;;  %v6472_v60 = vadd.f32 %v6471_v58, %v11789_v50  ;;  %8168 = vmatpush3.bf16.msra.mxu1 %v11758_v1  ;;  %v6539_v18 = vmax.f32 %v6355_v26, 0.0  ;;  %v6541_v56 = vmax.f32 %v6468_v9, 0.0 }
 0x901   : > { %v6542_v39 = vmax.f32 %v6357_v5, 0.0  ;;  %v6544_v17 = vmax.f32 %v6470_v48, 0.0  ;;  %8161 = vmatprep.subr.bf16.mxu1 %v11763_v43 }
 0x902   : > { %v6543_v23 = vmax.f32 %v6359_v21, 0.0  ;;  %v6545_v11 = vmax.f32 %v6472_v60, 0.0 }
 0x903   : > { %v6590_v24 = vpack.c.bf16 %v6542_v39, %v6538_v36  ;;  %v6592_v63 = vpack.c.bf16 %v6544_v17, %v6540_v2 }
 0x904   : > { %v6591_v51 = vpack.c.bf16 %v6543_v23, %v6539_v18  ;;  %v6593_v34 = vpack.c.bf16 %v6545_v11, %v6541_v56  ;;  %v6362_v38 = vpop.f32.mrb[168].mxu1  ;;  %v6475_v33 = vpop.f32.mrb[184].mxu0  ;;  %8169 = vmatpush3.bf16.msra.mxu1 %v11765_v42 }
 0x905   : > { %v6363_v1 = vadd.f32 %v6362_v38, %v11783_v62  ;;  %v6476_v49 = vadd.f32 %v6475_v33, %v11785_v46  ;;  %v6364_v28 = vpop.f32.mrb[169].mxu1  ;;  %v6477_v29 = vpop.f32.mrb[185].mxu0  ;;  %8162 = vmatprep.subr.bf16.mxu1 %v11768_v3 }
 0x906   : > { %v6365_v43 = vadd.f32 %v6364_v28, %v11787_v52  ;;  %v6478_v41 = vadd.f32 %v6477_v29, %v11789_v50  ;;  %v6366_v47 = vpop.f32.mrb[170].mxu1  ;;  %v6479_v40 = vpop.f32.mrb[186].mxu0  ;;  %6929 = vmatprep.mubr.bf16.mxu1 %v6591_v51  ;;  %7026 = vmatprep.mubr.bf16.mxu0 %v6593_v34 }
 0x907   : > { %v6367_v27 = vadd.f32 %v6366_v47, %v11783_v62  ;;  %v6480_v42 = vadd.f32 %v6479_v40, %v11785_v46  ;;  %v6368_v61 = vpop.f32.mrb[171].mxu1  ;;  %v6481_v19 = vpop.f32.mrb[187].mxu0  ;;  %6930 = vmatmul.mubr.bf16.gmra.mrb[196].mxu1 %v6590_v24  ;;  %7027 = vmatmul.mubr.bf16.gmra.mrb[212].mxu0 %v6592_v63  ;;  %v6546_v20 = vmax.f32 %v6363_v1, 0.0  ;;  %v6548_v25 = vmax.f32 %v6476_v49, 0.0 }
 0x908   : > { %v6369_v10 = vadd.f32 %v6368_v61, %v11787_v52  ;;  %v6482_v3 = vadd.f32 %v6481_v19, %v11789_v50  ;;  %8170 = vmatpush3.bf16.msra.mxu1 %v11772_v12  ;;  %v6547_v13 = vmax.f32 %v6365_v43, 0.0  ;;  %v6549_v26 = vmax.f32 %v6478_v41, 0.0 }
 0x909   : > { %v6550_v30 = vmax.f32 %v6367_v27, 0.0  ;;  %v6552_v54 = vmax.f32 %v6480_v42, 0.0 }
 0x90a   : > { %v6551_v9 = vmax.f32 %v6369_v10, 0.0  ;;  %v6553_v37 = vmax.f32 %v6482_v3, 0.0 }
 0x90b   : > { %v6594_v53 = vpack.c.bf16 %v6550_v30, %v6546_v20  ;;  %v6596_v5 = vpack.c.bf16 %v6552_v54, %v6548_v25 }
 0x90c   : > { %v6595_v48 = vpack.c.bf16 %v6551_v9, %v6547_v13  ;;  %v6597_v7 = vpack.c.bf16 %v6553_v37, %v6549_v26  ;;  %v6372_v58 = vpop.f32.mrb[172].mxu1  ;;  %v6485_v21 = vpop.f32.mrb[188].mxu0 }
 0x90d   : > { %v6373_v60 = vadd.f32 %v6372_v58, %v11783_v62  ;;  %v6486_v36 = vadd.f32 %v6485_v21, %v11785_v46  ;;  %v6374_v2 = vpop.f32.mrb[173].mxu1  ;;  %v6487_v12 = vpop.f32.mrb[189].mxu0 }
 0x90e   : > { %v6375_v39 = vadd.f32 %v6374_v2, %v11787_v52  ;;  %v6488_v17 = vadd.f32 %v6487_v12, %v11789_v50  ;;  %v6376_v18 = vpop.f32.mrb[174].mxu1  ;;  %v6489_v56 = vpop.f32.mrb[190].mxu0  ;;  %6937 = vmatprep.mubr.bf16.mxu1 %v6595_v48  ;;  %7034 = vmatprep.mubr.bf16.mxu0 %v6597_v7 }
 0x90f   : > { %v6377_v23 = vadd.f32 %v6376_v18, %v11783_v62  ;;  %v6490_v11 = vadd.f32 %v6489_v56, %v11785_v46  ;;  %v6378_v24 = vpop.f32.mrb[175].mxu1  ;;  %v6491_v63 = vpop.f32.mrb[191].mxu0  ;;  %6938 = vmatmul.mubr.bf16.gmra.mrb[200].mxu1 %v6594_v53  ;;  %7035 = vmatmul.mubr.bf16.gmra.mrb[216].mxu0 %v6596_v5  ;;  %v6554_v38 = vmax.f32 %v6373_v60, 0.0  ;;  %v6556_v33 = vmax.f32 %v6486_v36, 0.0 }
 0x910   : > { %v6379_v51 = vadd.f32 %v6378_v24, %v11787_v52  ;;  %v6492_v34 = vadd.f32 %v6491_v63, %v11789_v50  ;;  %v6555_v28 = vmax.f32 %v6375_v39, 0.0  ;;  %v6557_v29 = vmax.f32 %v6488_v17, 0.0 }
 0x911   : > { %v6558_v1 = vmax.f32 %v6377_v23, 0.0  ;;  %v6560_v49 = vmax.f32 %v6490_v11, 0.0 }
 0x912   : > { %v6559_v43 = vmax.f32 %v6379_v51, 0.0  ;;  %v6561_v41 = vmax.f32 %v6492_v34, 0.0 }
 0x913   : > { %v6598_v47 = vpack.c.bf16 %v6558_v1, %v6554_v38  ;;  %v6600_v40 = vpack.c.bf16 %v6560_v49, %v6556_v33 }
 0x914   : > { %v6599_v27 = vpack.c.bf16 %v6559_v43, %v6555_v28  ;;  %v6601_v42 = vpack.c.bf16 %v6561_v41, %v6557_v29 }
 0x916   : > { %6945 = vmatprep.mubr.bf16.mxu1 %v6599_v27  ;;  %7042 = vmatprep.mubr.bf16.mxu0 %v6601_v42 }
 0x917   : > { %6946 = vmatmul.mubr.bf16.gmra.mrb[204].mxu1 %v6598_v47  ;;  %7043 = vmatmul.mubr.bf16.gmra.mrb[220].mxu0 %v6600_v40 }
 0x932   : > { %v6382_v61 = vpop.f32.mrb[176].mxu1  ;;  %v6495_v19 = vpop.f32.mrb[192].mxu0 }
 0x933   : > { %v6383_v10 = vadd.f32 %v6382_v61, %v11783_v62  ;;  %v6496_v3 = vadd.f32 %v6495_v19, %v11785_v46  ;;  %v6384_v20 = vpop.f32.mrb[177].mxu1  ;;  %v6497_v25 = vpop.f32.mrb[193].mxu0 }
 0x934   : > { %v6385_v30 = vadd.f32 %v6384_v20, %v11787_v52  ;;  %v6498_v54 = vadd.f32 %v6497_v25, %v11789_v50  ;;  %v6386_v13 = vpop.f32.mrb[178].mxu1  ;;  %v6499_v26 = vpop.f32.mrb[194].mxu0 }
 0x935   : > { %v6387_v9 = vadd.f32 %v6386_v13, %v11783_v62  ;;  %v6500_v37 = vadd.f32 %v6499_v26, %v11785_v46  ;;  %v6388_v53 = vpop.f32.mrb[179].mxu1  ;;  %v6501_v5 = vpop.f32.mrb[195].mxu0  ;;  %v6562_v58 = vmax.f32 %v6383_v10, 0.0  ;;  %v6564_v21 = vmax.f32 %v6496_v3, 0.0 }
 0x936   : > { %v6389_v48 = vadd.f32 %v6388_v53, %v11787_v52  ;;  %v6502_v7 = vadd.f32 %v6501_v5, %v11789_v50  ;;  %v6563_v2 = vmax.f32 %v6385_v30, 0.0  ;;  %v6565_v12 = vmax.f32 %v6498_v54, 0.0 }
 0x937   : > { %v6566_v60 = vmax.f32 %v6387_v9, 0.0  ;;  %v6568_v36 = vmax.f32 %v6500_v37, 0.0 }
 0x938   : > { %v6567_v39 = vmax.f32 %v6389_v48, 0.0  ;;  %v6569_v17 = vmax.f32 %v6502_v7, 0.0 }
 0x939   : > { %v6602_v18 = vpack.c.bf16 %v6566_v60, %v6562_v58  ;;  %v6604_v56 = vpack.c.bf16 %v6568_v36, %v6564_v21 }
 0x93a   : > { %v6603_v23 = vpack.c.bf16 %v6567_v39, %v6563_v2  ;;  %v6605_v11 = vpack.c.bf16 %v6569_v17, %v6565_v12  ;;  %v6392_v24 = vpop.f32.mrb[180].mxu1  ;;  %v6505_v63 = vpop.f32.mrb[196].mxu0 }
 0x93b   : > { %v6393_v51 = vadd.f32 %v6392_v24, %v11783_v62  ;;  %v6506_v34 = vadd.f32 %v6505_v63, %v11785_v46  ;;  %v6394_v38 = vpop.f32.mrb[181].mxu1  ;;  %v6507_v33 = vpop.f32.mrb[197].mxu0 }
 0x93c   : > { %v6395_v1 = vadd.f32 %v6394_v38, %v11787_v52  ;;  %v6508_v49 = vadd.f32 %v6507_v33, %v11789_v50  ;;  %v6396_v28 = vpop.f32.mrb[182].mxu1  ;;  %v6509_v29 = vpop.f32.mrb[198].mxu0  ;;  %6953 = vmatprep.mubr.bf16.mxu1 %v6603_v23 }
 0x93d   : > { %v6397_v43 = vadd.f32 %v6396_v28, %v11783_v62  ;;  %v6510_v41 = vadd.f32 %v6509_v29, %v11785_v46  ;;  %v6398_v47 = vpop.f32.mrb[183].mxu1  ;;  %v6511_v40 = vpop.f32.mrb[199].mxu0  ;;  %6954 = vmatmul.mubr.bf16.gmra.mrb[208].mxu1 %v6602_v18  ;;  %v6570_v61 = vmax.f32 %v6393_v51, 0.0  ;;  %v6572_v19 = vmax.f32 %v6506_v34, 0.0 }
 0x93e   : > { %v6399_v27 = vadd.f32 %v6398_v47, %v11787_v52  ;;  %v6512_v42 = vadd.f32 %v6511_v40, %v11789_v50  ;;  %v6571_v20 = vmax.f32 %v6395_v1, 0.0  ;;  %v6573_v25 = vmax.f32 %v6508_v49, 0.0  ;;  %v11873_v50 = vld [vmem:[%s12182_s3] ss:$0 sm:$0xff] }
 0x93f   : > { %v6574_v10 = vmax.f32 %v6397_v43, 0.0  ;;  %v6576_v3 = vmax.f32 %v6510_v41, 0.0 }
 0x940   : > { %v6575_v30 = vmax.f32 %v6399_v27, 0.0  ;;  %v6577_v54 = vmax.f32 %v6512_v42, 0.0 }
 0x941   : > { %v6606_v13 = vpack.c.bf16 %v6574_v10, %v6570_v61  ;;  %v6608_v26 = vpack.c.bf16 %v6576_v3, %v6572_v19 }
 0x942   : > { %v6607_v62 = vpack.c.bf16 %v6575_v30, %v6571_v20  ;;  %v6609_v9 = vpack.c.bf16 %v6577_v54, %v6573_v25 }
 0x944   : > { %6961 = vmatprep.mubr.bf16.mxu1 %v6607_v62 }
 0x945   : > { %6962 = vmatmul.mubr.bf16.gmra.mrb[212].mxu1 %v6606_v13 }
 0x946   : > { %7050 = vmatprep.mubr.bf16.mxu1 %v6605_v11 }
 0x94d   : > { %7051 = vmatmul.mubr.bf16.vlgmr.msra.gmra.mrb[216].mxu1 %v6604_v56 }
 0x94e   : > { %7058 = vmatprep.mubr.bf16.mxu1 %v6609_v9 }
 0x955   : > { %7059 = vmatmul.mubr.bf16.gmra.mrb[220].mxu1 %v6608_v26 }
 0x9be   : > { %v7595_v46 = vpop.f32.mrb[184].mxu1  ;;  %v7659_v52 = vpop.f32.mrb[200].mxu0 }
 0x9bf   : > { %v7596_v37 = vpop.f32.mrb[185].mxu1  ;;  %v7660_v53 = vpop.f32.mrb[201].mxu0 }
 0x9c0   : > { %v7597_v5 = vadd.f32 %v7596_v37, %v7595_v46  ;;  %v7661_v48 = vadd.f32 %v7660_v53, %v7659_v52  ;;  %v7598_v7 = vpop.f32.mrb[186].mxu1  ;;  %v7662_v58 = vpop.f32.mrb[202].mxu0 }
 0x9c1   : > { %v7599_v21 = vpop.f32.mrb[187].mxu1  ;;  %v7663_v60 = vpop.f32.mrb[203].mxu0 }
 0x9c2   : > { %v6908_v36 = vadd.f32 %v7597_v5, %v11873_v50  ;;  %v7600_v2 = vadd.f32 %v7599_v21, %v7598_v7  ;;  %v7664_v12 = vadd.f32 %v7663_v60, %v7662_v58 }
 0x9c4   : > { %v7005_v39 = vadd.f32 %v7661_v48, %v6908_v36  ;;  %v6911_v17 = vadd.f32 %v7600_v2, %v11873_v50 }
 0x9c6   : > { %v7067_v18 = vadd.f32 %v7005_v39, %v11510_v6  ;;  %v7008_v56 = vadd.f32 %v7664_v12, %v6911_v17  ;;  %v7601_v23 = vpop.f32.mrb[188].mxu1  ;;  %v7665_v11 = vpop.f32.mrb[204].mxu0 }
 0x9c7   : > { %v7602_v24 = vpop.f32.mrb[189].mxu1  ;;  %v7666_v63 = vpop.f32.mrb[205].mxu0 }
 0x9c8   : > { %7083 = vst [vmem:[%s11880_s18] sm:$0xff] %v7067_v18  ;;  %v7068_v51 = vadd.f32 %v7008_v56, %v11514_v4  ;;  %v7603_v34 = vadd.f32 %v7602_v24, %v7601_v23  ;;  %v7667_v38 = vadd.f32 %v7666_v63, %v7665_v11  ;;  %v7604_v33 = vpop.f32.mrb[190].mxu1  ;;  %v7668_v1 = vpop.f32.mrb[206].mxu0 }
 0x9c9   : > { %v7605_v6 = vpop.f32.mrb[191].mxu1  ;;  %v7669_v49 = vpop.f32.mrb[207].mxu0 }
 0x9ca   : > { %7084 = vst [vmem:[%s11880_s18 + $0x8] sm:$0xff] %v7068_v51  ;;  %v6916_v28 = vadd.f32 %v7603_v34, %v11873_v50  ;;  %v7606_v29 = vadd.f32 %v7605_v6, %v7604_v33  ;;  %v7670_v43 = vadd.f32 %v7669_v49, %v7668_v1 }
 0x9cc   : > { %v7013_v41 = vadd.f32 %v7667_v38, %v6916_v28  ;;  %v6919_v47 = vadd.f32 %v7606_v29, %v11873_v50 }
 0x9ce   : > { %v7069_v40 = vadd.f32 %v7013_v41, %v11528_v44  ;;  %v7016_v27 = vadd.f32 %v7670_v43, %v6919_v47 }
 0x9d0   : > { %7085 = vst [vmem:[%s11880_s18 + $0x10] sm:$0xff] %v7069_v40  ;;  %v7070_v4 = vadd.f32 %v7016_v27, %v11525_v45 }
 0x9d2   : > { %7086 = vst [vmem:[%s11880_s18 + $0x18] sm:$0xff] %v7070_v4  ;;  %v7607_v42 = vpop.f32.mrb[192].mxu1  ;;  %v7671_v61 = vpop.f32.mrb[208].mxu0 }
 0x9d3   : > { %v7608_v19 = vpop.f32.mrb[193].mxu1  ;;  %v7672_v10 = vpop.f32.mrb[209].mxu0 }
 0x9d4   : > { %v7609_v3 = vadd.f32 %v7608_v19, %v7607_v42  ;;  %v7673_v20 = vadd.f32 %v7672_v10, %v7671_v61  ;;  %v7610_v25 = vpop.f32.mrb[194].mxu1  ;;  %v7674_v30 = vpop.f32.mrb[210].mxu0 }
 0x9d5   : > { %v7611_v54 = vpop.f32.mrb[195].mxu1  ;;  %v7675_v13 = vpop.f32.mrb[211].mxu0 }
 0x9d6   : > { %v6924_v26 = vadd.f32 %v7609_v3, %v11873_v50  ;;  %v7612_v62 = vadd.f32 %v7611_v54, %v7610_v25  ;;  %v7676_v44 = vadd.f32 %v7675_v13, %v7674_v30 }
 0x9d8   : > { %v7021_v9 = vadd.f32 %v7673_v20, %v6924_v26  ;;  %v6927_v45 = vadd.f32 %v7612_v62, %v11873_v50 }
 0x9da   : > { %v7071_v46 = vadd.f32 %v7021_v9, %v11538_v31  ;;  %v7024_v52 = vadd.f32 %v7676_v44, %v6927_v45  ;;  %v7613_v37 = vpop.f32.mrb[196].mxu1  ;;  %v7677_v53 = vpop.f32.mrb[212].mxu0 }
 0x9db   : > { %v7614_v5 = vpop.f32.mrb[197].mxu1  ;;  %v7678_v48 = vpop.f32.mrb[213].mxu0 }
 0x9dc   : > { %7087 = vst [vmem:[%s11880_s18 + $0x20] sm:$0xff] %v7071_v46  ;;  %v7072_v7 = vadd.f32 %v7024_v52, %v11542_v14  ;;  %v7615_v58 = vadd.f32 %v7614_v5, %v7613_v37  ;;  %v7679_v21 = vadd.f32 %v7678_v48, %v7677_v53  ;;  %v7616_v60 = vpop.f32.mrb[198].mxu1  ;;  %v7680_v36 = vpop.f32.mrb[214].mxu0 }
 0x9dd   : > { %v7617_v2 = vpop.f32.mrb[199].mxu1  ;;  %v7681_v12 = vpop.f32.mrb[215].mxu0 }
 0x9de   : > { %7088 = vst [vmem:[%s11880_s18 + $0x28] sm:$0xff] %v7072_v7  ;;  %v6932_v39 = vadd.f32 %v7615_v58, %v11873_v50  ;;  %v7618_v17 = vadd.f32 %v7617_v2, %v7616_v60  ;;  %v7682_v31 = vadd.f32 %v7681_v12, %v7680_v36 }
 0x9e0   : > { %v7029_v18 = vadd.f32 %v7679_v21, %v6932_v39  ;;  %v6935_v56 = vadd.f32 %v7618_v17, %v11873_v50 }
 0x9e2   : > { %v7073_v23 = vadd.f32 %v7029_v18, %v11553_v35  ;;  %v7032_v11 = vadd.f32 %v7682_v31, %v6935_v56  ;;  %v7619_v14 = vpop.f32.mrb[200].mxu1  ;;  %v7683_v24 = vpop.f32.mrb[216].mxu0 }
 0x9e3   : > { %v7620_v63 = vpop.f32.mrb[201].mxu1  ;;  %v7684_v51 = vpop.f32.mrb[217].mxu0 }
 0x9e4   : > { %7089 = vst [vmem:[%s11880_s18 + $0x30] sm:$0xff] %v7073_v23  ;;  %v7074_v34 = vadd.f32 %v7032_v11, %v11556_v55  ;;  %v7621_v38 = vadd.f32 %v7620_v63, %v7619_v14  ;;  %v7685_v33 = vadd.f32 %v7684_v51, %v7683_v24  ;;  %v7622_v1 = vpop.f32.mrb[202].mxu1  ;;  %v7686_v6 = vpop.f32.mrb[218].mxu0 }
 0x9e5   : > { %v7623_v49 = vpop.f32.mrb[203].mxu1  ;;  %v7687_v28 = vpop.f32.mrb[219].mxu0 }
 0x9e6   : > { %7090 = vst [vmem:[%s11880_s18 + $0x38] sm:$0xff] %v7074_v34  ;;  %v6940_v29 = vadd.f32 %v7621_v38, %v11873_v50  ;;  %v7624_v43 = vadd.f32 %v7623_v49, %v7622_v1  ;;  %v7688_v35 = vadd.f32 %v7687_v28, %v7686_v6 }
 0x9e8   : > { %v7037_v41 = vadd.f32 %v7685_v33, %v6940_v29  ;;  %v6943_v47 = vadd.f32 %v7624_v43, %v11873_v50 }
 0x9ea   : > { %v7075_v40 = vadd.f32 %v7037_v41, %v11567_v16  ;;  %v7040_v27 = vadd.f32 %v7688_v35, %v6943_v47  ;;  %v7625_v55 = vpop.f32.mrb[204].mxu1  ;;  %v7689_v4 = vpop.f32.mrb[220].mxu0 }
 0x9eb   : > { %v7626_v42 = vpop.f32.mrb[205].mxu1  ;;  %v7690_v61 = vpop.f32.mrb[221].mxu0 }
 0x9ec   : > { %7091 = vst [vmem:[%s11880_s18 + $0x40] sm:$0xff] %v7075_v40  ;;  %v7076_v19 = vadd.f32 %v7040_v27, %v11570_v15  ;;  %v7627_v10 = vadd.f32 %v7626_v42, %v7625_v55  ;;  %v7691_v3 = vadd.f32 %v7690_v61, %v7689_v4  ;;  %v7628_v20 = vpop.f32.mrb[206].mxu1  ;;  %v7692_v25 = vpop.f32.mrb[222].mxu0 }
 0x9ed   : > { %v7629_v30 = vpop.f32.mrb[207].mxu1  ;;  %v7693_v54 = vpop.f32.mrb[223].mxu0 }
 0x9ee   : > { %7092 = vst [vmem:[%s11880_s18 + $0x48] sm:$0xff] %v7076_v19  ;;  %v6948_v13 = vadd.f32 %v7627_v10, %v11873_v50  ;;  %v7630_v16 = vadd.f32 %v7629_v30, %v7628_v20  ;;  %v7694_v26 = vadd.f32 %v7693_v54, %v7692_v25 }
 0x9f0   : > { %v7045_v62 = vadd.f32 %v7691_v3, %v6948_v13  ;;  %v6951_v44 = vadd.f32 %v7630_v16, %v11873_v50 }
 0x9f2   : > { %v7077_v9 = vadd.f32 %v7045_v62, %v11581_v22  ;;  %v7048_v45 = vadd.f32 %v7694_v26, %v6951_v44 }
 0x9f4   : > { %7093 = vst [vmem:[%s11880_s18 + $0x50] sm:$0xff] %v7077_v9  ;;  %v7078_v15 = vadd.f32 %v7048_v45, %v11584_v8 }
 0x9f6   : > { %7094 = vst [vmem:[%s11880_s18 + $0x58] sm:$0xff] %v7078_v15 }
 0xa10   : > { %v7631_v46 = vpop.f32.mrb[208].mxu1 }
 0xa11   : > { %v7632_v52 = vpop.f32.mrb[209].mxu1 }
 0xa12   : > { %v7633_v37 = vadd.f32 %v7632_v52, %v7631_v46  ;;  %v7634_v53 = vpop.f32.mrb[210].mxu1 }
 0xa13   : > { %v7635_v5 = vpop.f32.mrb[211].mxu1 }
 0xa14   : > { %v7636_v48 = vadd.f32 %v7635_v5, %v7634_v53  ;;  %v6956_v39 = vadd.f32 %v7633_v37, %v11873_v50 }
 0xa16   : > { %v6959_v18 = vadd.f32 %v7636_v48, %v11873_v50 }
 0xa18   : > { %v7637_v7 = vpop.f32.mrb[212].mxu1 }
 0xa19   : > { %v7638_v58 = vpop.f32.mrb[213].mxu1 }
 0xa1a   : > { %v7639_v21 = vadd.f32 %v7638_v58, %v7637_v7  ;;  %v7640_v60 = vpop.f32.mrb[214].mxu1 }
 0xa1b   : > { %v7641_v36 = vpop.f32.mrb[215].mxu1 }
 0xa1c   : > { %v7642_v2 = vadd.f32 %v7641_v36, %v7640_v60  ;;  %v6964_v34 = vadd.f32 %v7639_v21, %v11873_v50 }
 0xa1e   : > { %v6967_v6 = vadd.f32 %v7642_v2, %v11873_v50 }
 0xa20   : > { %v7695_v12 = vpop.f32.mrb[216].mxu1 }
 0xa21   : > { %v7696_v22 = vpop.f32.mrb[217].mxu1 }
 0xa22   : > { %v7697_v8 = vadd.f32 %v7696_v22, %v7695_v12  ;;  %v7698_v17 = vpop.f32.mrb[218].mxu1 }
 0xa23   : > { %v7699_v31 = vpop.f32.mrb[219].mxu1 }
 0xa24   : > { %v7053_v56 = vadd.f32 %v7697_v8, %v6956_v39  ;;  %v7700_v23 = vadd.f32 %v7699_v31, %v7698_v17 }
 0xa26   : > { %v7079_v11 = vadd.f32 %v7053_v56, %v11594_v57  ;;  %v7056_v14 = vadd.f32 %v7700_v23, %v6959_v18 }
 0xa28   : > { %7095 = vst [vmem:[%s11880_s18 + $0x60] sm:$0xff] %v7079_v11  ;;  %v7080_v24 = vadd.f32 %v7056_v14, %v11598_v0  ;;  %v7701_v63 = vpop.f32.mrb[220].mxu1 }
 0xa29   : > { %v7702_v51 = vpop.f32.mrb[221].mxu1 }
 0xa2a   : > { %7096 = vst [vmem:[%s11880_s18 + $0x68] sm:$0xff] %v7080_v24  ;;  %v7703_v38 = vadd.f32 %v7702_v51, %v7701_v63  ;;  %v7704_v33 = vpop.f32.mrb[222].mxu1 }
 0xa2b   : > { %v7705_v1 = vpop.f32.mrb[223].mxu1 }
 0xa2c   : > { %v7061_v49 = vadd.f32 %v7703_v38, %v6964_v34  ;;  %v7706_v57 = vadd.f32 %v7705_v1, %v7704_v33 }
 0xa2e   : > { %v7081_v0 = vadd.f32 %v7061_v49, %v11609_v59  ;;  %v7064_v28 = vadd.f32 %v7706_v57, %v6967_v6 }
 0xa30   : > { %7097 = vst [vmem:[%s11880_s18 + $0x70] sm:$0xff] %v7081_v0  ;;  %v7082_v50 = vadd.f32 %v7064_v28, %v11612_v32 }
 0xa32   : > { %7098 = vst [vmem:[%s11880_s18 + $0x78] sm:$0xff] %v7082_v50 }
 0xa33   : > { %9366 = shalt.err (!%p9363_p13)
}
 0xa34   : > { %s9367_s16 = scalar_lea.hbm %s11929_s9, 2048  ;;  %s9371_s18 = scalar_lea.hbm %s12183_s14, 4096 }
 0xa35   : > { %p9368_p9 = scmp.ne.s32.totalorder %s11929_s9, %s9367_s16  ;;  %p9372_p4 = scmp.lt.u32.totalorder %s11929_s9, %s12183_s14 }
 0xa36   : > { %p9373_p8 = scmp.lt.u32.totalorder %s9371_s18, %s9367_s16  ;;  %p9375_p3 = scmp.lt.u32.totalorder %s9367_s16, %s11929_s9 }
 0xa37   : > { %p9369_p0 = pnand %p9368_p9, %p9673_p10 }
 0xa38   : > { %p9374_p6 = por %p9373_p8, %p9372_p4 }
 0xa39   : > { %p9370_p11 = pneg %p9369_p0 }
 0xa3a   : > { %p9376_p5 = por %p9375_p3, %p9374_p6 }
 0xa3c   : > { %p9377_p7 = pnand %p9376_p5, %p9370_p11 }
 0xa3e   : > { %9380 = shalt.err (!%p9377_p7)
}
 0xa3f   : > { %s9450_s12 = smov 128   ;;  %s9451_s25 = smov 8  }
 0xa40   : > { %8189 = dma.vmem_to_hbm [thread:$0]  (%p9673_p10), %s11931_s13, 2048, %s11929_s9, %s7100_s26, %s9450_s12, %s9450_s12, %s9451_s25  }
 0xa41 PF: > { %s12184_s27 = sld [smem:[#allocation16_spill]]  ;;  %s12185_s29 = sld [smem:[#allocation17_spill]] }
 0xa42   : > { %p12187_p2 = scmp.ge.s32.totalorder %s9427_s24, 2 }
 0xa47   : > { %s7129_s17 = sand.u32 1, %s12184_s27   ;;  %p12186_p12 = scmp.ne.s32.totalorder %s12185_s29, 0 }
 0xa48   : > { %s7130_s16 = scalar_lea.sflag [#allocation4], %s7129_s17 }
 0xa49   : > { %p8209_p1 = pnand %p12187_p2, %p12186_p12 }
 0xa4b   : > { %9410 = dma.done.wait (!%p8209_p1), %s7130_s16, 2048  }
 0xa4c   : > { %9412 = vsyncadd (!%p8209_p1), %s7130_s16, 4294965248  ;;  %p27_p13 = scmp.ge.s32.totalorder %s9663_s30, 4   ;;  %s12188_s21 = smov %s9419_s22 }
 0xa4d   : > { %s12189_s22 = smov %s9423_s23  ;;  %s12190_s23 = smov %s9679_s20 }
 0xa4e   : > { %s12191_s24 = smov %s9663_s30  ;;  %29 = sbr.rel (!%p27_p13) target bundleno = 12 (0xc), region = 129 }
 0xa55   :  { %7135 = vsyncpa [#allocation3], 1 }
 0xa56   :  { %7137 = vsyncpa [#allocation3 + $0x1], 1 }
 0xa57   :  { %7138 = vsyncpa [#allocation6], 1 }
 0xa58   :  { %7139 = vsyncpa [#allocation9], 1 }
 0xa59   :  { %7140 = vsyncpa [#allocation4], 1 }
 0xa5a   :  { %7142 = vsyncpa [#allocation4 + $0x1], 1 }

</bundles_post_ra>
